<compile_context>
chip_gen: v6e
topology: v6e:2x2x1
jax: 0.10.0
libtpu: 0.0.40
codegen_flags: <defaults>
</compile_context>

<pallas_src>
import jax
import jax.numpy as jnp
from jax.experimental import pallas as pl
from jax.experimental.pallas import tpu as pltpu

F32 = jnp.float32
BF16 = jnp.bfloat16


# ----------------------------------------------------------------------------------
# Fused Pallas kernel
# ----------------------------------------------------------------------------------
def _make_fused_kernel(bb, Ts, ks, G):
    T1, T2, T3 = Ts
    k1, k2, k3 = ks
    M = T1 // 4          # macro steps: 4 / 2 / 1 GRU steps per branch per iteration

    def conv_relu(xt, w_ref, b_ref, k, T):
        """Causal Conv1d + ReLU.  xt: (T, bb, cin) f32; w_ref: (k, cin, cout) bf16;
        b_ref: (1, cout) f32  ->  (T, bb, cout) f32."""
        cin = xt.shape[-1]
        cout = w_ref.shape[-1]
        # causal left zero pad along the (leading) time axis == ConstantPad1d((k-1, 0))
        xp = jnp.concatenate([jnp.zeros((k - 1, bb, cin), xt.dtype), xt], axis=0)
        acc = jnp.zeros((T * bb, cout), F32)
        # k accumulated per-tap dots (bf16 operands, f32 accumulate): taps are clean
        # leading-axis slices -> no lane concat / relayout work at all.
        for j in range(k):
            tap = xp[j:j + T].reshape(T * bb, cin).astype(BF16)
            acc = acc + jnp.dot(tap, w_ref[j], preferred_element_type=F32)
        return jnp.maximum(acc + b_ref[...], 0.0).reshape(T, bb, cout)

    def gru_pre(a, wih_ref, bih, T):
        """Hoisted GRU input projection for ALL timesteps -> (T, bb, 3G) f32.
        Gate blocks are lane-aligned: r @ [0:G), z @ [G:2G), n @ [2G:3G)."""
        nch = a.shape[-1]
        pre = jnp.dot(a.reshape(T * bb, nch).astype(BF16), wih_ref[...],
                      preferred_element_type=F32) + bih
        return pre.reshape(T, bb, 3 * G)

    def gru_step(h, p, whh, bhh):
        """One GRU step.  h: (bb, G) f32 (lanes >= H stay exactly 0), p: (bb, 3G) f32,
        whh: (G, 3G) bf16, bhh: (1, 3G) f32.  All gate slices are 128-lane aligned."""
        rec = jnp.dot(h.astype(BF16), whh, preferred_element_type=F32) + bhh
        r = jax.nn.sigmoid(p[:, :G] + rec[:, :G])
        z = jax.nn.sigmoid(p[:, G:2 * G] + rec[:, G:2 * G])
        n = jnp.tanh(p[:, 2 * G:] + r * rec[:, 2 * G:])
        return (1.0 - z) * n + z * h

    def kernel(x1_ref, x2_ref, x3_ref, xf_ref,
               c11w, c11b, c12w, c12b, wih1,
               c21w, c21b, c22w, c22b, wih2,
               c31w, c31b, c32w, c32b, wih3,
               bih_all, whh_all, bhh_all,
               w1_all, l2w, ob,
               o_ref,
               pre1_ref, pre2_ref, pre3_ref):
        # ---- conv stacks + hoisted per-timestep GRU input projections (big matmuls) --
        a1 = conv_relu(x1_ref[...], c11w, c11b, k1, T1)
        a1 = conv_relu(a1, c12w, c12b, k1, T1)
        pre1_ref[...] = gru_pre(a1, wih1, bih_all[0], T1)

        a2 = conv_relu(x2_ref[...], c21w, c21b, k2, T2)
        a2 = conv_relu(a2, c22w, c22b, k2, T2)
        pre2_ref[...] = gru_pre(a2, wih2, bih_all[1], T2)

        a3 = conv_relu(x3_ref[...], c31w, c31b, k3, T3)
        a3 = conv_relu(a3, c32w, c32b, k3, T3)
        pre3_ref[...] = gru_pre(a3, wih3, bih_all[2], T3)

        # ---- three interleaved serial GRU recurrences --------------------------------
        whh1, whh2, whh3 = whh_all[0], whh_all[1], whh_all[2]   # (G, 3G) bf16
        bhh1, bhh2, bhh3 = bhh_all[0], bhh_all[1], bhh_all[2]   # (1, 3G) f32
        h0 = jnp.zeros((bb, G), F32)

        def macro(m, carry):
            h1, h2, h3 = carry
            t1 = 4 * m
            t2 = 2 * m
            # 4 + 2 + 1 steps of three INDEPENDENT chains per iteration: the scheduler
            # overlaps their MXU dots / EUP sigmoids-tanh / VPU blends, while the
            # fori_loop bounds live ranges across macro steps.
            h1 = gru_step(h1, pre1_ref[t1], whh1, bhh1)
            h2 = gru_step(h2, pre2_ref[t2], whh2, bhh2)
            h3 = gru_step(h3, pre3_ref[m], whh3, bhh3)
            h1 = gru_step(h1, pre1_ref[t1 + 1], whh1, bhh1)
            h2 = gru_step(h2, pre2_ref[t2 + 1], whh2, bhh2)
            h1 = gru_step(h1, pre1_ref[t1 + 2], whh1, bhh1)
            h1 = gru_step(h1, pre1_ref[t1 + 3], whh1, bhh1)
            return h1, h2, h3

        h1, h2, h3 = jax.lax.fori_loop(0, M, macro, (h0, h0, h0))

        # ---- fused head: split lin1 (no lane concat) + permuted lin2 + merged bias ---
        out = jnp.dot(h1.astype(BF16), w1_all[0], preferred_element_type=F32)
        out = out + jnp.dot(h2.astype(BF16), w1_all[1], preferred_element_type=F32)
        out = out + jnp.dot(h3.astype(BF16), w1_all[2], preferred_element_type=F32)
        out = out + jnp.dot(xf_ref[...].astype(BF16), l2w[...],
                            preferred_element_type=F32)
        o_ref[...] = out + ob[...]

    return kernel


# ----------------------------------------------------------------------------------
# One-time parameter packing (PyTorch-shaped params -> kernel-friendly layouts)
# ----------------------------------------------------------------------------------
def pack_params(p, *, input_dim, timesteps):
    C, T = input_dim, timesteps
    out_dim = p['lin1_w'].shape[0]
    Hs = (p['gru1_whh'].shape[1], p['gru2_whh'].shape[1], p['gru3_whh'].shape[1])
    G = ((max(Hs) + 127) // 128) * 128        # lane-aligned gate / hidden width

    def conv(w):      # torch (Cout, Cin, k) -> (k, Cin, Cout): per-tap (Cin,Cout) slabs
        return jnp.transpose(w, (2, 1, 0)).astype(BF16)

    def vec(b):
        return b.reshape(1, -1).astype(F32)

    def gate_cols(w_t, H):    # (in, 3H) -> (in, 3G): gate g occupies lanes [gG, gG+H)
        out = jnp.zeros((w_t.shape[0], 3 * G), F32)
        for g in range(3):
            out = out.at[:, g * G:g * G + H].set(w_t[:, g * H:(g + 1) * H])
        return out

    def wih_pack(w, H):       # torch (3H, nch) -> (nch, 3G) bf16
        return gate_cols(w.T, H).astype(BF16)

    def whh_pack(w, H):       # torch (3H, H) -> (G, 3G) bf16 (rows >= H are zero)
        return jnp.zeros((G, 3 * G), F32).at[:H].set(gate_cols(w.T, H)).astype(BF16)

    def gate_bias(b, H):      # (3H,) -> (1, 3G) f32
        out = jnp.zeros((3 * G,), F32)
        for g in range(3):
            out = out.at[g * G:g * G + H].set(b[g * H:(g + 1) * H])
        return out.reshape(1, 3 * G)

    # lin1 split into three per-branch (G, out) blocks -> head needs no lane concat.
    w1_blocks, off = [], 0
    for H in Hs:
        w1_blocks.append(
            jnp.zeros((G, out_dim), F32).at[:H].set(p['lin1_w'][:, off:off + H].T))
        off += H

    return {
        'c11w': conv(p['conv11_w']), 'c11b': vec(p['conv11_b']),
        'c12w': conv(p['conv12_w']), 'c12b': vec(p['conv12_b']),
        'wih1': wih_pack(p['gru1_wih'], Hs[0]),
        'c21w': conv(p['conv21_w']), 'c21b': vec(p['conv21_b']),
        'c22w': conv(p['conv22_w']), 'c22b': vec(p['conv22_b']),
        'wih2': wih_pack(p['gru2_wih'], Hs[1]),
        'c31w': conv(p['conv31_w']), 'c31b': vec(p['conv31_b']),
        'c32w': conv(p['conv32_w']), 'c32b': vec(p['conv32_b']),
        'wih3': wih_pack(p['gru3_wih'], Hs[2]),
        # stacked across branches (fewer BlockSpecs / less DMA + VMEM bookkeeping)
        'bih_all': jnp.stack([gate_bias(p['gru1_bih'], Hs[0]),
                              gate_bias(p['gru2_bih'], Hs[1]),
                              gate_bias(p['gru3_bih'], Hs[2])]),
        'whh_all': jnp.stack([whh_pack(p['gru1_whh'], Hs[0]),
                              whh_pack(p['gru2_whh'], Hs[1]),
                              whh_pack(p['gru3_whh'], Hs[2])]),
        'bhh_all': jnp.stack([gate_bias(p['gru1_bhh'], Hs[0]),
                              gate_bias(p['gru2_bhh'], Hs[1]),
                              gate_bias(p['gru3_bhh'], Hs[2])]),
        'w1_all': jnp.stack(w1_blocks).astype(BF16),
        # Permute lin2 columns (torch flatten is channel-major C*T) so x can be
        # flattened time-major (B, T*C) with a free reshape instead of a transpose.
        'l2w': jnp.transpose(p['lin2_w'].reshape(out_dim, C, T),
                             (2, 1, 0)).reshape(T * C, out_dim).astype(BF16),
        'ob': vec(p['lin1_b'] + p['lin2_b']),     # merged head bias
    }


_PARAM_ORDER = ('c11w', 'c11b', 'c12w', 'c12b', 'wih1',
                'c21w', 'c21b', 'c22w', 'c22b', 'wih2',
                'c31w', 'c31b', 'c32w', 'c32b', 'wih3',
                'bih_all', 'whh_all', 'bhh_all', 'w1_all', 'l2w', 'ob')


# ----------------------------------------------------------------------------------
# Forward wrapper (cheap glue: batch pad, pooling, time-major views)
# ----------------------------------------------------------------------------------
def _pick_bb(b_pad):
    """Largest sublane-aligned batch tile (<= 128) dividing b_pad, preferring a grid of
    >= 2 'parallel' steps so both v7x TensorCores get work at real batch sizes."""
    cands = [c for c in (128, 64, 32, 16, 8) if b_pad % c == 0]
    for c in cands:
        if b_pad // c >= 2:
            return c
    return cands[-1]          # b_pad == 8: single tile / single grid step


def conv_rnn_forward(x, packed):
    """x: (B, T, C) float32 -> (B, output_dim) float32."""
    B, T, C = x.shape
    # TODO(synk): the 4:2:1 interleaved recurrence assumes T % 4 == 0.
    assert T % 4 == 0, "timesteps must be a multiple of 4"
    T2, T3 = T // 2, T // 4
    k1 = packed['c11w'].shape[0]
    k2 = packed['c21w'].shape[0]
    k3 = packed['c31w'].shape[0]
    G = packed['whh_all'].shape[1]
    out_dim = packed['w1_all'].shape[2]

    # Pad B to a sublane-aligned multiple of 8; padded rows are sliced off at the end.
    B_pad = ((B + 7) // 8) * 8
    if B_pad != B:
        x = jnp.concatenate([x, jnp.zeros((B_pad - B, T, C), x.dtype)], axis=0)
    bb = _pick_bb(B_pad)
    grid = (B_pad // bb,)

    x_tm = jnp.transpose(x, (1, 0, 2))                             # (T, B_pad, C)
    y2_tm = x_tm[:T2 * 2].reshape(T2, 2, B_pad, C).mean(axis=1)    # AvgPool1d(2, 2)
    y3_tm = x_tm[:T3 * 4].reshape(T3, 4, B_pad, C).mean(axis=1)    # AvgPool1d(4, 4)
    x_flat = x.reshape(B_pad, T * C)                               # time-major flatten

    kernel = _make_fused_kernel(bb, (T, T2, T3), (k1, k2, k3), G)

    params = [packed[name] for name in _PARAM_ORDER]
    data_specs = [
        pl.BlockSpec((T, bb, C), lambda b: (0, b, 0)),
        pl.BlockSpec((T2, bb, C), lambda b: (0, b, 0)),
        pl.BlockSpec((T3, bb, C), lambda b: (0, b, 0)),
        pl.BlockSpec((bb, T * C), lambda b: (b, 0)),
    ]
    weight_specs = [
        pl.BlockSpec(w.shape, lambda b, nd=w.ndim: (0,) * nd) for w in params
    ]

    out = pl.pallas_call(
        kernel,
        grid=grid,
        out_shape=jax.ShapeDtypeStruct((B_pad, out_dim), F32),
        in_specs=data_specs + weight_specs,
        out_specs=pl.BlockSpec((bb, out_dim), lambda b: (b, 0)),
        scratch_shapes=[pltpu.VMEM((T, bb, 3 * G), F32),
                        pltpu.VMEM((T2, bb, 3 * G), F32),
                        pltpu.VMEM((T3, bb, 3 * G), F32)],
        compiler_params=pltpu.CompilerParams(
            dimension_semantics=("parallel",),
            # Safe on all generations; re-derive when bb is scaled (v7x: 64 MiB VMEM).
            vmem_limit_bytes=32 * 1024 * 1024),
    )(x_tm, y2_tm, y3_tm, x_flat, *params)
    return out[:B]


# ----------------------------------------------------------------------------------
# Pure-JAX f32 reference (same math as the PyTorch module) for a numerical check
# ----------------------------------------------------------------------------------
def _ref_conv_relu(x, w, b, k):
    B, T, Cin = x.shape
    xp = jnp.concatenate([jnp.zeros((B, k - 1, Cin), x.dtype), x], axis=1)
    out = jnp.broadcast_to(b[None, None, :], (B, T, w.shape[0])).astype(jnp.float32)
    for j in range(k):
        out = out + jnp.einsum('btc,oc->bto', xp[:, j:j + T, :], w[:, :, j])
    return jnp.maximum(out, 0.0)


def _ref_gru(seq, wih, whh, bih, bhh, H):
    B, T, _ = seq.shape
    Wr, Wz, Wn = wih[:H], wih[H:2 * H], wih[2 * H:]
    Ur, Uz, Un = whh[:H], whh[H:2 * H], whh[2 * H:]
    br_i, bz_i, bn_i = bih[:H], bih[H:2 * H], bih[2 * H:]
    br_h, bz_h, bn_h = bhh[:H], bhh[H:2 * H], bhh[2 * H:]
    h = jnp.zeros((B, H), jnp.float32)
    for t in range(T):
        x_t = seq[:, t, :]
        r = jax.nn.sigmoid(x_t @ Wr.T + br_i + h @ Ur.T + br_h)
        z = jax.nn.sigmoid(x_t @ Wz.T + bz_i + h @ Uz.T + bz_h)
        n = jnp.tanh(x_t @ Wn.T + bn_i + r * (h @ Un.T + bn_h))
        h = (1.0 - z) * n + z * h
    return h


def reference_forward(x, p, *, k1, k2, k3, H1, H2, H3):
    B, T, C = x.shape
    y1 = x
    y2 = x[:, : (T // 2) * 2, :].reshape(B, T // 2, 2, C).mean(axis=2)
    y3 = x[:, : (T // 4) * 4, :].reshape(B, T // 4, 4, C).mean(axis=2)

    def branch(y, cw1, cb1, cw2, cb2, wih, whh, bih, bhh, k, H):
        a = _ref_conv_relu(y, cw1, cb1, k)
        a = _ref_conv_relu(a, cw2, cb2, k)
        return _ref_gru(a, wih, whh, bih, bhh, H)

    h1 = branch(y1, p['conv11_w'], p['conv11_b'], p['conv12_w'], p['conv12_b'],
                p['gru1_wih'], p['gru1_whh'], p['gru1_bih'], p['gru1_bhh'], k1, H1)
    h2 = branch(y2, p['conv21_w'], p['conv21_b'], p['conv22_w'], p['conv22_b'],
                p['gru2_wih'], p['gru2_whh'], p['gru2_bih'], p['gru2_bhh'], k2, H2)
    h3 = branch(y3, p['conv31_w'], p['conv31_b'], p['conv32_w'], p['conv32_b'],
                p['gru3_wih'], p['gru3_whh'], p['gru3_bih'], p['gru3_bhh'], k3, H3)
    h = jnp.concatenate([h1, h2, h3], axis=1)
    x_flat = jnp.transpose(x, (0, 2, 1)).reshape(B, C * T)   # torch channel-major flatten
    out1 = h @ p['lin1_w'].T + p['lin1_b']
    out2 = x_flat @ p['lin2_w'].T + p['lin2_b']
    return out1 + out2


# ----------------------------------------------------------------------------------
# Deterministic parameter construction (PyTorch-equivalent shapes)
# ----------------------------------------------------------------------------------
def init_params(key, input_dim, timesteps, output_dim,
                k1, k2, k3, n1, n2, n3, u1, u2, u3):
    shapes = {
        'conv11_w': (n1, input_dim, k1), 'conv11_b': (n1,),
        'conv12_w': (n1, n1, k1),        'conv12_b': (n1,),
        'conv21_w': (n2, input_dim, k2), 'conv21_b': (n2,),
        'conv22_w': (n2, n2, k2),        'conv22_b': (n2,),
        'conv31_w': (n3, input_dim, k3), 'conv31_b': (n3,),
        'conv32_w': (n3, n3, k3),        'conv32_b': (n3,),
        'gru1_wih': (3 * u1, n1), 'gru1_whh': (3 * u1, u1),
        'gru1_bih': (3 * u1,),    'gru1_bhh': (3 * u1,),
        'gru2_wih': (3 * u2, n2), 'gru2_whh': (3 * u2, u2),
        'gru2_bih': (3 * u2,),    'gru2_bhh': (3 * u2,),
        'gru3_wih': (3 * u3, n3), 'gru3_whh': (3 * u3, u3),
        'gru3_bih': (3 * u3,),    'gru3_bhh': (3 * u3,),
        'lin1_w': (output_dim, u1 + u2 + u3), 'lin1_b': (output_dim,),
        'lin2_w': (output_dim, input_dim * timesteps), 'lin2_b': (output_dim,),
    }
    params = {}
    keys = jax.random.split(key, len(shapes))
    for (name, shape), k in zip(sorted(shapes.items()), keys):
        params[name] = 0.1 * jax.random.normal(k, shape, dtype=jnp.float32)
    return params


# ----------------------------------------------------------------------------------
if __name__ == "__main__":
    # small shapes: batch=2, timesteps=16, input_dim=4, output_dim=8, hidden/channels=32
    B, T, C_IN, OUT = 2, 16, 4, 8
    K1, K2, K3 = 7, 5, 3
    NCH = 32
    H = 32

    key = jax.random.PRNGKey(0)
    k_x, k_p = jax.random.split(key)
    x = jax.random.normal(k_x, (B, T, C_IN), dtype=jnp.float32)
    params = init_params(k_p, C_IN, T, OUT, K1, K2, K3, NCH, NCH, NCH, H, H, H)

    # one-time packing (outside the forward path)
    packed = pack_params(params, input_dim=C_IN, timesteps=T)

    fwd = jax.jit(conv_rnn_forward)
    out = jax.block_until_ready(fwd(x, packed))

    ref = jax.block_until_ready(
        reference_forward(x, params, k1=K1, k2=K2, k3=K3, H1=H, H2=H, H3=H))
    assert out.shape == (B, OUT)
    # tolerance loosened vs. the pure-f32 path: matmul operands are bf16 in the kernel
    assert jnp.allclose(out, ref, rtol=5e-2, atol=5e-2), \
        float(jnp.max(jnp.abs(out - ref)))

    print("KERNEL_OK")
</pallas_src>

<mosaic_0001>
module attributes {stable_mosaic.version = 11 : i64} {
  func.func @kernel(%arg0: i32, %arg1: memref<16x8x4xf32, #tpu.memory_space<vmem>>, %arg2: memref<8x8x4xf32, #tpu.memory_space<vmem>>, %arg3: memref<4x8x4xf32, #tpu.memory_space<vmem>>, %arg4: memref<8x64xf32, #tpu.memory_space<vmem>>, %arg5: memref<7x4x32xbf16, #tpu.memory_space<vmem>>, %arg6: memref<1x32xf32, #tpu.memory_space<vmem>>, %arg7: memref<7x32x32xbf16, #tpu.memory_space<vmem>>, %arg8: memref<1x32xf32, #tpu.memory_space<vmem>>, %arg9: memref<32x384xbf16, #tpu.memory_space<vmem>>, %arg10: memref<5x4x32xbf16, #tpu.memory_space<vmem>>, %arg11: memref<1x32xf32, #tpu.memory_space<vmem>>, %arg12: memref<5x32x32xbf16, #tpu.memory_space<vmem>>, %arg13: memref<1x32xf32, #tpu.memory_space<vmem>>, %arg14: memref<32x384xbf16, #tpu.memory_space<vmem>>, %arg15: memref<3x4x32xbf16, #tpu.memory_space<vmem>>, %arg16: memref<1x32xf32, #tpu.memory_space<vmem>>, %arg17: memref<3x32x32xbf16, #tpu.memory_space<vmem>>, %arg18: memref<1x32xf32, #tpu.memory_space<vmem>>, %arg19: memref<32x384xbf16, #tpu.memory_space<vmem>>, %arg20: memref<3x1x384xf32, #tpu.memory_space<vmem>>, %arg21: memref<3x128x384xbf16, #tpu.memory_space<vmem>>, %arg22: memref<3x1x384xf32, #tpu.memory_space<vmem>>, %arg23: memref<3x128x8xbf16, #tpu.memory_space<vmem>>, %arg24: memref<64x8xbf16, #tpu.memory_space<vmem>>, %arg25: memref<1x8xf32, #tpu.memory_space<vmem>>, %arg26: memref<8x8xf32, #tpu.memory_space<vmem>>, %arg27: memref<16x8x384xf32, #tpu.memory_space<vmem>>, %arg28: memref<8x8x384xf32, #tpu.memory_space<vmem>>, %arg29: memref<4x8x384xf32, #tpu.memory_space<vmem>>) attributes {dimension_semantics = [#tpu.dimension_semantics<parallel>], iteration_bounds = array<i64: 1>, scalar_prefetch = 0 : i64, scratch_operands = 3 : i64, tpu.core_type = #tpu.core_type<tc>, window_params = [{transform_indices = @transform_0, window_bounds = array<i64: 16, 8, 4>}, {transform_indices = @transform_1, window_bounds = array<i64: 8, 8, 4>}, {transform_indices = @transform_2, window_bounds = array<i64: 4, 8, 4>}, {transform_indices = @transform_3, window_bounds = array<i64: 8, 64>}, {pipeline_mode = #tpu.pipeline_mode<synchronous>, transform_indices = @transform_4, window_bounds = array<i64: 7, 4, 32>}, {pipeline_mode = #tpu.pipeline_mode<synchronous>, transform_indices = @transform_5, window_bounds = array<i64: 1, 32>}, {pipeline_mode = #tpu.pipeline_mode<synchronous>, transform_indices = @transform_6, window_bounds = array<i64: 7, 32, 32>}, {pipeline_mode = #tpu.pipeline_mode<synchronous>, transform_indices = @transform_7, window_bounds = array<i64: 1, 32>}, {pipeline_mode = #tpu.pipeline_mode<synchronous>, transform_indices = @transform_8, window_bounds = array<i64: 32, 384>}, {pipeline_mode = #tpu.pipeline_mode<synchronous>, transform_indices = @transform_9, window_bounds = array<i64: 5, 4, 32>}, {pipeline_mode = #tpu.pipeline_mode<synchronous>, transform_indices = @transform_10, window_bounds = array<i64: 1, 32>}, {pipeline_mode = #tpu.pipeline_mode<synchronous>, transform_indices = @transform_11, window_bounds = array<i64: 5, 32, 32>}, {pipeline_mode = #tpu.pipeline_mode<synchronous>, transform_indices = @transform_12, window_bounds = array<i64: 1, 32>}, {pipeline_mode = #tpu.pipeline_mode<synchronous>, transform_indices = @transform_13, window_bounds = array<i64: 32, 384>}, {pipeline_mode = #tpu.pipeline_mode<synchronous>, transform_indices = @transform_14, window_bounds = array<i64: 3, 4, 32>}, {pipeline_mode = #tpu.pipeline_mode<synchronous>, transform_indices = @transform_15, window_bounds = array<i64: 1, 32>}, {pipeline_mode = #tpu.pipeline_mode<synchronous>, transform_indices = @transform_16, window_bounds = array<i64: 3, 32, 32>}, {pipeline_mode = #tpu.pipeline_mode<synchronous>, transform_indices = @transform_17, window_bounds = array<i64: 1, 32>}, {pipeline_mode = #tpu.pipeline_mode<synchronous>, transform_indices = @transform_18, window_bounds = array<i64: 32, 384>}, {pipeline_mode = #tpu.pipeline_mode<synchronous>, transform_indices = @transform_19, window_bounds = array<i64: 3, 1, 384>}, {pipeline_mode = #tpu.pipeline_mode<synchronous>, transform_indices = @transform_20, window_bounds = array<i64: 3, 128, 384>}, {pipeline_mode = #tpu.pipeline_mode<synchronous>, transform_indices = @transform_21, window_bounds = array<i64: 3, 1, 384>}, {pipeline_mode = #tpu.pipeline_mode<synchronous>, transform_indices = @transform_22, window_bounds = array<i64: 3, 128, 8>}, {pipeline_mode = #tpu.pipeline_mode<synchronous>, transform_indices = @transform_23, window_bounds = array<i64: 64, 8>}, {pipeline_mode = #tpu.pipeline_mode<synchronous>, transform_indices = @transform_24, window_bounds = array<i64: 1, 8>}, {transform_indices = @transform_25, window_bounds = array<i64: 8, 8>}]} {
    %c0 = arith.constant 0 : index
    %c0_0 = arith.constant 0 : index
    %c0_1 = arith.constant 0 : index
    %0 = vector.load %arg1[%c0, %c0_0, %c0_1] : memref<16x8x4xf32, #tpu.memory_space<vmem>>, vector<16x8x4xf32>
    %cst = arith.constant 0.000000e+00 : f32
    %1 = vector.broadcast %cst : f32 to vector<6x8x4xf32>
    %2 = tpu.concatenate %1, %0 in 0 : vector<6x8x4xf32>, vector<16x8x4xf32> -> vector<22x8x4xf32>
    %cst_2 = arith.constant 0.000000e+00 : f32
    %3 = vector.broadcast %cst_2 : f32 to vector<128x32xf32>
    %4 = vector.extract_strided_slice %2 {offsets = [0, 0, 0], sizes = [16, 8, 4], strides = [1, 1, 1]} : vector<22x8x4xf32> to vector<16x8x4xf32>
    %5 = vector.shape_cast %4 : vector<16x8x4xf32> to vector<128x4xf32>
    %6 = arith.truncf %5 : vector<128x4xf32> to vector<128x4xbf16>
    %c0_3 = arith.constant 0 : index
    %c0_4 = arith.constant 0 : index
    %c0_5 = arith.constant 0 : index
    %7 = vector.load %arg5[%c0_3, %c0_4, %c0_5] : memref<7x4x32xbf16, #tpu.memory_space<vmem>>, vector<1x4x32xbf16>
    %8 = vector.shape_cast %7 : vector<1x4x32xbf16> to vector<4x32xbf16>
    %cst_6 = arith.constant dense<0.000000e+00> : vector<128x32xf32>
    %9 = tpu.matmul %6, %8, %cst_6 {dimension_numbers = #tpu.dot_dimension_numbers<[1], [0], [0], [1], [0, 0, 1, 1], [], []>} : vector<128x4xbf16>, vector<4x32xbf16>, vector<128x32xf32> -> vector<128x32xf32>
    %10 = arith.addf %3, %9 : vector<128x32xf32>
    %11 = vector.extract_strided_slice %2 {offsets = [1, 0, 0], sizes = [16, 8, 4], strides = [1, 1, 1]} : vector<22x8x4xf32> to vector<16x8x4xf32>
    %12 = vector.shape_cast %11 : vector<16x8x4xf32> to vector<128x4xf32>
    %13 = arith.truncf %12 : vector<128x4xf32> to vector<128x4xbf16>
    %c1 = arith.constant 1 : index
    %c0_7 = arith.constant 0 : index
    %c0_8 = arith.constant 0 : index
    %14 = vector.load %arg5[%c1, %c0_7, %c0_8] : memref<7x4x32xbf16, #tpu.memory_space<vmem>>, vector<1x4x32xbf16>
    %15 = vector.shape_cast %14 : vector<1x4x32xbf16> to vector<4x32xbf16>
    %cst_9 = arith.constant dense<0.000000e+00> : vector<128x32xf32>
    %16 = tpu.matmul %13, %15, %cst_9 {dimension_numbers = #tpu.dot_dimension_numbers<[1], [0], [0], [1], [0, 0, 1, 1], [], []>} : vector<128x4xbf16>, vector<4x32xbf16>, vector<128x32xf32> -> vector<128x32xf32>
    %17 = arith.addf %10, %16 : vector<128x32xf32>
    %18 = vector.extract_strided_slice %2 {offsets = [2, 0, 0], sizes = [16, 8, 4], strides = [1, 1, 1]} : vector<22x8x4xf32> to vector<16x8x4xf32>
    %19 = vector.shape_cast %18 : vector<16x8x4xf32> to vector<128x4xf32>
    %20 = arith.truncf %19 : vector<128x4xf32> to vector<128x4xbf16>
    %c2 = arith.constant 2 : index
    %c0_10 = arith.constant 0 : index
    %c0_11 = arith.constant 0 : index
    %21 = vector.load %arg5[%c2, %c0_10, %c0_11] : memref<7x4x32xbf16, #tpu.memory_space<vmem>>, vector<1x4x32xbf16>
    %22 = vector.shape_cast %21 : vector<1x4x32xbf16> to vector<4x32xbf16>
    %cst_12 = arith.constant dense<0.000000e+00> : vector<128x32xf32>
    %23 = tpu.matmul %20, %22, %cst_12 {dimension_numbers = #tpu.dot_dimension_numbers<[1], [0], [0], [1], [0, 0, 1, 1], [], []>} : vector<128x4xbf16>, vector<4x32xbf16>, vector<128x32xf32> -> vector<128x32xf32>
    %24 = arith.addf %17, %23 : vector<128x32xf32>
    %25 = vector.extract_strided_slice %2 {offsets = [3, 0, 0], sizes = [16, 8, 4], strides = [1, 1, 1]} : vector<22x8x4xf32> to vector<16x8x4xf32>
    %26 = vector.shape_cast %25 : vector<16x8x4xf32> to vector<128x4xf32>
    %27 = arith.truncf %26 : vector<128x4xf32> to vector<128x4xbf16>
    %c3 = arith.constant 3 : index
    %c0_13 = arith.constant 0 : index
    %c0_14 = arith.constant 0 : index
    %28 = vector.load %arg5[%c3, %c0_13, %c0_14] : memref<7x4x32xbf16, #tpu.memory_space<vmem>>, vector<1x4x32xbf16>
    %29 = vector.shape_cast %28 : vector<1x4x32xbf16> to vector<4x32xbf16>
    %cst_15 = arith.constant dense<0.000000e+00> : vector<128x32xf32>
    %30 = tpu.matmul %27, %29, %cst_15 {dimension_numbers = #tpu.dot_dimension_numbers<[1], [0], [0], [1], [0, 0, 1, 1], [], []>} : vector<128x4xbf16>, vector<4x32xbf16>, vector<128x32xf32> -> vector<128x32xf32>
    %31 = arith.addf %24, %30 : vector<128x32xf32>
    %32 = vector.extract_strided_slice %2 {offsets = [4, 0, 0], sizes = [16, 8, 4], strides = [1, 1, 1]} : vector<22x8x4xf32> to vector<16x8x4xf32>
    %33 = vector.shape_cast %32 : vector<16x8x4xf32> to vector<128x4xf32>
    %34 = arith.truncf %33 : vector<128x4xf32> to vector<128x4xbf16>
    %c4 = arith.constant 4 : index
    %c0_16 = arith.constant 0 : index
    %c0_17 = arith.constant 0 : index
    %35 = vector.load %arg5[%c4, %c0_16, %c0_17] : memref<7x4x32xbf16, #tpu.memory_space<vmem>>, vector<1x4x32xbf16>
    %36 = vector.shape_cast %35 : vector<1x4x32xbf16> to vector<4x32xbf16>
    %cst_18 = arith.constant dense<0.000000e+00> : vector<128x32xf32>
    %37 = tpu.matmul %34, %36, %cst_18 {dimension_numbers = #tpu.dot_dimension_numbers<[1], [0], [0], [1], [0, 0, 1, 1], [], []>} : vector<128x4xbf16>, vector<4x32xbf16>, vector<128x32xf32> -> vector<128x32xf32>
    %38 = arith.addf %31, %37 : vector<128x32xf32>
    %39 = vector.extract_strided_slice %2 {offsets = [5, 0, 0], sizes = [16, 8, 4], strides = [1, 1, 1]} : vector<22x8x4xf32> to vector<16x8x4xf32>
    %40 = vector.shape_cast %39 : vector<16x8x4xf32> to vector<128x4xf32>
    %41 = arith.truncf %40 : vector<128x4xf32> to vector<128x4xbf16>
    %c5 = arith.constant 5 : index
    %c0_19 = arith.constant 0 : index
    %c0_20 = arith.constant 0 : index
    %42 = vector.load %arg5[%c5, %c0_19, %c0_20] : memref<7x4x32xbf16, #tpu.memory_space<vmem>>, vector<1x4x32xbf16>
    %43 = vector.shape_cast %42 : vector<1x4x32xbf16> to vector<4x32xbf16>
    %cst_21 = arith.constant dense<0.000000e+00> : vector<128x32xf32>
    %44 = tpu.matmul %41, %43, %cst_21 {dimension_numbers = #tpu.dot_dimension_numbers<[1], [0], [0], [1], [0, 0, 1, 1], [], []>} : vector<128x4xbf16>, vector<4x32xbf16>, vector<128x32xf32> -> vector<128x32xf32>
    %45 = arith.addf %38, %44 : vector<128x32xf32>
    %46 = vector.extract_strided_slice %2 {offsets = [6, 0, 0], sizes = [16, 8, 4], strides = [1, 1, 1]} : vector<22x8x4xf32> to vector<16x8x4xf32>
    %47 = vector.shape_cast %46 : vector<16x8x4xf32> to vector<128x4xf32>
    %48 = arith.truncf %47 : vector<128x4xf32> to vector<128x4xbf16>
    %c6 = arith.constant 6 : index
    %c0_22 = arith.constant 0 : index
    %c0_23 = arith.constant 0 : index
    %49 = vector.load %arg5[%c6, %c0_22, %c0_23] : memref<7x4x32xbf16, #tpu.memory_space<vmem>>, vector<1x4x32xbf16>
    %50 = vector.shape_cast %49 : vector<1x4x32xbf16> to vector<4x32xbf16>
    %cst_24 = arith.constant dense<0.000000e+00> : vector<128x32xf32>
    %51 = tpu.matmul %48, %50, %cst_24 {dimension_numbers = #tpu.dot_dimension_numbers<[1], [0], [0], [1], [0, 0, 1, 1], [], []>} : vector<128x4xbf16>, vector<4x32xbf16>, vector<128x32xf32> -> vector<128x32xf32>
    %52 = arith.addf %45, %51 : vector<128x32xf32>
    %c0_25 = arith.constant 0 : index
    %c0_26 = arith.constant 0 : index
    %53 = vector.load %arg6[%c0_25, %c0_26] : memref<1x32xf32, #tpu.memory_space<vmem>>, vector<1x32xf32>
    %54 = vector.broadcast %53 : vector<1x32xf32> to vector<128x32xf32>
    %55 = arith.addf %52, %54 : vector<128x32xf32>
    %cst_27 = arith.constant 0.000000e+00 : f32
    %56 = vector.broadcast %cst_27 : f32 to vector<128x32xf32>
    %57 = arith.maximumf %55, %56 : vector<128x32xf32>
    %58 = vector.shape_cast %57 : vector<128x32xf32> to vector<16x8x32xf32>
    %cst_28 = arith.constant 0.000000e+00 : f32
    %59 = vector.broadcast %cst_28 : f32 to vector<6x8x32xf32>
    %60 = tpu.concatenate %59, %58 in 0 : vector<6x8x32xf32>, vector<16x8x32xf32> -> vector<22x8x32xf32>
    %cst_29 = arith.constant 0.000000e+00 : f32
    %61 = vector.broadcast %cst_29 : f32 to vector<128x32xf32>
    %62 = vector.extract_strided_slice %60 {offsets = [0, 0, 0], sizes = [16, 8, 32], strides = [1, 1, 1]} : vector<22x8x32xf32> to vector<16x8x32xf32>
    %63 = vector.shape_cast %62 : vector<16x8x32xf32> to vector<128x32xf32>
    %64 = arith.truncf %63 : vector<128x32xf32> to vector<128x32xbf16>
    %c0_30 = arith.constant 0 : index
    %c0_31 = arith.constant 0 : index
    %c0_32 = arith.constant 0 : index
    %65 = vector.load %arg7[%c0_30, %c0_31, %c0_32] : memref<7x32x32xbf16, #tpu.memory_space<vmem>>, vector<1x32x32xbf16>
    %66 = vector.shape_cast %65 : vector<1x32x32xbf16> to vector<32x32xbf16>
    %cst_33 = arith.constant dense<0.000000e+00> : vector<128x32xf32>
    %67 = tpu.matmul %64, %66, %cst_33 {dimension_numbers = #tpu.dot_dimension_numbers<[1], [0], [0], [1], [0, 0, 1, 1], [], []>} : vector<128x32xbf16>, vector<32x32xbf16>, vector<128x32xf32> -> vector<128x32xf32>
    %68 = arith.addf %61, %67 : vector<128x32xf32>
    %69 = vector.extract_strided_slice %60 {offsets = [1, 0, 0], sizes = [16, 8, 32], strides = [1, 1, 1]} : vector<22x8x32xf32> to vector<16x8x32xf32>
    %70 = vector.shape_cast %69 : vector<16x8x32xf32> to vector<128x32xf32>
    %71 = arith.truncf %70 : vector<128x32xf32> to vector<128x32xbf16>
    %c1_34 = arith.constant 1 : index
    %c0_35 = arith.constant 0 : index
    %c0_36 = arith.constant 0 : index
    %72 = vector.load %arg7[%c1_34, %c0_35, %c0_36] : memref<7x32x32xbf16, #tpu.memory_space<vmem>>, vector<1x32x32xbf16>
    %73 = vector.shape_cast %72 : vector<1x32x32xbf16> to vector<32x32xbf16>
    %cst_37 = arith.constant dense<0.000000e+00> : vector<128x32xf32>
    %74 = tpu.matmul %71, %73, %cst_37 {dimension_numbers = #tpu.dot_dimension_numbers<[1], [0], [0], [1], [0, 0, 1, 1], [], []>} : vector<128x32xbf16>, vector<32x32xbf16>, vector<128x32xf32> -> vector<128x32xf32>
    %75 = arith.addf %68, %74 : vector<128x32xf32>
    %76 = vector.extract_strided_slice %60 {offsets = [2, 0, 0], sizes = [16, 8, 32], strides = [1, 1, 1]} : vector<22x8x32xf32> to vector<16x8x32xf32>
    %77 = vector.shape_cast %76 : vector<16x8x32xf32> to vector<128x32xf32>
    %78 = arith.truncf %77 : vector<128x32xf32> to vector<128x32xbf16>
    %c2_38 = arith.constant 2 : index
    %c0_39 = arith.constant 0 : index
    %c0_40 = arith.constant 0 : index
    %79 = vector.load %arg7[%c2_38, %c0_39, %c0_40] : memref<7x32x32xbf16, #tpu.memory_space<vmem>>, vector<1x32x32xbf16>
    %80 = vector.shape_cast %79 : vector<1x32x32xbf16> to vector<32x32xbf16>
    %cst_41 = arith.constant dense<0.000000e+00> : vector<128x32xf32>
    %81 = tpu.matmul %78, %80, %cst_41 {dimension_numbers = #tpu.dot_dimension_numbers<[1], [0], [0], [1], [0, 0, 1, 1], [], []>} : vector<128x32xbf16>, vector<32x32xbf16>, vector<128x32xf32> -> vector<128x32xf32>
    %82 = arith.addf %75, %81 : vector<128x32xf32>
    %83 = vector.extract_strided_slice %60 {offsets = [3, 0, 0], sizes = [16, 8, 32], strides = [1, 1, 1]} : vector<22x8x32xf32> to vector<16x8x32xf32>
    %84 = vector.shape_cast %83 : vector<16x8x32xf32> to vector<128x32xf32>
    %85 = arith.truncf %84 : vector<128x32xf32> to vector<128x32xbf16>
    %c3_42 = arith.constant 3 : index
    %c0_43 = arith.constant 0 : index
    %c0_44 = arith.constant 0 : index
    %86 = vector.load %arg7[%c3_42, %c0_43, %c0_44] : memref<7x32x32xbf16, #tpu.memory_space<vmem>>, vector<1x32x32xbf16>
    %87 = vector.shape_cast %86 : vector<1x32x32xbf16> to vector<32x32xbf16>
    %cst_45 = arith.constant dense<0.000000e+00> : vector<128x32xf32>
    %88 = tpu.matmul %85, %87, %cst_45 {dimension_numbers = #tpu.dot_dimension_numbers<[1], [0], [0], [1], [0, 0, 1, 1], [], []>} : vector<128x32xbf16>, vector<32x32xbf16>, vector<128x32xf32> -> vector<128x32xf32>
    %89 = arith.addf %82, %88 : vector<128x32xf32>
    %90 = vector.extract_strided_slice %60 {offsets = [4, 0, 0], sizes = [16, 8, 32], strides = [1, 1, 1]} : vector<22x8x32xf32> to vector<16x8x32xf32>
    %91 = vector.shape_cast %90 : vector<16x8x32xf32> to vector<128x32xf32>
    %92 = arith.truncf %91 : vector<128x32xf32> to vector<128x32xbf16>
    %c4_46 = arith.constant 4 : index
    %c0_47 = arith.constant 0 : index
    %c0_48 = arith.constant 0 : index
    %93 = vector.load %arg7[%c4_46, %c0_47, %c0_48] : memref<7x32x32xbf16, #tpu.memory_space<vmem>>, vector<1x32x32xbf16>
    %94 = vector.shape_cast %93 : vector<1x32x32xbf16> to vector<32x32xbf16>
    %cst_49 = arith.constant dense<0.000000e+00> : vector<128x32xf32>
    %95 = tpu.matmul %92, %94, %cst_49 {dimension_numbers = #tpu.dot_dimension_numbers<[1], [0], [0], [1], [0, 0, 1, 1], [], []>} : vector<128x32xbf16>, vector<32x32xbf16>, vector<128x32xf32> -> vector<128x32xf32>
    %96 = arith.addf %89, %95 : vector<128x32xf32>
    %97 = vector.extract_strided_slice %60 {offsets = [5, 0, 0], sizes = [16, 8, 32], strides = [1, 1, 1]} : vector<22x8x32xf32> to vector<16x8x32xf32>
    %98 = vector.shape_cast %97 : vector<16x8x32xf32> to vector<128x32xf32>
    %99 = arith.truncf %98 : vector<128x32xf32> to vector<128x32xbf16>
    %c5_50 = arith.constant 5 : index
    %c0_51 = arith.constant 0 : index
    %c0_52 = arith.constant 0 : index
    %100 = vector.load %arg7[%c5_50, %c0_51, %c0_52] : memref<7x32x32xbf16, #tpu.memory_space<vmem>>, vector<1x32x32xbf16>
    %101 = vector.shape_cast %100 : vector<1x32x32xbf16> to vector<32x32xbf16>
    %cst_53 = arith.constant dense<0.000000e+00> : vector<128x32xf32>
    %102 = tpu.matmul %99, %101, %cst_53 {dimension_numbers = #tpu.dot_dimension_numbers<[1], [0], [0], [1], [0, 0, 1, 1], [], []>} : vector<128x32xbf16>, vector<32x32xbf16>, vector<128x32xf32> -> vector<128x32xf32>
    %103 = arith.addf %96, %102 : vector<128x32xf32>
    %104 = vector.extract_strided_slice %60 {offsets = [6, 0, 0], sizes = [16, 8, 32], strides = [1, 1, 1]} : vector<22x8x32xf32> to vector<16x8x32xf32>
    %105 = vector.shape_cast %104 : vector<16x8x32xf32> to vector<128x32xf32>
    %106 = arith.truncf %105 : vector<128x32xf32> to vector<128x32xbf16>
    %c6_54 = arith.constant 6 : index
    %c0_55 = arith.constant 0 : index
    %c0_56 = arith.constant 0 : index
    %107 = vector.load %arg7[%c6_54, %c0_55, %c0_56] : memref<7x32x32xbf16, #tpu.memory_space<vmem>>, vector<1x32x32xbf16>
    %108 = vector.shape_cast %107 : vector<1x32x32xbf16> to vector<32x32xbf16>
    %cst_57 = arith.constant dense<0.000000e+00> : vector<128x32xf32>
    %109 = tpu.matmul %106, %108, %cst_57 {dimension_numbers = #tpu.dot_dimension_numbers<[1], [0], [0], [1], [0, 0, 1, 1], [], []>} : vector<128x32xbf16>, vector<32x32xbf16>, vector<128x32xf32> -> vector<128x32xf32>
    %110 = arith.addf %103, %109 : vector<128x32xf32>
    %c0_58 = arith.constant 0 : index
    %c0_59 = arith.constant 0 : index
    %111 = vector.load %arg8[%c0_58, %c0_59] : memref<1x32xf32, #tpu.memory_space<vmem>>, vector<1x32xf32>
    %112 = vector.broadcast %111 : vector<1x32xf32> to vector<128x32xf32>
    %113 = arith.addf %110, %112 : vector<128x32xf32>
    %cst_60 = arith.constant 0.000000e+00 : f32
    %114 = vector.broadcast %cst_60 : f32 to vector<128x32xf32>
    %115 = arith.maximumf %113, %114 : vector<128x32xf32>
    %116 = vector.shape_cast %115 : vector<128x32xf32> to vector<16x8x32xf32>
    %c0_61 = arith.constant 0 : index
    %c0_62 = arith.constant 0 : index
    %c0_63 = arith.constant 0 : index
    %117 = vector.load %arg20[%c0_61, %c0_62, %c0_63] : memref<3x1x384xf32, #tpu.memory_space<vmem>>, vector<1x1x384xf32>
    %118 = vector.shape_cast %117 : vector<1x1x384xf32> to vector<1x384xf32>
    %119 = vector.shape_cast %116 : vector<16x8x32xf32> to vector<128x32xf32>
    %120 = arith.truncf %119 : vector<128x32xf32> to vector<128x32xbf16>
    %c0_64 = arith.constant 0 : index
    %c0_65 = arith.constant 0 : index
    %121 = vector.load %arg9[%c0_64, %c0_65] : memref<32x384xbf16, #tpu.memory_space<vmem>>, vector<32x384xbf16>
    %cst_66 = arith.constant dense<0.000000e+00> : vector<128x384xf32>
    %122 = tpu.matmul %120, %121, %cst_66 {dimension_numbers = #tpu.dot_dimension_numbers<[1], [0], [0], [1], [0, 0, 1, 1], [], []>} : vector<128x32xbf16>, vector<32x384xbf16>, vector<128x384xf32> -> vector<128x384xf32>
    %123 = vector.broadcast %118 : vector<1x384xf32> to vector<128x384xf32>
    %124 = arith.addf %122, %123 : vector<128x384xf32>
    %125 = vector.shape_cast %124 : vector<128x384xf32> to vector<16x8x384xf32>
    %c0_67 = arith.constant 0 : index
    %c0_68 = arith.constant 0 : index
    %c0_69 = arith.constant 0 : index
    %126 = vector.load %arg27[%c0_67, %c0_68, %c0_69] : memref<16x8x384xf32, #tpu.memory_space<vmem>>, vector<16x8x384xf32>
    tpu.vector_store %arg27[%c0_67, %c0_68, %c0_69], %125 {strides = array<i32>} : memref<16x8x384xf32, #tpu.memory_space<vmem>>, vector<16x8x384xf32>,
    %c0_70 = arith.constant 0 : index
    %c0_71 = arith.constant 0 : index
    %c0_72 = arith.constant 0 : index
    %127 = vector.load %arg2[%c0_70, %c0_71, %c0_72] : memref<8x8x4xf32, #tpu.memory_space<vmem>>, vector<8x8x4xf32>
    %cst_73 = arith.constant 0.000000e+00 : f32
    %128 = vector.broadcast %cst_73 : f32 to vector<4x8x4xf32>
    %129 = tpu.concatenate %128, %127 in 0 : vector<4x8x4xf32>, vector<8x8x4xf32> -> vector<12x8x4xf32>
    %cst_74 = arith.constant 0.000000e+00 : f32
    %130 = vector.broadcast %cst_74 : f32 to vector<64x32xf32>
    %131 = vector.extract_strided_slice %129 {offsets = [0, 0, 0], sizes = [8, 8, 4], strides = [1, 1, 1]} : vector<12x8x4xf32> to vector<8x8x4xf32>
    %132 = vector.shape_cast %131 : vector<8x8x4xf32> to vector<64x4xf32>
    %133 = arith.truncf %132 : vector<64x4xf32> to vector<64x4xbf16>
    %c0_75 = arith.constant 0 : index
    %c0_76 = arith.constant 0 : index
    %c0_77 = arith.constant 0 : index
    %134 = vector.load %arg10[%c0_75, %c0_76, %c0_77] : memref<5x4x32xbf16, #tpu.memory_space<vmem>>, vector<1x4x32xbf16>
    %135 = vector.shape_cast %134 : vector<1x4x32xbf16> to vector<4x32xbf16>
    %cst_78 = arith.constant dense<0.000000e+00> : vector<64x32xf32>
    %136 = tpu.matmul %133, %135, %cst_78 {dimension_numbers = #tpu.dot_dimension_numbers<[1], [0], [0], [1], [0, 0, 1, 1], [], []>} : vector<64x4xbf16>, vector<4x32xbf16>, vector<64x32xf32> -> vector<64x32xf32>
    %137 = arith.addf %130, %136 : vector<64x32xf32>
    %138 = vector.extract_strided_slice %129 {offsets = [1, 0, 0], sizes = [8, 8, 4], strides = [1, 1, 1]} : vector<12x8x4xf32> to vector<8x8x4xf32>
    %139 = vector.shape_cast %138 : vector<8x8x4xf32> to vector<64x4xf32>
    %140 = arith.truncf %139 : vector<64x4xf32> to vector<64x4xbf16>
    %c1_79 = arith.constant 1 : index
    %c0_80 = arith.constant 0 : index
    %c0_81 = arith.constant 0 : index
    %141 = vector.load %arg10[%c1_79, %c0_80, %c0_81] : memref<5x4x32xbf16, #tpu.memory_space<vmem>>, vector<1x4x32xbf16>
    %142 = vector.shape_cast %141 : vector<1x4x32xbf16> to vector<4x32xbf16>
    %cst_82 = arith.constant dense<0.000000e+00> : vector<64x32xf32>
    %143 = tpu.matmul %140, %142, %cst_82 {dimension_numbers = #tpu.dot_dimension_numbers<[1], [0], [0], [1], [0, 0, 1, 1], [], []>} : vector<64x4xbf16>, vector<4x32xbf16>, vector<64x32xf32> -> vector<64x32xf32>
    %144 = arith.addf %137, %143 : vector<64x32xf32>
    %145 = vector.extract_strided_slice %129 {offsets = [2, 0, 0], sizes = [8, 8, 4], strides = [1, 1, 1]} : vector<12x8x4xf32> to vector<8x8x4xf32>
    %146 = vector.shape_cast %145 : vector<8x8x4xf32> to vector<64x4xf32>
    %147 = arith.truncf %146 : vector<64x4xf32> to vector<64x4xbf16>
    %c2_83 = arith.constant 2 : index
    %c0_84 = arith.constant 0 : index
    %c0_85 = arith.constant 0 : index
    %148 = vector.load %arg10[%c2_83, %c0_84, %c0_85] : memref<5x4x32xbf16, #tpu.memory_space<vmem>>, vector<1x4x32xbf16>
    %149 = vector.shape_cast %148 : vector<1x4x32xbf16> to vector<4x32xbf16>
    %cst_86 = arith.constant dense<0.000000e+00> : vector<64x32xf32>
    %150 = tpu.matmul %147, %149, %cst_86 {dimension_numbers = #tpu.dot_dimension_numbers<[1], [0], [0], [1], [0, 0, 1, 1], [], []>} : vector<64x4xbf16>, vector<4x32xbf16>, vector<64x32xf32> -> vector<64x32xf32>
    %151 = arith.addf %144, %150 : vector<64x32xf32>
    %152 = vector.extract_strided_slice %129 {offsets = [3, 0, 0], sizes = [8, 8, 4], strides = [1, 1, 1]} : vector<12x8x4xf32> to vector<8x8x4xf32>
    %153 = vector.shape_cast %152 : vector<8x8x4xf32> to vector<64x4xf32>
    %154 = arith.truncf %153 : vector<64x4xf32> to vector<64x4xbf16>
    %c3_87 = arith.constant 3 : index
    %c0_88 = arith.constant 0 : index
    %c0_89 = arith.constant 0 : index
    %155 = vector.load %arg10[%c3_87, %c0_88, %c0_89] : memref<5x4x32xbf16, #tpu.memory_space<vmem>>, vector<1x4x32xbf16>
    %156 = vector.shape_cast %155 : vector<1x4x32xbf16> to vector<4x32xbf16>
    %cst_90 = arith.constant dense<0.000000e+00> : vector<64x32xf32>
    %157 = tpu.matmul %154, %156, %cst_90 {dimension_numbers = #tpu.dot_dimension_numbers<[1], [0], [0], [1], [0, 0, 1, 1], [], []>} : vector<64x4xbf16>, vector<4x32xbf16>, vector<64x32xf32> -> vector<64x32xf32>
    %158 = arith.addf %151, %157 : vector<64x32xf32>
    %159 = vector.extract_strided_slice %129 {offsets = [4, 0, 0], sizes = [8, 8, 4], strides = [1, 1, 1]} : vector<12x8x4xf32> to vector<8x8x4xf32>
    %160 = vector.shape_cast %159 : vector<8x8x4xf32> to vector<64x4xf32>
    %161 = arith.truncf %160 : vector<64x4xf32> to vector<64x4xbf16>
    %c4_91 = arith.constant 4 : index
    %c0_92 = arith.constant 0 : index
    %c0_93 = arith.constant 0 : index
    %162 = vector.load %arg10[%c4_91, %c0_92, %c0_93] : memref<5x4x32xbf16, #tpu.memory_space<vmem>>, vector<1x4x32xbf16>
    %163 = vector.shape_cast %162 : vector<1x4x32xbf16> to vector<4x32xbf16>
    %cst_94 = arith.constant dense<0.000000e+00> : vector<64x32xf32>
    %164 = tpu.matmul %161, %163, %cst_94 {dimension_numbers = #tpu.dot_dimension_numbers<[1], [0], [0], [1], [0, 0, 1, 1], [], []>} : vector<64x4xbf16>, vector<4x32xbf16>, vector<64x32xf32> -> vector<64x32xf32>
    %165 = arith.addf %158, %164 : vector<64x32xf32>
    %c0_95 = arith.constant 0 : index
    %c0_96 = arith.constant 0 : index
    %166 = vector.load %arg11[%c0_95, %c0_96] : memref<1x32xf32, #tpu.memory_space<vmem>>, vector<1x32xf32>
    %167 = vector.broadcast %166 : vector<1x32xf32> to vector<64x32xf32>
    %168 = arith.addf %165, %167 : vector<64x32xf32>
    %cst_97 = arith.constant 0.000000e+00 : f32
    %169 = vector.broadcast %cst_97 : f32 to vector<64x32xf32>
    %170 = arith.maximumf %168, %169 : vector<64x32xf32>
    %171 = vector.shape_cast %170 : vector<64x32xf32> to vector<8x8x32xf32>
    %cst_98 = arith.constant 0.000000e+00 : f32
    %172 = vector.broadcast %cst_98 : f32 to vector<4x8x32xf32>
    %173 = tpu.concatenate %172, %171 in 0 : vector<4x8x32xf32>, vector<8x8x32xf32> -> vector<12x8x32xf32>
    %cst_99 = arith.constant 0.000000e+00 : f32
    %174 = vector.broadcast %cst_99 : f32 to vector<64x32xf32>
    %175 = vector.extract_strided_slice %173 {offsets = [0, 0, 0], sizes = [8, 8, 32], strides = [1, 1, 1]} : vector<12x8x32xf32> to vector<8x8x32xf32>
    %176 = vector.shape_cast %175 : vector<8x8x32xf32> to vector<64x32xf32>
    %177 = arith.truncf %176 : vector<64x32xf32> to vector<64x32xbf16>
    %c0_100 = arith.constant 0 : index
    %c0_101 = arith.constant 0 : index
    %c0_102 = arith.constant 0 : index
    %178 = vector.load %arg12[%c0_100, %c0_101, %c0_102] : memref<5x32x32xbf16, #tpu.memory_space<vmem>>, vector<1x32x32xbf16>
    %179 = vector.shape_cast %178 : vector<1x32x32xbf16> to vector<32x32xbf16>
    %cst_103 = arith.constant dense<0.000000e+00> : vector<64x32xf32>
    %180 = tpu.matmul %177, %179, %cst_103 {dimension_numbers = #tpu.dot_dimension_numbers<[1], [0], [0], [1], [0, 0, 1, 1], [], []>} : vector<64x32xbf16>, vector<32x32xbf16>, vector<64x32xf32> -> vector<64x32xf32>
    %181 = arith.addf %174, %180 : vector<64x32xf32>
    %182 = vector.extract_strided_slice %173 {offsets = [1, 0, 0], sizes = [8, 8, 32], strides = [1, 1, 1]} : vector<12x8x32xf32> to vector<8x8x32xf32>
    %183 = vector.shape_cast %182 : vector<8x8x32xf32> to vector<64x32xf32>
    %184 = arith.truncf %183 : vector<64x32xf32> to vector<64x32xbf16>
    %c1_104 = arith.constant 1 : index
    %c0_105 = arith.constant 0 : index
    %c0_106 = arith.constant 0 : index
    %185 = vector.load %arg12[%c1_104, %c0_105, %c0_106] : memref<5x32x32xbf16, #tpu.memory_space<vmem>>, vector<1x32x32xbf16>
    %186 = vector.shape_cast %185 : vector<1x32x32xbf16> to vector<32x32xbf16>
    %cst_107 = arith.constant dense<0.000000e+00> : vector<64x32xf32>
    %187 = tpu.matmul %184, %186, %cst_107 {dimension_numbers = #tpu.dot_dimension_numbers<[1], [0], [0], [1], [0, 0, 1, 1], [], []>} : vector<64x32xbf16>, vector<32x32xbf16>, vector<64x32xf32> -> vector<64x32xf32>
    %188 = arith.addf %181, %187 : vector<64x32xf32>
    %189 = vector.extract_strided_slice %173 {offsets = [2, 0, 0], sizes = [8, 8, 32], strides = [1, 1, 1]} : vector<12x8x32xf32> to vector<8x8x32xf32>
    %190 = vector.shape_cast %189 : vector<8x8x32xf32> to vector<64x32xf32>
    %191 = arith.truncf %190 : vector<64x32xf32> to vector<64x32xbf16>
    %c2_108 = arith.constant 2 : index
    %c0_109 = arith.constant 0 : index
    %c0_110 = arith.constant 0 : index
    %192 = vector.load %arg12[%c2_108, %c0_109, %c0_110] : memref<5x32x32xbf16, #tpu.memory_space<vmem>>, vector<1x32x32xbf16>
    %193 = vector.shape_cast %192 : vector<1x32x32xbf16> to vector<32x32xbf16>
    %cst_111 = arith.constant dense<0.000000e+00> : vector<64x32xf32>
    %194 = tpu.matmul %191, %193, %cst_111 {dimension_numbers = #tpu.dot_dimension_numbers<[1], [0], [0], [1], [0, 0, 1, 1], [], []>} : vector<64x32xbf16>, vector<32x32xbf16>, vector<64x32xf32> -> vector<64x32xf32>
    %195 = arith.addf %188, %194 : vector<64x32xf32>
    %196 = vector.extract_strided_slice %173 {offsets = [3, 0, 0], sizes = [8, 8, 32], strides = [1, 1, 1]} : vector<12x8x32xf32> to vector<8x8x32xf32>
    %197 = vector.shape_cast %196 : vector<8x8x32xf32> to vector<64x32xf32>
    %198 = arith.truncf %197 : vector<64x32xf32> to vector<64x32xbf16>
    %c3_112 = arith.constant 3 : index
    %c0_113 = arith.constant 0 : index
    %c0_114 = arith.constant 0 : index
    %199 = vector.load %arg12[%c3_112, %c0_113, %c0_114] : memref<5x32x32xbf16, #tpu.memory_space<vmem>>, vector<1x32x32xbf16>
    %200 = vector.shape_cast %199 : vector<1x32x32xbf16> to vector<32x32xbf16>
    %cst_115 = arith.constant dense<0.000000e+00> : vector<64x32xf32>
    %201 = tpu.matmul %198, %200, %cst_115 {dimension_numbers = #tpu.dot_dimension_numbers<[1], [0], [0], [1], [0, 0, 1, 1], [], []>} : vector<64x32xbf16>, vector<32x32xbf16>, vector<64x32xf32> -> vector<64x32xf32>
    %202 = arith.addf %195, %201 : vector<64x32xf32>
    %203 = vector.extract_strided_slice %173 {offsets = [4, 0, 0], sizes = [8, 8, 32], strides = [1, 1, 1]} : vector<12x8x32xf32> to vector<8x8x32xf32>
    %204 = vector.shape_cast %203 : vector<8x8x32xf32> to vector<64x32xf32>
    %205 = arith.truncf %204 : vector<64x32xf32> to vector<64x32xbf16>
    %c4_116 = arith.constant 4 : index
    %c0_117 = arith.constant 0 : index
    %c0_118 = arith.constant 0 : index
    %206 = vector.load %arg12[%c4_116, %c0_117, %c0_118] : memref<5x32x32xbf16, #tpu.memory_space<vmem>>, vector<1x32x32xbf16>
    %207 = vector.shape_cast %206 : vector<1x32x32xbf16> to vector<32x32xbf16>
    %cst_119 = arith.constant dense<0.000000e+00> : vector<64x32xf32>
    %208 = tpu.matmul %205, %207, %cst_119 {dimension_numbers = #tpu.dot_dimension_numbers<[1], [0], [0], [1], [0, 0, 1, 1], [], []>} : vector<64x32xbf16>, vector<32x32xbf16>, vector<64x32xf32> -> vector<64x32xf32>
    %209 = arith.addf %202, %208 : vector<64x32xf32>
    %c0_120 = arith.constant 0 : index
    %c0_121 = arith.constant 0 : index
    %210 = vector.load %arg13[%c0_120, %c0_121] : memref<1x32xf32, #tpu.memory_space<vmem>>, vector<1x32xf32>
    %211 = vector.broadcast %210 : vector<1x32xf32> to vector<64x32xf32>
    %212 = arith.addf %209, %211 : vector<64x32xf32>
    %cst_122 = arith.constant 0.000000e+00 : f32
    %213 = vector.broadcast %cst_122 : f32 to vector<64x32xf32>
    %214 = arith.maximumf %212, %213 : vector<64x32xf32>
    %215 = vector.shape_cast %214 : vector<64x32xf32> to vector<8x8x32xf32>
    %c1_123 = arith.constant 1 : index
    %c0_124 = arith.constant 0 : index
    %c0_125 = arith.constant 0 : index
    %216 = vector.load %arg20[%c1_123, %c0_124, %c0_125] : memref<3x1x384xf32, #tpu.memory_space<vmem>>, vector<1x1x384xf32>
    %217 = vector.shape_cast %216 : vector<1x1x384xf32> to vector<1x384xf32>
    %218 = vector.shape_cast %215 : vector<8x8x32xf32> to vector<64x32xf32>
    %219 = arith.truncf %218 : vector<64x32xf32> to vector<64x32xbf16>
    %c0_126 = arith.constant 0 : index
    %c0_127 = arith.constant 0 : index
    %220 = vector.load %arg14[%c0_126, %c0_127] : memref<32x384xbf16, #tpu.memory_space<vmem>>, vector<32x384xbf16>
    %cst_128 = arith.constant dense<0.000000e+00> : vector<64x384xf32>
    %221 = tpu.matmul %219, %220, %cst_128 {dimension_numbers = #tpu.dot_dimension_numbers<[1], [0], [0], [1], [0, 0, 1, 1], [], []>} : vector<64x32xbf16>, vector<32x384xbf16>, vector<64x384xf32> -> vector<64x384xf32>
    %222 = vector.broadcast %217 : vector<1x384xf32> to vector<64x384xf32>
    %223 = arith.addf %221, %222 : vector<64x384xf32>
    %224 = vector.shape_cast %223 : vector<64x384xf32> to vector<8x8x384xf32>
    %c0_129 = arith.constant 0 : index
    %c0_130 = arith.constant 0 : index
    %c0_131 = arith.constant 0 : index
    %225 = vector.load %arg28[%c0_129, %c0_130, %c0_131] : memref<8x8x384xf32, #tpu.memory_space<vmem>>, vector<8x8x384xf32>
    tpu.vector_store %arg28[%c0_129, %c0_130, %c0_131], %224 {strides = array<i32>} : memref<8x8x384xf32, #tpu.memory_space<vmem>>, vector<8x8x384xf32>,
    %c0_132 = arith.constant 0 : index
    %c0_133 = arith.constant 0 : index
    %c0_134 = arith.constant 0 : index
    %226 = vector.load %arg3[%c0_132, %c0_133, %c0_134] : memref<4x8x4xf32, #tpu.memory_space<vmem>>, vector<4x8x4xf32>
    %cst_135 = arith.constant 0.000000e+00 : f32
    %227 = vector.broadcast %cst_135 : f32 to vector<2x8x4xf32>
    %228 = tpu.concatenate %227, %226 in 0 : vector<2x8x4xf32>, vector<4x8x4xf32> -> vector<6x8x4xf32>
    %cst_136 = arith.constant 0.000000e+00 : f32
    %229 = vector.broadcast %cst_136 : f32 to vector<32x32xf32>
    %230 = vector.extract_strided_slice %228 {offsets = [0, 0, 0], sizes = [4, 8, 4], strides = [1, 1, 1]} : vector<6x8x4xf32> to vector<4x8x4xf32>
    %231 = vector.shape_cast %230 : vector<4x8x4xf32> to vector<32x4xf32>
    %232 = arith.truncf %231 : vector<32x4xf32> to vector<32x4xbf16>
    %c0_137 = arith.constant 0 : index
    %c0_138 = arith.constant 0 : index
    %c0_139 = arith.constant 0 : index
    %233 = vector.load %arg15[%c0_137, %c0_138, %c0_139] : memref<3x4x32xbf16, #tpu.memory_space<vmem>>, vector<1x4x32xbf16>
    %234 = vector.shape_cast %233 : vector<1x4x32xbf16> to vector<4x32xbf16>
    %cst_140 = arith.constant dense<0.000000e+00> : vector<32x32xf32>
    %235 = tpu.matmul %232, %234, %cst_140 {dimension_numbers = #tpu.dot_dimension_numbers<[1], [0], [0], [1], [0, 0, 1, 1], [], []>} : vector<32x4xbf16>, vector<4x32xbf16>, vector<32x32xf32> -> vector<32x32xf32>
    %236 = arith.addf %229, %235 : vector<32x32xf32>
    %237 = vector.extract_strided_slice %228 {offsets = [1, 0, 0], sizes = [4, 8, 4], strides = [1, 1, 1]} : vector<6x8x4xf32> to vector<4x8x4xf32>
    %238 = vector.shape_cast %237 : vector<4x8x4xf32> to vector<32x4xf32>
    %239 = arith.truncf %238 : vector<32x4xf32> to vector<32x4xbf16>
    %c1_141 = arith.constant 1 : index
    %c0_142 = arith.constant 0 : index
    %c0_143 = arith.constant 0 : index
    %240 = vector.load %arg15[%c1_141, %c0_142, %c0_143] : memref<3x4x32xbf16, #tpu.memory_space<vmem>>, vector<1x4x32xbf16>
    %241 = vector.shape_cast %240 : vector<1x4x32xbf16> to vector<4x32xbf16>
    %cst_144 = arith.constant dense<0.000000e+00> : vector<32x32xf32>
    %242 = tpu.matmul %239, %241, %cst_144 {dimension_numbers = #tpu.dot_dimension_numbers<[1], [0], [0], [1], [0, 0, 1, 1], [], []>} : vector<32x4xbf16>, vector<4x32xbf16>, vector<32x32xf32> -> vector<32x32xf32>
    %243 = arith.addf %236, %242 : vector<32x32xf32>
    %244 = vector.extract_strided_slice %228 {offsets = [2, 0, 0], sizes = [4, 8, 4], strides = [1, 1, 1]} : vector<6x8x4xf32> to vector<4x8x4xf32>
    %245 = vector.shape_cast %244 : vector<4x8x4xf32> to vector<32x4xf32>
    %246 = arith.truncf %245 : vector<32x4xf32> to vector<32x4xbf16>
    %c2_145 = arith.constant 2 : index
    %c0_146 = arith.constant 0 : index
    %c0_147 = arith.constant 0 : index
    %247 = vector.load %arg15[%c2_145, %c0_146, %c0_147] : memref<3x4x32xbf16, #tpu.memory_space<vmem>>, vector<1x4x32xbf16>
    %248 = vector.shape_cast %247 : vector<1x4x32xbf16> to vector<4x32xbf16>
    %cst_148 = arith.constant dense<0.000000e+00> : vector<32x32xf32>
    %249 = tpu.matmul %246, %248, %cst_148 {dimension_numbers = #tpu.dot_dimension_numbers<[1], [0], [0], [1], [0, 0, 1, 1], [], []>} : vector<32x4xbf16>, vector<4x32xbf16>, vector<32x32xf32> -> vector<32x32xf32>
    %250 = arith.addf %243, %249 : vector<32x32xf32>
    %c0_149 = arith.constant 0 : index
    %c0_150 = arith.constant 0 : index
    %251 = vector.load %arg16[%c0_149, %c0_150] : memref<1x32xf32, #tpu.memory_space<vmem>>, vector<1x32xf32>
    %252 = vector.broadcast %251 : vector<1x32xf32> to vector<32x32xf32>
    %253 = arith.addf %250, %252 : vector<32x32xf32>
    %cst_151 = arith.constant 0.000000e+00 : f32
    %254 = vector.broadcast %cst_151 : f32 to vector<32x32xf32>
    %255 = arith.maximumf %253, %254 : vector<32x32xf32>
    %256 = vector.shape_cast %255 : vector<32x32xf32> to vector<4x8x32xf32>
    %cst_152 = arith.constant 0.000000e+00 : f32
    %257 = vector.broadcast %cst_152 : f32 to vector<2x8x32xf32>
    %258 = tpu.concatenate %257, %256 in 0 : vector<2x8x32xf32>, vector<4x8x32xf32> -> vector<6x8x32xf32>
    %cst_153 = arith.constant 0.000000e+00 : f32
    %259 = vector.broadcast %cst_153 : f32 to vector<32x32xf32>
    %260 = vector.extract_strided_slice %258 {offsets = [0, 0, 0], sizes = [4, 8, 32], strides = [1, 1, 1]} : vector<6x8x32xf32> to vector<4x8x32xf32>
    %261 = vector.shape_cast %260 : vector<4x8x32xf32> to vector<32x32xf32>
    %262 = arith.truncf %261 : vector<32x32xf32> to vector<32x32xbf16>
    %c0_154 = arith.constant 0 : index
    %c0_155 = arith.constant 0 : index
    %c0_156 = arith.constant 0 : index
    %263 = vector.load %arg17[%c0_154, %c0_155, %c0_156] : memref<3x32x32xbf16, #tpu.memory_space<vmem>>, vector<1x32x32xbf16>
    %264 = vector.shape_cast %263 : vector<1x32x32xbf16> to vector<32x32xbf16>
    %cst_157 = arith.constant dense<0.000000e+00> : vector<32x32xf32>
    %265 = tpu.matmul %262, %264, %cst_157 {dimension_numbers = #tpu.dot_dimension_numbers<[1], [0], [0], [1], [0, 0, 1, 1], [], []>} : vector<32x32xbf16>, vector<32x32xbf16>, vector<32x32xf32> -> vector<32x32xf32>
    %266 = arith.addf %259, %265 : vector<32x32xf32>
    %267 = vector.extract_strided_slice %258 {offsets = [1, 0, 0], sizes = [4, 8, 32], strides = [1, 1, 1]} : vector<6x8x32xf32> to vector<4x8x32xf32>
    %268 = vector.shape_cast %267 : vector<4x8x32xf32> to vector<32x32xf32>
    %269 = arith.truncf %268 : vector<32x32xf32> to vector<32x32xbf16>
    %c1_158 = arith.constant 1 : index
    %c0_159 = arith.constant 0 : index
    %c0_160 = arith.constant 0 : index
    %270 = vector.load %arg17[%c1_158, %c0_159, %c0_160] : memref<3x32x32xbf16, #tpu.memory_space<vmem>>, vector<1x32x32xbf16>
    %271 = vector.shape_cast %270 : vector<1x32x32xbf16> to vector<32x32xbf16>
    %cst_161 = arith.constant dense<0.000000e+00> : vector<32x32xf32>
    %272 = tpu.matmul %269, %271, %cst_161 {dimension_numbers = #tpu.dot_dimension_numbers<[1], [0], [0], [1], [0, 0, 1, 1], [], []>} : vector<32x32xbf16>, vector<32x32xbf16>, vector<32x32xf32> -> vector<32x32xf32>
    %273 = arith.addf %266, %272 : vector<32x32xf32>
    %274 = vector.extract_strided_slice %258 {offsets = [2, 0, 0], sizes = [4, 8, 32], strides = [1, 1, 1]} : vector<6x8x32xf32> to vector<4x8x32xf32>
    %275 = vector.shape_cast %274 : vector<4x8x32xf32> to vector<32x32xf32>
    %276 = arith.truncf %275 : vector<32x32xf32> to vector<32x32xbf16>
    %c2_162 = arith.constant 2 : index
    %c0_163 = arith.constant 0 : index
    %c0_164 = arith.constant 0 : index
    %277 = vector.load %arg17[%c2_162, %c0_163, %c0_164] : memref<3x32x32xbf16, #tpu.memory_space<vmem>>, vector<1x32x32xbf16>
    %278 = vector.shape_cast %277 : vector<1x32x32xbf16> to vector<32x32xbf16>
    %cst_165 = arith.constant dense<0.000000e+00> : vector<32x32xf32>
    %279 = tpu.matmul %276, %278, %cst_165 {dimension_numbers = #tpu.dot_dimension_numbers<[1], [0], [0], [1], [0, 0, 1, 1], [], []>} : vector<32x32xbf16>, vector<32x32xbf16>, vector<32x32xf32> -> vector<32x32xf32>
    %280 = arith.addf %273, %279 : vector<32x32xf32>
    %c0_166 = arith.constant 0 : index
    %c0_167 = arith.constant 0 : index
    %281 = vector.load %arg18[%c0_166, %c0_167] : memref<1x32xf32, #tpu.memory_space<vmem>>, vector<1x32xf32>
    %282 = vector.broadcast %281 : vector<1x32xf32> to vector<32x32xf32>
    %283 = arith.addf %280, %282 : vector<32x32xf32>
    %cst_168 = arith.constant 0.000000e+00 : f32
    %284 = vector.broadcast %cst_168 : f32 to vector<32x32xf32>
    %285 = arith.maximumf %283, %284 : vector<32x32xf32>
    %286 = vector.shape_cast %285 : vector<32x32xf32> to vector<4x8x32xf32>
    %c2_169 = arith.constant 2 : index
    %c0_170 = arith.constant 0 : index
    %c0_171 = arith.constant 0 : index
    %287 = vector.load %arg20[%c2_169, %c0_170, %c0_171] : memref<3x1x384xf32, #tpu.memory_space<vmem>>, vector<1x1x384xf32>
    %288 = vector.shape_cast %287 : vector<1x1x384xf32> to vector<1x384xf32>
    %289 = vector.shape_cast %286 : vector<4x8x32xf32> to vector<32x32xf32>
    %290 = arith.truncf %289 : vector<32x32xf32> to vector<32x32xbf16>
    %c0_172 = arith.constant 0 : index
    %c0_173 = arith.constant 0 : index
    %291 = vector.load %arg19[%c0_172, %c0_173] : memref<32x384xbf16, #tpu.memory_space<vmem>>, vector<32x384xbf16>
    %cst_174 = arith.constant dense<0.000000e+00> : vector<32x384xf32>
    %292 = tpu.matmul %290, %291, %cst_174 {dimension_numbers = #tpu.dot_dimension_numbers<[1], [0], [0], [1], [0, 0, 1, 1], [], []>} : vector<32x32xbf16>, vector<32x384xbf16>, vector<32x384xf32> -> vector<32x384xf32>
    %293 = vector.broadcast %288 : vector<1x384xf32> to vector<32x384xf32>
    %294 = arith.addf %292, %293 : vector<32x384xf32>
    %295 = vector.shape_cast %294 : vector<32x384xf32> to vector<4x8x384xf32>
    %c0_175 = arith.constant 0 : index
    %c0_176 = arith.constant 0 : index
    %c0_177 = arith.constant 0 : index
    %296 = vector.load %arg29[%c0_175, %c0_176, %c0_177] : memref<4x8x384xf32, #tpu.memory_space<vmem>>, vector<4x8x384xf32>
    tpu.vector_store %arg29[%c0_175, %c0_176, %c0_177], %295 {strides = array<i32>} : memref<4x8x384xf32, #tpu.memory_space<vmem>>, vector<4x8x384xf32>,
    %c0_178 = arith.constant 0 : index
    %c0_179 = arith.constant 0 : index
    %c0_180 = arith.constant 0 : index
    %297 = vector.load %arg21[%c0_178, %c0_179, %c0_180] : memref<3x128x384xbf16, #tpu.memory_space<vmem>>, vector<1x128x384xbf16>
    %298 = vector.shape_cast %297 : vector<1x128x384xbf16> to vector<128x384xbf16>
    %c1_181 = arith.constant 1 : index
    %c0_182 = arith.constant 0 : index
    %c0_183 = arith.constant 0 : index
    %299 = vector.load %arg21[%c1_181, %c0_182, %c0_183] : memref<3x128x384xbf16, #tpu.memory_space<vmem>>, vector<1x128x384xbf16>
    %300 = vector.shape_cast %299 : vector<1x128x384xbf16> to vector<128x384xbf16>
    %c2_184 = arith.constant 2 : index
    %c0_185 = arith.constant 0 : index
    %c0_186 = arith.constant 0 : index
    %301 = vector.load %arg21[%c2_184, %c0_185, %c0_186] : memref<3x128x384xbf16, #tpu.memory_space<vmem>>, vector<1x128x384xbf16>
    %302 = vector.shape_cast %301 : vector<1x128x384xbf16> to vector<128x384xbf16>
    %c0_187 = arith.constant 0 : index
    %c0_188 = arith.constant 0 : index
    %c0_189 = arith.constant 0 : index
    %303 = vector.load %arg22[%c0_187, %c0_188, %c0_189] : memref<3x1x384xf32, #tpu.memory_space<vmem>>, vector<1x1x384xf32>
    %304 = vector.shape_cast %303 : vector<1x1x384xf32> to vector<1x384xf32>
    %c1_190 = arith.constant 1 : index
    %c0_191 = arith.constant 0 : index
    %c0_192 = arith.constant 0 : index
    %305 = vector.load %arg22[%c1_190, %c0_191, %c0_192] : memref<3x1x384xf32, #tpu.memory_space<vmem>>, vector<1x1x384xf32>
    %306 = vector.shape_cast %305 : vector<1x1x384xf32> to vector<1x384xf32>
    %c2_193 = arith.constant 2 : index
    %c0_194 = arith.constant 0 : index
    %c0_195 = arith.constant 0 : index
    %307 = vector.load %arg22[%c2_193, %c0_194, %c0_195] : memref<3x1x384xf32, #tpu.memory_space<vmem>>, vector<1x1x384xf32>
    %308 = vector.shape_cast %307 : vector<1x1x384xf32> to vector<1x384xf32>
    %cst_196 = arith.constant 0.000000e+00 : f32
    %309 = vector.broadcast %cst_196 : f32 to vector<8x128xf32>
    %c0_i32 = arith.constant 0 : i32
    %c4_i32 = arith.constant 4 : i32
    %310 = arith.addi %c0_i32, %c4_i32 : i32
    %c1_i32 = arith.constant 1 : i32
    %311:3 = scf.for %arg30 = %c0_i32 to %310 step %c1_i32 iter_args(%arg31 = %309, %arg32 = %309, %arg33 = %309) -> (vector<8x128xf32>, vector<8x128xf32>, vector<8x128xf32>)  : i32 {
      %c4_i32_219 = arith.constant 4 : i32
      %335 = arith.muli %c4_i32_219, %arg30 : i32
      %c2_i32 = arith.constant 2 : i32
      %336 = arith.muli %c2_i32, %arg30 : i32
      %337 = arith.index_cast %335 : i32 to index
      %c0_220 = arith.constant 0 : index
      %c0_221 = arith.constant 0 : index
      %338 = vector.load %arg27[%337, %c0_220, %c0_221] : memref<16x8x384xf32, #tpu.memory_space<vmem>>, vector<1x8x384xf32>
      %339 = vector.shape_cast %338 : vector<1x8x384xf32> to vector<8x384xf32>
      %340 = arith.truncf %arg31 : vector<8x128xf32> to vector<8x128xbf16>
      %cst_222 = arith.constant dense<0.000000e+00> : vector<8x384xf32>
      %341 = tpu.matmul %340, %298, %cst_222 {dimension_numbers = #tpu.dot_dimension_numbers<[1], [0], [0], [1], [0, 0, 1, 1], [], []>} : vector<8x128xbf16>, vector<128x384xbf16>, vector<8x384xf32> -> vector<8x384xf32>
      %342 = vector.broadcast %304 : vector<1x384xf32> to vector<8x384xf32>
      %343 = arith.addf %341, %342 : vector<8x384xf32>
      %344 = vector.extract_strided_slice %339 {offsets = [0, 0], sizes = [8, 128], strides = [1, 1]} : vector<8x384xf32> to vector<8x128xf32>
      %345 = vector.extract_strided_slice %343 {offsets = [0, 0], sizes = [8, 128], strides = [1, 1]} : vector<8x384xf32> to vector<8x128xf32>
      %346 = arith.addf %344, %345 : vector<8x128xf32>
      %347 = arith.negf %346 : vector<8x128xf32>
      %348 = math.exp %347 : vector<8x128xf32>
      %cst_223 = arith.constant 1.000000e+00 : f32
      %349 = vector.broadcast %cst_223 : f32 to vector<8x128xf32>
      %350 = arith.addf %349, %348 : vector<8x128xf32>
      %351 = arith.divf %349, %350 : vector<8x128xf32>
      %352 = vector.extract_strided_slice %339 {offsets = [0, 128], sizes = [8, 128], strides = [1, 1]} : vector<8x384xf32> to vector<8x128xf32>
      %353 = vector.extract_strided_slice %343 {offsets = [0, 128], sizes = [8, 128], strides = [1, 1]} : vector<8x384xf32> to vector<8x128xf32>
      %354 = arith.addf %352, %353 : vector<8x128xf32>
      %355 = arith.negf %354 : vector<8x128xf32>
      %356 = math.exp %355 : vector<8x128xf32>
      %cst_224 = arith.constant 1.000000e+00 : f32
      %357 = vector.broadcast %cst_224 : f32 to vector<8x128xf32>
      %358 = arith.addf %357, %356 : vector<8x128xf32>
      %359 = arith.divf %357, %358 : vector<8x128xf32>
      %360 = vector.extract_strided_slice %339 {offsets = [0, 256], sizes = [8, 128], strides = [1, 1]} : vector<8x384xf32> to vector<8x128xf32>
      %361 = vector.extract_strided_slice %343 {offsets = [0, 256], sizes = [8, 128], strides = [1, 1]} : vector<8x384xf32> to vector<8x128xf32>
      %362 = arith.mulf %351, %361 : vector<8x128xf32>
      %363 = arith.addf %360, %362 : vector<8x128xf32>
      %364 = math.tanh %363 : vector<8x128xf32>
      %cst_225 = arith.constant 1.000000e+00 : f32
      %365 = vector.broadcast %cst_225 : f32 to vector<8x128xf32>
      %366 = arith.subf %365, %359 : vector<8x128xf32>
      %367 = arith.mulf %366, %364 : vector<8x128xf32>
      %368 = arith.mulf %359, %arg31 : vector<8x128xf32>
      %369 = arith.addf %367, %368 : vector<8x128xf32>
      %370 = arith.index_cast %336 : i32 to index
      %c0_226 = arith.constant 0 : index
      %c0_227 = arith.constant 0 : index
      %371 = vector.load %arg28[%370, %c0_226, %c0_227] : memref<8x8x384xf32, #tpu.memory_space<vmem>>, vector<1x8x384xf32>
      %372 = vector.shape_cast %371 : vector<1x8x384xf32> to vector<8x384xf32>
      %373 = arith.truncf %arg32 : vector<8x128xf32> to vector<8x128xbf16>
      %cst_228 = arith.constant dense<0.000000e+00> : vector<8x384xf32>
      %374 = tpu.matmul %373, %300, %cst_228 {dimension_numbers = #tpu.dot_dimension_numbers<[1], [0], [0], [1], [0, 0, 1, 1], [], []>} : vector<8x128xbf16>, vector<128x384xbf16>, vector<8x384xf32> -> vector<8x384xf32>
      %375 = vector.broadcast %306 : vector<1x384xf32> to vector<8x384xf32>
      %376 = arith.addf %374, %375 : vector<8x384xf32>
      %377 = vector.extract_strided_slice %372 {offsets = [0, 0], sizes = [8, 128], strides = [1, 1]} : vector<8x384xf32> to vector<8x128xf32>
      %378 = vector.extract_strided_slice %376 {offsets = [0, 0], sizes = [8, 128], strides = [1, 1]} : vector<8x384xf32> to vector<8x128xf32>
      %379 = arith.addf %377, %378 : vector<8x128xf32>
      %380 = arith.negf %379 : vector<8x128xf32>
      %381 = math.exp %380 : vector<8x128xf32>
      %cst_229 = arith.constant 1.000000e+00 : f32
      %382 = vector.broadcast %cst_229 : f32 to vector<8x128xf32>
      %383 = arith.addf %382, %381 : vector<8x128xf32>
      %384 = arith.divf %382, %383 : vector<8x128xf32>
      %385 = vector.extract_strided_slice %372 {offsets = [0, 128], sizes = [8, 128], strides = [1, 1]} : vector<8x384xf32> to vector<8x128xf32>
      %386 = vector.extract_strided_slice %376 {offsets = [0, 128], sizes = [8, 128], strides = [1, 1]} : vector<8x384xf32> to vector<8x128xf32>
      %387 = arith.addf %385, %386 : vector<8x128xf32>
      %388 = arith.negf %387 : vector<8x128xf32>
      %389 = math.exp %388 : vector<8x128xf32>
      %cst_230 = arith.constant 1.000000e+00 : f32
      %390 = vector.broadcast %cst_230 : f32 to vector<8x128xf32>
      %391 = arith.addf %390, %389 : vector<8x128xf32>
      %392 = arith.divf %390, %391 : vector<8x128xf32>
      %393 = vector.extract_strided_slice %372 {offsets = [0, 256], sizes = [8, 128], strides = [1, 1]} : vector<8x384xf32> to vector<8x128xf32>
      %394 = vector.extract_strided_slice %376 {offsets = [0, 256], sizes = [8, 128], strides = [1, 1]} : vector<8x384xf32> to vector<8x128xf32>
      %395 = arith.mulf %384, %394 : vector<8x128xf32>
      %396 = arith.addf %393, %395 : vector<8x128xf32>
      %397 = math.tanh %396 : vector<8x128xf32>
      %cst_231 = arith.constant 1.000000e+00 : f32
      %398 = vector.broadcast %cst_231 : f32 to vector<8x128xf32>
      %399 = arith.subf %398, %392 : vector<8x128xf32>
      %400 = arith.mulf %399, %397 : vector<8x128xf32>
      %401 = arith.mulf %392, %arg32 : vector<8x128xf32>
      %402 = arith.addf %400, %401 : vector<8x128xf32>
      %403 = arith.index_cast %arg30 : i32 to index
      %c0_232 = arith.constant 0 : index
      %c0_233 = arith.constant 0 : index
      %404 = vector.load %arg29[%403, %c0_232, %c0_233] : memref<4x8x384xf32, #tpu.memory_space<vmem>>, vector<1x8x384xf32>
      %405 = vector.shape_cast %404 : vector<1x8x384xf32> to vector<8x384xf32>
      %406 = arith.truncf %arg33 : vector<8x128xf32> to vector<8x128xbf16>
      %cst_234 = arith.constant dense<0.000000e+00> : vector<8x384xf32>
      %407 = tpu.matmul %406, %302, %cst_234 {dimension_numbers = #tpu.dot_dimension_numbers<[1], [0], [0], [1], [0, 0, 1, 1], [], []>} : vector<8x128xbf16>, vector<128x384xbf16>, vector<8x384xf32> -> vector<8x384xf32>
      %408 = vector.broadcast %308 : vector<1x384xf32> to vector<8x384xf32>
      %409 = arith.addf %407, %408 : vector<8x384xf32>
      %410 = vector.extract_strided_slice %405 {offsets = [0, 0], sizes = [8, 128], strides = [1, 1]} : vector<8x384xf32> to vector<8x128xf32>
      %411 = vector.extract_strided_slice %409 {offsets = [0, 0], sizes = [8, 128], strides = [1, 1]} : vector<8x384xf32> to vector<8x128xf32>
      %412 = arith.addf %410, %411 : vector<8x128xf32>
      %413 = arith.negf %412 : vector<8x128xf32>
      %414 = math.exp %413 : vector<8x128xf32>
      %cst_235 = arith.constant 1.000000e+00 : f32
      %415 = vector.broadcast %cst_235 : f32 to vector<8x128xf32>
      %416 = arith.addf %415, %414 : vector<8x128xf32>
      %417 = arith.divf %415, %416 : vector<8x128xf32>
      %418 = vector.extract_strided_slice %405 {offsets = [0, 128], sizes = [8, 128], strides = [1, 1]} : vector<8x384xf32> to vector<8x128xf32>
      %419 = vector.extract_strided_slice %409 {offsets = [0, 128], sizes = [8, 128], strides = [1, 1]} : vector<8x384xf32> to vector<8x128xf32>
      %420 = arith.addf %418, %419 : vector<8x128xf32>
      %421 = arith.negf %420 : vector<8x128xf32>
      %422 = math.exp %421 : vector<8x128xf32>
      %cst_236 = arith.constant 1.000000e+00 : f32
      %423 = vector.broadcast %cst_236 : f32 to vector<8x128xf32>
      %424 = arith.addf %423, %422 : vector<8x128xf32>
      %425 = arith.divf %423, %424 : vector<8x128xf32>
      %426 = vector.extract_strided_slice %405 {offsets = [0, 256], sizes = [8, 128], strides = [1, 1]} : vector<8x384xf32> to vector<8x128xf32>
      %427 = vector.extract_strided_slice %409 {offsets = [0, 256], sizes = [8, 128], strides = [1, 1]} : vector<8x384xf32> to vector<8x128xf32>
      %428 = arith.mulf %417, %427 : vector<8x128xf32>
      %429 = arith.addf %426, %428 : vector<8x128xf32>
      %430 = math.tanh %429 : vector<8x128xf32>
      %cst_237 = arith.constant 1.000000e+00 : f32
      %431 = vector.broadcast %cst_237 : f32 to vector<8x128xf32>
      %432 = arith.subf %431, %425 : vector<8x128xf32>
      %433 = arith.mulf %432, %430 : vector<8x128xf32>
      %434 = arith.mulf %425, %arg33 : vector<8x128xf32>
      %435 = arith.addf %433, %434 : vector<8x128xf32>
      %c1_i32_238 = arith.constant 1 : i32
      %436 = arith.addi %335, %c1_i32_238 : i32
      %437 = arith.index_cast %436 : i32 to index
      %c0_239 = arith.constant 0 : index
      %c0_240 = arith.constant 0 : index
      %438 = vector.load %arg27[%437, %c0_239, %c0_240] : memref<16x8x384xf32, #tpu.memory_space<vmem>>, vector<1x8x384xf32>
      %439 = vector.shape_cast %438 : vector<1x8x384xf32> to vector<8x384xf32>
      %440 = arith.truncf %369 : vector<8x128xf32> to vector<8x128xbf16>
      %cst_241 = arith.constant dense<0.000000e+00> : vector<8x384xf32>
      %441 = tpu.matmul %440, %298, %cst_241 {dimension_numbers = #tpu.dot_dimension_numbers<[1], [0], [0], [1], [0, 0, 1, 1], [], []>} : vector<8x128xbf16>, vector<128x384xbf16>, vector<8x384xf32> -> vector<8x384xf32>
      %442 = vector.broadcast %304 : vector<1x384xf32> to vector<8x384xf32>
      %443 = arith.addf %441, %442 : vector<8x384xf32>
      %444 = vector.extract_strided_slice %439 {offsets = [0, 0], sizes = [8, 128], strides = [1, 1]} : vector<8x384xf32> to vector<8x128xf32>
      %445 = vector.extract_strided_slice %443 {offsets = [0, 0], sizes = [8, 128], strides = [1, 1]} : vector<8x384xf32> to vector<8x128xf32>
      %446 = arith.addf %444, %445 : vector<8x128xf32>
      %447 = arith.negf %446 : vector<8x128xf32>
      %448 = math.exp %447 : vector<8x128xf32>
      %cst_242 = arith.constant 1.000000e+00 : f32
      %449 = vector.broadcast %cst_242 : f32 to vector<8x128xf32>
      %450 = arith.addf %449, %448 : vector<8x128xf32>
      %451 = arith.divf %449, %450 : vector<8x128xf32>
      %452 = vector.extract_strided_slice %439 {offsets = [0, 128], sizes = [8, 128], strides = [1, 1]} : vector<8x384xf32> to vector<8x128xf32>
      %453 = vector.extract_strided_slice %443 {offsets = [0, 128], sizes = [8, 128], strides = [1, 1]} : vector<8x384xf32> to vector<8x128xf32>
      %454 = arith.addf %452, %453 : vector<8x128xf32>
      %455 = arith.negf %454 : vector<8x128xf32>
      %456 = math.exp %455 : vector<8x128xf32>
      %cst_243 = arith.constant 1.000000e+00 : f32
      %457 = vector.broadcast %cst_243 : f32 to vector<8x128xf32>
      %458 = arith.addf %457, %456 : vector<8x128xf32>
      %459 = arith.divf %457, %458 : vector<8x128xf32>
      %460 = vector.extract_strided_slice %439 {offsets = [0, 256], sizes = [8, 128], strides = [1, 1]} : vector<8x384xf32> to vector<8x128xf32>
      %461 = vector.extract_strided_slice %443 {offsets = [0, 256], sizes = [8, 128], strides = [1, 1]} : vector<8x384xf32> to vector<8x128xf32>
      %462 = arith.mulf %451, %461 : vector<8x128xf32>
      %463 = arith.addf %460, %462 : vector<8x128xf32>
      %464 = math.tanh %463 : vector<8x128xf32>
      %cst_244 = arith.constant 1.000000e+00 : f32
      %465 = vector.broadcast %cst_244 : f32 to vector<8x128xf32>
      %466 = arith.subf %465, %459 : vector<8x128xf32>
      %467 = arith.mulf %466, %464 : vector<8x128xf32>
      %468 = arith.mulf %459, %369 : vector<8x128xf32>
      %469 = arith.addf %467, %468 : vector<8x128xf32>
      %c1_i32_245 = arith.constant 1 : i32
      %470 = arith.addi %336, %c1_i32_245 : i32
      %471 = arith.index_cast %470 : i32 to index
      %c0_246 = arith.constant 0 : index
      %c0_247 = arith.constant 0 : index
      %472 = vector.load %arg28[%471, %c0_246, %c0_247] : memref<8x8x384xf32, #tpu.memory_space<vmem>>, vector<1x8x384xf32>
      %473 = vector.shape_cast %472 : vector<1x8x384xf32> to vector<8x384xf32>
      %474 = arith.truncf %402 : vector<8x128xf32> to vector<8x128xbf16>
      %cst_248 = arith.constant dense<0.000000e+00> : vector<8x384xf32>
      %475 = tpu.matmul %474, %300, %cst_248 {dimension_numbers = #tpu.dot_dimension_numbers<[1], [0], [0], [1], [0, 0, 1, 1], [], []>} : vector<8x128xbf16>, vector<128x384xbf16>, vector<8x384xf32> -> vector<8x384xf32>
      %476 = vector.broadcast %306 : vector<1x384xf32> to vector<8x384xf32>
      %477 = arith.addf %475, %476 : vector<8x384xf32>
      %478 = vector.extract_strided_slice %473 {offsets = [0, 0], sizes = [8, 128], strides = [1, 1]} : vector<8x384xf32> to vector<8x128xf32>
      %479 = vector.extract_strided_slice %477 {offsets = [0, 0], sizes = [8, 128], strides = [1, 1]} : vector<8x384xf32> to vector<8x128xf32>
      %480 = arith.addf %478, %479 : vector<8x128xf32>
      %481 = arith.negf %480 : vector<8x128xf32>
      %482 = math.exp %481 : vector<8x128xf32>
      %cst_249 = arith.constant 1.000000e+00 : f32
      %483 = vector.broadcast %cst_249 : f32 to vector<8x128xf32>
      %484 = arith.addf %483, %482 : vector<8x128xf32>
      %485 = arith.divf %483, %484 : vector<8x128xf32>
      %486 = vector.extract_strided_slice %473 {offsets = [0, 128], sizes = [8, 128], strides = [1, 1]} : vector<8x384xf32> to vector<8x128xf32>
      %487 = vector.extract_strided_slice %477 {offsets = [0, 128], sizes = [8, 128], strides = [1, 1]} : vector<8x384xf32> to vector<8x128xf32>
      %488 = arith.addf %486, %487 : vector<8x128xf32>
      %489 = arith.negf %488 : vector<8x128xf32>
      %490 = math.exp %489 : vector<8x128xf32>
      %cst_250 = arith.constant 1.000000e+00 : f32
      %491 = vector.broadcast %cst_250 : f32 to vector<8x128xf32>
      %492 = arith.addf %491, %490 : vector<8x128xf32>
      %493 = arith.divf %491, %492 : vector<8x128xf32>
      %494 = vector.extract_strided_slice %473 {offsets = [0, 256], sizes = [8, 128], strides = [1, 1]} : vector<8x384xf32> to vector<8x128xf32>
      %495 = vector.extract_strided_slice %477 {offsets = [0, 256], sizes = [8, 128], strides = [1, 1]} : vector<8x384xf32> to vector<8x128xf32>
      %496 = arith.mulf %485, %495 : vector<8x128xf32>
      %497 = arith.addf %494, %496 : vector<8x128xf32>
      %498 = math.tanh %497 : vector<8x128xf32>
      %cst_251 = arith.constant 1.000000e+00 : f32
      %499 = vector.broadcast %cst_251 : f32 to vector<8x128xf32>
      %500 = arith.subf %499, %493 : vector<8x128xf32>
      %501 = arith.mulf %500, %498 : vector<8x128xf32>
      %502 = arith.mulf %493, %402 : vector<8x128xf32>
      %503 = arith.addf %501, %502 : vector<8x128xf32>
      %c2_i32_252 = arith.constant 2 : i32
      %504 = arith.addi %335, %c2_i32_252 : i32
      %505 = arith.index_cast %504 : i32 to index
      %c0_253 = arith.constant 0 : index
      %c0_254 = arith.constant 0 : index
      %506 = vector.load %arg27[%505, %c0_253, %c0_254] : memref<16x8x384xf32, #tpu.memory_space<vmem>>, vector<1x8x384xf32>
      %507 = vector.shape_cast %506 : vector<1x8x384xf32> to vector<8x384xf32>
      %508 = arith.truncf %469 : vector<8x128xf32> to vector<8x128xbf16>
      %cst_255 = arith.constant dense<0.000000e+00> : vector<8x384xf32>
      %509 = tpu.matmul %508, %298, %cst_255 {dimension_numbers = #tpu.dot_dimension_numbers<[1], [0], [0], [1], [0, 0, 1, 1], [], []>} : vector<8x128xbf16>, vector<128x384xbf16>, vector<8x384xf32> -> vector<8x384xf32>
      %510 = vector.broadcast %304 : vector<1x384xf32> to vector<8x384xf32>
      %511 = arith.addf %509, %510 : vector<8x384xf32>
      %512 = vector.extract_strided_slice %507 {offsets = [0, 0], sizes = [8, 128], strides = [1, 1]} : vector<8x384xf32> to vector<8x128xf32>
      %513 = vector.extract_strided_slice %511 {offsets = [0, 0], sizes = [8, 128], strides = [1, 1]} : vector<8x384xf32> to vector<8x128xf32>
      %514 = arith.addf %512, %513 : vector<8x128xf32>
      %515 = arith.negf %514 : vector<8x128xf32>
      %516 = math.exp %515 : vector<8x128xf32>
      %cst_256 = arith.constant 1.000000e+00 : f32
      %517 = vector.broadcast %cst_256 : f32 to vector<8x128xf32>
      %518 = arith.addf %517, %516 : vector<8x128xf32>
      %519 = arith.divf %517, %518 : vector<8x128xf32>
      %520 = vector.extract_strided_slice %507 {offsets = [0, 128], sizes = [8, 128], strides = [1, 1]} : vector<8x384xf32> to vector<8x128xf32>
      %521 = vector.extract_strided_slice %511 {offsets = [0, 128], sizes = [8, 128], strides = [1, 1]} : vector<8x384xf32> to vector<8x128xf32>
      %522 = arith.addf %520, %521 : vector<8x128xf32>
      %523 = arith.negf %522 : vector<8x128xf32>
      %524 = math.exp %523 : vector<8x128xf32>
      %cst_257 = arith.constant 1.000000e+00 : f32
      %525 = vector.broadcast %cst_257 : f32 to vector<8x128xf32>
      %526 = arith.addf %525, %524 : vector<8x128xf32>
      %527 = arith.divf %525, %526 : vector<8x128xf32>
      %528 = vector.extract_strided_slice %507 {offsets = [0, 256], sizes = [8, 128], strides = [1, 1]} : vector<8x384xf32> to vector<8x128xf32>
      %529 = vector.extract_strided_slice %511 {offsets = [0, 256], sizes = [8, 128], strides = [1, 1]} : vector<8x384xf32> to vector<8x128xf32>
      %530 = arith.mulf %519, %529 : vector<8x128xf32>
      %531 = arith.addf %528, %530 : vector<8x128xf32>
      %532 = math.tanh %531 : vector<8x128xf32>
      %cst_258 = arith.constant 1.000000e+00 : f32
      %533 = vector.broadcast %cst_258 : f32 to vector<8x128xf32>
      %534 = arith.subf %533, %527 : vector<8x128xf32>
      %535 = arith.mulf %534, %532 : vector<8x128xf32>
      %536 = arith.mulf %527, %469 : vector<8x128xf32>
      %537 = arith.addf %535, %536 : vector<8x128xf32>
      %c3_i32 = arith.constant 3 : i32
      %538 = arith.addi %335, %c3_i32 : i32
      %539 = arith.index_cast %538 : i32 to index
      %c0_259 = arith.constant 0 : index
      %c0_260 = arith.constant 0 : index
      %540 = vector.load %arg27[%539, %c0_259, %c0_260] : memref<16x8x384xf32, #tpu.memory_space<vmem>>, vector<1x8x384xf32>
      %541 = vector.shape_cast %540 : vector<1x8x384xf32> to vector<8x384xf32>
      %542 = arith.truncf %537 : vector<8x128xf32> to vector<8x128xbf16>
      %cst_261 = arith.constant dense<0.000000e+00> : vector<8x384xf32>
      %543 = tpu.matmul %542, %298, %cst_261 {dimension_numbers = #tpu.dot_dimension_numbers<[1], [0], [0], [1], [0, 0, 1, 1], [], []>} : vector<8x128xbf16>, vector<128x384xbf16>, vector<8x384xf32> -> vector<8x384xf32>
      %544 = vector.broadcast %304 : vector<1x384xf32> to vector<8x384xf32>
      %545 = arith.addf %543, %544 : vector<8x384xf32>
      %546 = vector.extract_strided_slice %541 {offsets = [0, 0], sizes = [8, 128], strides = [1, 1]} : vector<8x384xf32> to vector<8x128xf32>
      %547 = vector.extract_strided_slice %545 {offsets = [0, 0], sizes = [8, 128], strides = [1, 1]} : vector<8x384xf32> to vector<8x128xf32>
      %548 = arith.addf %546, %547 : vector<8x128xf32>
      %549 = arith.negf %548 : vector<8x128xf32>
      %550 = math.exp %549 : vector<8x128xf32>
      %cst_262 = arith.constant 1.000000e+00 : f32
      %551 = vector.broadcast %cst_262 : f32 to vector<8x128xf32>
      %552 = arith.addf %551, %550 : vector<8x128xf32>
      %553 = arith.divf %551, %552 : vector<8x128xf32>
      %554 = vector.extract_strided_slice %541 {offsets = [0, 128], sizes = [8, 128], strides = [1, 1]} : vector<8x384xf32> to vector<8x128xf32>
      %555 = vector.extract_strided_slice %545 {offsets = [0, 128], sizes = [8, 128], strides = [1, 1]} : vector<8x384xf32> to vector<8x128xf32>
      %556 = arith.addf %554, %555 : vector<8x128xf32>
      %557 = arith.negf %556 : vector<8x128xf32>
      %558 = math.exp %557 : vector<8x128xf32>
      %cst_263 = arith.constant 1.000000e+00 : f32
      %559 = vector.broadcast %cst_263 : f32 to vector<8x128xf32>
      %560 = arith.addf %559, %558 : vector<8x128xf32>
      %561 = arith.divf %559, %560 : vector<8x128xf32>
      %562 = vector.extract_strided_slice %541 {offsets = [0, 256], sizes = [8, 128], strides = [1, 1]} : vector<8x384xf32> to vector<8x128xf32>
      %563 = vector.extract_strided_slice %545 {offsets = [0, 256], sizes = [8, 128], strides = [1, 1]} : vector<8x384xf32> to vector<8x128xf32>
      %564 = arith.mulf %553, %563 : vector<8x128xf32>
      %565 = arith.addf %562, %564 : vector<8x128xf32>
      %566 = math.tanh %565 : vector<8x128xf32>
      %cst_264 = arith.constant 1.000000e+00 : f32
      %567 = vector.broadcast %cst_264 : f32 to vector<8x128xf32>
      %568 = arith.subf %567, %561 : vector<8x128xf32>
      %569 = arith.mulf %568, %566 : vector<8x128xf32>
      %570 = arith.mulf %561, %537 : vector<8x128xf32>
      %571 = arith.addf %569, %570 : vector<8x128xf32>
      scf.yield %571, %503, %435 : vector<8x128xf32>, vector<8x128xf32>, vector<8x128xf32>
    }
    %c4_i32_197 = arith.constant 4 : i32
    %312 = arith.truncf %311#0 : vector<8x128xf32> to vector<8x128xbf16>
    %c0_198 = arith.constant 0 : index
    %c0_199 = arith.constant 0 : index
    %c0_200 = arith.constant 0 : index
    %313 = vector.load %arg23[%c0_198, %c0_199, %c0_200] : memref<3x128x8xbf16, #tpu.memory_space<vmem>>, vector<1x128x8xbf16>
    %314 = vector.shape_cast %313 : vector<1x128x8xbf16> to vector<128x8xbf16>
    %cst_201 = arith.constant dense<0.000000e+00> : vector<8x8xf32>
    %315 = tpu.matmul %312, %314, %cst_201 {dimension_numbers = #tpu.dot_dimension_numbers<[1], [0], [0], [1], [0, 0, 1, 1], [], []>} : vector<8x128xbf16>, vector<128x8xbf16>, vector<8x8xf32> -> vector<8x8xf32>
    %316 = arith.truncf %311#1 : vector<8x128xf32> to vector<8x128xbf16>
    %c1_202 = arith.constant 1 : index
    %c0_203 = arith.constant 0 : index
    %c0_204 = arith.constant 0 : index
    %317 = vector.load %arg23[%c1_202, %c0_203, %c0_204] : memref<3x128x8xbf16, #tpu.memory_space<vmem>>, vector<1x128x8xbf16>
    %318 = vector.shape_cast %317 : vector<1x128x8xbf16> to vector<128x8xbf16>
    %cst_205 = arith.constant dense<0.000000e+00> : vector<8x8xf32>
    %319 = tpu.matmul %316, %318, %cst_205 {dimension_numbers = #tpu.dot_dimension_numbers<[1], [0], [0], [1], [0, 0, 1, 1], [], []>} : vector<8x128xbf16>, vector<128x8xbf16>, vector<8x8xf32> -> vector<8x8xf32>
    %320 = arith.addf %315, %319 : vector<8x8xf32>
    %321 = arith.truncf %311#2 : vector<8x128xf32> to vector<8x128xbf16>
    %c2_206 = arith.constant 2 : index
    %c0_207 = arith.constant 0 : index
    %c0_208 = arith.constant 0 : index
    %322 = vector.load %arg23[%c2_206, %c0_207, %c0_208] : memref<3x128x8xbf16, #tpu.memory_space<vmem>>, vector<1x128x8xbf16>
    %323 = vector.shape_cast %322 : vector<1x128x8xbf16> to vector<128x8xbf16>
    %cst_209 = arith.constant dense<0.000000e+00> : vector<8x8xf32>
    %324 = tpu.matmul %321, %323, %cst_209 {dimension_numbers = #tpu.dot_dimension_numbers<[1], [0], [0], [1], [0, 0, 1, 1], [], []>} : vector<8x128xbf16>, vector<128x8xbf16>, vector<8x8xf32> -> vector<8x8xf32>
    %325 = arith.addf %320, %324 : vector<8x8xf32>
    %c0_210 = arith.constant 0 : index
    %c0_211 = arith.constant 0 : index
    %326 = vector.load %arg4[%c0_210, %c0_211] : memref<8x64xf32, #tpu.memory_space<vmem>>, vector<8x64xf32>
    %327 = arith.truncf %326 : vector<8x64xf32> to vector<8x64xbf16>
    %c0_212 = arith.constant 0 : index
    %c0_213 = arith.constant 0 : index
    %328 = vector.load %arg24[%c0_212, %c0_213] : memref<64x8xbf16, #tpu.memory_space<vmem>>, vector<64x8xbf16>
    %cst_214 = arith.constant dense<0.000000e+00> : vector<8x8xf32>
    %329 = tpu.matmul %327, %328, %cst_214 {dimension_numbers = #tpu.dot_dimension_numbers<[1], [0], [0], [1], [0, 0, 1, 1], [], []>} : vector<8x64xbf16>, vector<64x8xbf16>, vector<8x8xf32> -> vector<8x8xf32>
    %330 = arith.addf %325, %329 : vector<8x8xf32>
    %c0_215 = arith.constant 0 : index
    %c0_216 = arith.constant 0 : index
    %331 = vector.load %arg25[%c0_215, %c0_216] : memref<1x8xf32, #tpu.memory_space<vmem>>, vector<1x8xf32>
    %332 = vector.broadcast %331 : vector<1x8xf32> to vector<8x8xf32>
    %333 = arith.addf %330, %332 : vector<8x8xf32>
    %c0_217 = arith.constant 0 : index
    %c0_218 = arith.constant 0 : index
    %334 = vector.load %arg26[%c0_217, %c0_218] : memref<8x8xf32, #tpu.memory_space<vmem>>, vector<8x8xf32>
    tpu.vector_store %arg26[%c0_217, %c0_218], %333 {strides = array<i32>} : memref<8x8xf32, #tpu.memory_space<vmem>>, vector<8x8xf32>,
    return
  }
  func.func @transform_0(%arg0: i32) -> (i32, i32, i32) {
    %c0_i32 = arith.constant 0 : i32
    %c0_i32_0 = arith.constant 0 : i32
    %c0_i32_1 = arith.constant 0 : i32
    return %c0_i32, %arg0, %c0_i32_0 : i32, i32, i32
  }
  func.func @transform_1(%arg0: i32) -> (i32, i32, i32) {
    %c0_i32 = arith.constant 0 : i32
    %c0_i32_0 = arith.constant 0 : i32
    %c0_i32_1 = arith.constant 0 : i32
    return %c0_i32, %arg0, %c0_i32_0 : i32, i32, i32
  }
  func.func @transform_2(%arg0: i32) -> (i32, i32, i32) {
    %c0_i32 = arith.constant 0 : i32
    %c0_i32_0 = arith.constant 0 : i32
    %c0_i32_1 = arith.constant 0 : i32
    return %c0_i32, %arg0, %c0_i32_0 : i32, i32, i32
  }
  func.func @transform_3(%arg0: i32) -> (i32, i32) {
    %c0_i32 = arith.constant 0 : i32
    %c0_i32_0 = arith.constant 0 : i32
    return %arg0, %c0_i32 : i32, i32
  }
  func.func @transform_4(%arg0: i32) -> (i32, i32, i32) {
    %c0_i32 = arith.constant 0 : i32
    %c0_i32_0 = arith.constant 0 : i32
    %c0_i32_1 = arith.constant 0 : i32
    %c0_i32_2 = arith.constant 0 : i32
    return %c0_i32, %c0_i32_0, %c0_i32_1 : i32, i32, i32
  }
  func.func @transform_5(%arg0: i32) -> (i32, i32) {
    %c0_i32 = arith.constant 0 : i32
    %c0_i32_0 = arith.constant 0 : i32
    %c0_i32_1 = arith.constant 0 : i32
    return %c0_i32, %c0_i32_0 : i32, i32
  }
  func.func @transform_6(%arg0: i32) -> (i32, i32, i32) {
    %c0_i32 = arith.constant 0 : i32
    %c0_i32_0 = arith.constant 0 : i32
    %c0_i32_1 = arith.constant 0 : i32
    %c0_i32_2 = arith.constant 0 : i32
    return %c0_i32, %c0_i32_0, %c0_i32_1 : i32, i32, i32
  }
  func.func @transform_7(%arg0: i32) -> (i32, i32) {
    %c0_i32 = arith.constant 0 : i32
    %c0_i32_0 = arith.constant 0 : i32
    %c0_i32_1 = arith.constant 0 : i32
    return %c0_i32, %c0_i32_0 : i32, i32
  }
  func.func @transform_8(%arg0: i32) -> (i32, i32) {
    %c0_i32 = arith.constant 0 : i32
    %c0_i32_0 = arith.constant 0 : i32
    %c0_i32_1 = arith.constant 0 : i32
    return %c0_i32, %c0_i32_0 : i32, i32
  }
  func.func @transform_9(%arg0: i32) -> (i32, i32, i32) {
    %c0_i32 = arith.constant 0 : i32
    %c0_i32_0 = arith.constant 0 : i32
    %c0_i32_1 = arith.constant 0 : i32
    %c0_i32_2 = arith.constant 0 : i32
    return %c0_i32, %c0_i32_0, %c0_i32_1 : i32, i32, i32
  }
  func.func @transform_10(%arg0: i32) -> (i32, i32) {
    %c0_i32 = arith.constant 0 : i32
    %c0_i32_0 = arith.constant 0 : i32
    %c0_i32_1 = arith.constant 0 : i32
    return %c0_i32, %c0_i32_0 : i32, i32
  }
  func.func @transform_11(%arg0: i32) -> (i32, i32, i32) {
    %c0_i32 = arith.constant 0 : i32
    %c0_i32_0 = arith.constant 0 : i32
    %c0_i32_1 = arith.constant 0 : i32
    %c0_i32_2 = arith.constant 0 : i32
    return %c0_i32, %c0_i32_0, %c0_i32_1 : i32, i32, i32
  }
  func.func @transform_12(%arg0: i32) -> (i32, i32) {
    %c0_i32 = arith.constant 0 : i32
    %c0_i32_0 = arith.constant 0 : i32
    %c0_i32_1 = arith.constant 0 : i32
    return %c0_i32, %c0_i32_0 : i32, i32
  }
  func.func @transform_13(%arg0: i32) -> (i32, i32) {
    %c0_i32 = arith.constant 0 : i32
    %c0_i32_0 = arith.constant 0 : i32
    %c0_i32_1 = arith.constant 0 : i32
    return %c0_i32, %c0_i32_0 : i32, i32
  }
  func.func @transform_14(%arg0: i32) -> (i32, i32, i32) {
    %c0_i32 = arith.constant 0 : i32
    %c0_i32_0 = arith.constant 0 : i32
    %c0_i32_1 = arith.constant 0 : i32
    %c0_i32_2 = arith.constant 0 : i32
    return %c0_i32, %c0_i32_0, %c0_i32_1 : i32, i32, i32
  }
  func.func @transform_15(%arg0: i32) -> (i32, i32) {
    %c0_i32 = arith.constant 0 : i32
    %c0_i32_0 = arith.constant 0 : i32
    %c0_i32_1 = arith.constant 0 : i32
    return %c0_i32, %c0_i32_0 : i32, i32
  }
  func.func @transform_16(%arg0: i32) -> (i32, i32, i32) {
    %c0_i32 = arith.constant 0 : i32
    %c0_i32_0 = arith.constant 0 : i32
    %c0_i32_1 = arith.constant 0 : i32
    %c0_i32_2 = arith.constant 0 : i32
    return %c0_i32, %c0_i32_0, %c0_i32_1 : i32, i32, i32
  }
  func.func @transform_17(%arg0: i32) -> (i32, i32) {
    %c0_i32 = arith.constant 0 : i32
    %c0_i32_0 = arith.constant 0 : i32
    %c0_i32_1 = arith.constant 0 : i32
    return %c0_i32, %c0_i32_0 : i32, i32
  }
  func.func @transform_18(%arg0: i32) -> (i32, i32) {
    %c0_i32 = arith.constant 0 : i32
    %c0_i32_0 = arith.constant 0 : i32
    %c0_i32_1 = arith.constant 0 : i32
    return %c0_i32, %c0_i32_0 : i32, i32
  }
  func.func @transform_19(%arg0: i32) -> (i32, i32, i32) {
    %c0_i32 = arith.constant 0 : i32
    %c0_i32_0 = arith.constant 0 : i32
    %c0_i32_1 = arith.constant 0 : i32
    %c0_i32_2 = arith.constant 0 : i32
    return %c0_i32, %c0_i32_0, %c0_i32_1 : i32, i32, i32
  }
  func.func @transform_20(%arg0: i32) -> (i32, i32, i32) {
    %c0_i32 = arith.constant 0 : i32
    %c0_i32_0 = arith.constant 0 : i32
    %c0_i32_1 = arith.constant 0 : i32
    %c0_i32_2 = arith.constant 0 : i32
    return %c0_i32, %c0_i32_0, %c0_i32_1 : i32, i32, i32
  }
  func.func @transform_21(%arg0: i32) -> (i32, i32, i32) {
    %c0_i32 = arith.constant 0 : i32
    %c0_i32_0 = arith.constant 0 : i32
    %c0_i32_1 = arith.constant 0 : i32
    %c0_i32_2 = arith.constant 0 : i32
    return %c0_i32, %c0_i32_0, %c0_i32_1 : i32, i32, i32
  }
  func.func @transform_22(%arg0: i32) -> (i32, i32, i32) {
    %c0_i32 = arith.constant 0 : i32
    %c0_i32_0 = arith.constant 0 : i32
    %c0_i32_1 = arith.constant 0 : i32
    %c0_i32_2 = arith.constant 0 : i32
    return %c0_i32, %c0_i32_0, %c0_i32_1 : i32, i32, i32
  }
  func.func @transform_23(%arg0: i32) -> (i32, i32) {
    %c0_i32 = arith.constant 0 : i32
    %c0_i32_0 = arith.constant 0 : i32
    %c0_i32_1 = arith.constant 0 : i32
    return %c0_i32, %c0_i32_0 : i32, i32
  }
  func.func @transform_24(%arg0: i32) -> (i32, i32) {
    %c0_i32 = arith.constant 0 : i32
    %c0_i32_0 = arith.constant 0 : i32
    %c0_i32_1 = arith.constant 0 : i32
    return %c0_i32, %c0_i32_0 : i32, i32
  }
  func.func @transform_25(%arg0: i32) -> (i32, i32) {
    %c0_i32 = arith.constant 0 : i32
    %c0_i32_0 = arith.constant 0 : i32
    return %arg0, %c0_i32 : i32, i32
  }
}

</mosaic_0001>

<bundles_post_ra>
// kernel: conv_rnn_forward.1
= control target key start
LH: loop header
LB: loop body
LE: loop exit
PB: predicated region body
PF: predicated region fallthrough
CT: control target
= control target key end

     0   :  { %vm134_vm0 = vcmask 1041408   ;;  %v10283_v2 = vmov 0.0|0.0   ;;  %v10285_v7 = vmov 0.0   ;;  %vm112_vm1 = vcmask 31744   ;;  %s10251_s3 = inlined_call_operand.vmem [shape: f32[8,64], index: 3, kind: input, shape index: {}]   ;;  %s10252_s4 = inlined_call_operand.vmem [shape: bf16[7,4,32], index: 4, kind: input, shape index: {}]   ;;  %s10253_s22 = inlined_call_operand.vmem [shape: bf16[3,128,8], index: 22, kind: input, shape index: {}]   ;;  %s10254_s23 = inlined_call_operand.vmem [shape: bf16[64,8], index: 23, kind: input, shape index: {}]   ;;  %s10255_s24 = inlined_call_operand.vmem [shape: f32[1,8], index: 24, kind: input, shape index: {}]   ;;  %s10256_s25 = inlined_call_operand.vmem [shape: f32[8,8], index: 25, kind: output, shape index: {}]   ;;  %s10257_s0 = inlined_call_operand.vmem [shape: f32[16,8,4], index: 0, kind: input, shape index: {}]   ;;  %s10258_s6 = inlined_call_operand.vmem [shape: bf16[7,32,32], index: 6, kind: input, shape index: {}]   ;;  %s10259_s5 = inlined_call_operand.vmem [shape: f32[1,32], index: 5, kind: input, shape index: {}]   ;;  %s10260_s8 = inlined_call_operand.vmem [shape: bf16[32,384], index: 8, kind: input, shape index: {}]   ;;  %s10261_s9 = inlined_call_operand.vmem [shape: bf16[5,4,32], index: 9, kind: input, shape index: {}]   ;;  %s10262_s7 = inlined_call_operand.vmem [shape: f32[1,32], index: 7, kind: input, shape index: {}]   ;;  %s10263_s1 = inlined_call_operand.vmem [shape: f32[8,8,4], index: 1, kind: input, shape index: {}]   ;;  %s10264_s11 = inlined_call_operand.vmem [shape: bf16[5,32,32], index: 11, kind: input, shape index: {}]   ;;  %s10265_s19 = inlined_call_operand.vmem [shape: f32[3,1,384], index: 19, kind: input, shape index: {}]   ;;  %s10266_s10 = inlined_call_operand.vmem [shape: f32[1,32], index: 10, kind: input, shape index: {}]   ;;  %s10267_s13 = inlined_call_operand.vmem [shape: bf16[32,384], index: 13, kind: input, shape index: {}]   ;;  %s10268_s14 = inlined_call_operand.vmem [shape: bf16[3,4,32], index: 14, kind: input, shape index: {}]   ;;  %s10269_s12 = inlined_call_operand.vmem [shape: f32[1,32], index: 12, kind: input, shape index: {}]   ;;  %s10270_s2 = inlined_call_operand.vmem [shape: f32[4,8,4], index: 2, kind: input, shape index: {}]   ;;  %s10271_s16 = inlined_call_operand.vmem [shape: bf16[3,32,32], index: 16, kind: input, shape index: {}]   ;;  %s10272_s15 = inlined_call_operand.vmem [shape: f32[1,32], index: 15, kind: input, shape index: {}]   ;;  %s10273_s18 = inlined_call_operand.vmem [shape: bf16[32,384], index: 18, kind: input, shape index: {}]   ;;  %s10274_s17 = inlined_call_operand.vmem [shape: f32[1,32], index: 17, kind: input, shape index: {}]   ;;  %s10275_s20 = inlined_call_operand.vmem [shape: bf16[3,128,384], index: 20, kind: input, shape index: {}]   ;;  %s10276_s21 = inlined_call_operand.vmem [shape: f32[3,1,384], index: 21, kind: input, shape index: {}]  }
   0x1   :  { %10413 = sst [smem:[#allocation127_spill]] %s10251_s3  ;;  %6711 = vmatprep.mubr.bf16.mxu0 %v10283_v2  ;;  %6729 = vmatprep.mubr.bf16.mxu1 %v10283_v2  ;;  %vm1031_vm2 = vcmask 261120  }
   0x2   :  { %10414 = sst [smem:[#allocation128_spill]] %s10252_s4 }
   0x3   :  { %10415 = sst [smem:[#allocation129_spill]] %s10253_s22 }
   0x4   :  { %10416 = sst [smem:[#allocation130_spill]] %s10254_s23 }
   0x5   :  { %10417 = sst [smem:[#allocation131_spill]] %s10255_s24 }
   0x6   :  { %10418 = sst [smem:[#allocation132_spill]] %s10256_s25 }
   0x7   :  { %10419 = sst [smem:[#allocation133_spill]] %s10257_s0 }
   0x8   :  { %10420 = sst [smem:[#allocation134_spill]] %s10258_s6 }
   0x9   :  { %10421 = sst [smem:[#allocation135_spill]] %s10259_s5 }
   0xa   :  { %10422 = sst [smem:[#allocation136_spill]] %s10260_s8 }
   0xb   :  { %s10423_s22 = sld [smem:[#allocation128_spill]] }
   0xc   :  { %s10424_s27 = sld [smem:[#allocation133_spill]] }
   0xd   :  { %s10425_s8 = sld [smem:[#allocation134_spill]] }
   0xe   :  { %s10446_s0 = sld [smem:[#allocation135_spill]] }
   0xf   :  { %s10469_s28 = sld [smem:[#allocation136_spill]] }
  0x11   :  { %v5861_v0 = vld [vmem:[%s10423_s22 + $0x2] sm:$0x3]  ;;  %v103_v1 = vld [vmem:[%s10423_s22] sm:$0x3]  ;;  %v5873_v3 = vld [vmem:[%s10423_s22 + $0x4] sm:$0x3] }
  0x12   :  { %7379 = vmatprep.subr.msk.bf16.mxu0 %vm134_vm0, %v5861_v0  ;;  %7380 = vmatprep.subr.msk.bf16.mxu1 %vm134_vm0, %v103_v1  ;;  %v136_v4 = vsel %vm134_vm0, %v5861_v0, 0  ;;  %v251_v5 = vsel %vm134_vm0, %v103_v1, 0  ;;  %v81_v6 = vld [vmem:[%s10424_s27] sm:$0xff]  ;;  %v357_v9 = vsel %vm134_vm0, %v5873_v3, 0  ;;  %v5888_v12 = vld [vmem:[%s10423_s22 + $0x8] sm:$0x3] }
  0x13   :  { %6710 = vmatpush3.bf16.msra.mxu0 %v136_v4  ;;  %6728 = vmatpush3.bf16.msra.mxu1 %v251_v5  ;;  %v7773_v8 = vpack.c.bf16 %v81_v6, %v10285_v7  ;;  %v5880_v10 = vld [vmem:[%s10423_s22 + $0x6] sm:$0x3]  ;;  %v82_v13 = vld [vmem:[%s10424_s27 + $0x8] sm:$0xff]  ;;  %v83_v14 = vld [vmem:[%s10424_s27 + $0x10] sm:$0xff]  ;;  %v601_v34 = vsel %vm134_vm0, %v5888_v12, 0 }
  0x14   :  { %7381 = vmatprep.subr.msk.bf16.mxu0 %vm134_vm0, %v5873_v3  ;;  %v479_v11 = vsel %vm134_vm0, %v5880_v10, 0  ;;  %v5896_v15 = vld [vmem:[%s10423_s22 + $0xa] sm:$0x3]  ;;  %v84_v16 = vld [vmem:[%s10424_s27 + $0x18] sm:$0xff]  ;;  %v85_v17 = vld [vmem:[%s10424_s27 + $0x20] sm:$0xff]  ;;  %7382 = vmatprep.subr.msk.bf16.mxu1 %vm134_vm0, %v5880_v10  ;;  %v105_v18 = vpack.c.bf16 %v83_v14, %v82_v13  ;;  %v7806_v19 = vpack.c.bf16 %v82_v13, %v81_v6 }
  0x15   :  { %v106_v20 = vpack.c.bf16 %v85_v17, %v84_v16  ;;  %v7809_v21 = vpack.c.bf16 %v84_v16, %v83_v14  ;;  %v86_v22 = vld [vmem:[%s10424_s27 + $0x28] sm:$0xff]  ;;  %v87_v23 = vld [vmem:[%s10424_s27 + $0x30] sm:$0xff]  ;;  %v88_v24 = vld [vmem:[%s10424_s27 + $0x38] sm:$0xff]  ;;  %v723_v35 = vsel %vm134_vm0, %v5896_v15, 0 }
  0x16   :  { %6712 = vmatmul.mubr.bf16.vlgmr.msra.gmra.mxu0 %v10283_v2  ;;  %6730 = vmatmul.mubr.bf16.vlgmr.msra.gmra.mxu1 %v10283_v2  ;;  %v89_v25 = vld [vmem:[%s10424_s27 + $0x40] sm:$0xff]  ;;  %v107_v26 = vpack.c.bf16 %v87_v23, %v86_v22  ;;  %v7829_v27 = vpack.c.bf16 %v86_v22, %v85_v17  ;;  %v7831_v29 = vpack.c.bf16 %v88_v24, %v87_v23  ;;  %v90_v30 = vld [vmem:[%s10424_s27 + $0x48] sm:$0xff]  ;;  %v91_v31 = vld [vmem:[%s10424_s27 + $0x50] sm:$0xff] }
  0x17   :  { %6746 = vmatpush3.bf16.msra.mxu0 %v357_v9  ;;  %6715 = vmatprep.mubr.msk.bf16.mxu0 %vm112_vm1, %v7773_v8  ;;  %v108_v28 = vpack.c.bf16 %v89_v25, %v88_v24  ;;  %v109_v32 = vpack.c.bf16 %v91_v31, %v90_v30  ;;  %v102_v33 = vpack.c.bf16 %v90_v30, %v89_v25  ;;  %v5905_v36 = vld [vmem:[%s10423_s22 + $0xc] sm:$0x3]  ;;  %v92_v37 = vld [vmem:[%s10424_s27 + $0x58] sm:$0xff]  ;;  %v93_v38 = vld [vmem:[%s10424_s27 + $0x60] sm:$0xff] }
  0x18   :  { %6733 = vmatprep.mubr.bf16.mxu1 %v10283_v2  ;;  %6764 = vmatpush3.bf16.msra.mxu1 %v479_v11  ;;  %v350_v39 = vpack.c.bf16 %v92_v37, %v91_v31  ;;  %v472_v40 = vpack.c.bf16 %v93_v38, %v92_v37  ;;  %v845_v41 = vsel %vm134_vm0, %v5905_v36, 0  ;;  %v94_v42 = vld [vmem:[%s10424_s27 + $0x68] sm:$0xff]  ;;  %v95_v43 = vld [vmem:[%s10424_s27 + $0x70] sm:$0xff]  ;;  %v96_v46 = vld [vmem:[%s10424_s27 + $0x78] sm:$0xff] }
  0x19   :  { %7383 = vmatprep.subr.msk.bf16.mxu0 %vm134_vm0, %v5888_v12  ;;  %7384 = vmatprep.subr.msk.bf16.mxu1 %vm134_vm0, %v5896_v15  ;;  %v594_v44 = vpack.c.bf16 %v94_v42, %v93_v38  ;;  %v716_v45 = vpack.c.bf16 %v95_v43, %v94_v42  ;;  %v838_v47 = vpack.c.bf16 %v96_v46, %v95_v43  ;;  %v7433_v48 = vld [vmem:[%s10425_s8 + $0x18] sm:$0xff]   ;;  %v7434_v49 = vld [vmem:[%s10425_s8 + $0x10] sm:$0xff]   ;;  %v7435_v50 = vld [vmem:[%s10425_s8 + $0x8] sm:$0xff]  }
  0x1a   :  { %v7436_v51 = vld [vmem:[%s10425_s8] sm:$0xff]   ;;  %v7437_v52 = vld [vmem:[%s10425_s8 + $0x28] sm:$0xff]   ;;  %v7439_v54 = vld [vmem:[%s10425_s8 + $0x38] sm:$0xff]  }
  0x1b   :  { %v7438_v53 = vld [vmem:[%s10425_s8 + $0x20] sm:$0xff]   ;;  %v7440_v59 = vld [vmem:[%s10425_s8 + $0x30] sm:$0xff]   ;;  %v7971_v0 = vld [vmem:[%s10425_s8 + $0x48] sm:$0xff]  }
  0x1c   :  { %10426 = vst [vmem:[#allocation5_spill] sm:$0xff] %v7971_v0  ;;  %v8009_v31 = vld [vmem:[%s10425_s8 + $0x58] sm:$0xff]  }
  0x1d   :  { %10429 = vst [vmem:[#allocation8_spill] sm:$0xff] %v8009_v31 }
  0x1e   :  { %6716 = vmatmul.mubr.msk.bf16.gmra.mxu0 %vm112_vm1, %v105_v18  ;;  %6734 = vmatmul.mubr.msk.bf16.gmra.mxu1 %vm112_vm1, %v7806_v19 }
  0x1f   :  { %6719 = vmatprep.mubr.msk.bf16.mxu0 %vm112_vm1, %v106_v20  ;;  %6737 = vmatprep.mubr.msk.bf16.mxu1 %vm112_vm1, %v7809_v21 }
  0x26   :  { %6720 = vmatmul.mubr.msk.bf16.gmra.mxu0 %vm112_vm1, %v107_v26  ;;  %6738 = vmatmul.mubr.msk.bf16.gmra.mxu1 %vm112_vm1, %v7829_v27 }
  0x27   :  { %6723 = vmatprep.mubr.msk.bf16.mxu0 %vm112_vm1, %v108_v28  ;;  %6741 = vmatprep.mubr.msk.bf16.mxu1 %vm112_vm1, %v7831_v29 }
  0x2e   :  { %6724 = vmatmul.mubr.msk.bf16.gmra.mxu0 %vm112_vm1, %v109_v32  ;;  %6742 = vmatmul.mubr.msk.bf16.gmra.mxu1 %vm112_vm1, %v102_v33 }
  0x2f   :  { %6747 = vmatprep.mubr.bf16.mxu0 %v10283_v2  ;;  %6765 = vmatprep.mubr.bf16.mxu1 %v10283_v2 }
  0x36   :  { %6748 = vmatmul.mubr.bf16.vlgmr.msra.gmra.mxu0 %v10283_v2  ;;  %6766 = vmatmul.mubr.msk.bf16.vlgmr.msra.gmra.mxu1 %vm112_vm1, %v7773_v8 }
  0x37   :  { %6782 = vmatpush3.bf16.msra.mxu0 %v601_v34  ;;  %6751 = vmatprep.mubr.msk.bf16.mxu0 %vm112_vm1, %v7806_v19 }
  0x38   :  { %6769 = vmatprep.mubr.msk.bf16.mxu1 %vm112_vm1, %v105_v18  ;;  %6800 = vmatpush3.bf16.msra.mxu1 %v723_v35 }
  0x39   :  { %7385 = vmatprep.subr.msk.bf16.mxu0 %vm134_vm0, %v5905_v36  ;;  %6835 = vmatprep.subr.bf16.mxu1 %v7433_v48 }
  0x3e   :  { %6752 = vmatmul.mubr.msk.bf16.gmra.mxu0 %vm112_vm1, %v7809_v21  ;;  %6770 = vmatmul.mubr.msk.bf16.gmra.mxu1 %vm112_vm1, %v106_v20 }
  0x3f   :  { %6755 = vmatprep.mubr.msk.bf16.mxu0 %vm112_vm1, %v7829_v27  ;;  %6773 = vmatprep.mubr.msk.bf16.mxu1 %vm112_vm1, %v107_v26 }
  0x46   :  { %6756 = vmatmul.mubr.msk.bf16.gmra.mxu0 %vm112_vm1, %v7831_v29  ;;  %6774 = vmatmul.mubr.msk.bf16.gmra.mxu1 %vm112_vm1, %v108_v28 }
  0x47   :  { %6759 = vmatprep.mubr.msk.bf16.mxu0 %vm112_vm1, %v102_v33  ;;  %6777 = vmatprep.mubr.msk.bf16.mxu1 %vm112_vm1, %v109_v32 }
  0x4e   :  { %6760 = vmatmul.mubr.msk.bf16.gmra.mxu0 %vm112_vm1, %v350_v39  ;;  %6778 = vmatmul.mubr.msk.bf16.gmra.mxu1 %vm112_vm1, %v472_v40 }
  0x4f   :  { %6783 = vmatprep.mubr.bf16.mxu0 %v10283_v2  ;;  %6801 = vmatprep.mubr.msk.bf16.mxu1 %vm112_vm1, %v7773_v8 }
  0x56   :  { %6784 = vmatmul.mubr.msk.bf16.vlgmr.msra.gmra.mxu0 %vm112_vm1, %v7806_v19  ;;  %6802 = vmatmul.mubr.msk.bf16.vlgmr.msra.gmra.mxu1 %vm112_vm1, %v105_v18 }
  0x57   :  { %6818 = vmatpush3.bf16.msra.mxu0 %v845_v41  ;;  %6787 = vmatprep.mubr.msk.bf16.mxu0 %vm112_vm1, %v7809_v21 }
  0x58   :  { %6805 = vmatprep.mubr.msk.bf16.mxu1 %vm112_vm1, %v106_v20  ;;  %6836 = vmatpush3.bf16.msra.mxu1 %v7433_v48 }
  0x59   :  { %6837 = vmatprep.subr.bf16.mxu1 %v7434_v49  ;;  %6855 = vmatprep.subr.bf16.mxu0 %v7435_v50 }
  0x5c   :  { %6838 = vmatpush3.bf16.msra.mxu1 %v7434_v49 }
  0x5d   :  { %6875 = vmatprep.subr.bf16.mxu1 %v7437_v52 }
  0x5e   :  { %6788 = vmatmul.mubr.msk.bf16.gmra.mxu0 %vm112_vm1, %v7829_v27  ;;  %6806 = vmatmul.mubr.msk.bf16.gmra.mxu1 %vm112_vm1, %v107_v26 }
  0x5f   :  { %6791 = vmatprep.mubr.msk.bf16.mxu0 %vm112_vm1, %v7831_v29  ;;  %6809 = vmatprep.mubr.msk.bf16.mxu1 %vm112_vm1, %v108_v28 }
  0x66   :  { %6792 = vmatmul.mubr.msk.bf16.gmra.mxu0 %vm112_vm1, %v102_v33  ;;  %6810 = vmatmul.mubr.msk.bf16.gmra.mxu1 %vm112_vm1, %v109_v32 }
  0x67   :  { %6795 = vmatprep.mubr.msk.bf16.mxu0 %vm112_vm1, %v350_v39  ;;  %6813 = vmatprep.mubr.msk.bf16.mxu1 %vm112_vm1, %v472_v40 }
  0x6e   :  { %6796 = vmatmul.mubr.msk.bf16.gmra.mxu0 %vm112_vm1, %v594_v44  ;;  %6814 = vmatmul.mubr.msk.bf16.gmra.mxu1 %vm112_vm1, %v716_v45 }
  0x6f   :  { %6819 = vmatprep.mubr.msk.bf16.mxu0 %vm112_vm1, %v7806_v19  ;;  %6839 = vmatprep.mubr.bf16.mxu1 %v10283_v2 }
  0x76   :  { %6820 = vmatmul.mubr.msk.bf16.vlgmr.msra.gmra.mxu0 %vm112_vm1, %v7809_v21  ;;  %6840 = vmatmul.mubr.bf16.vlgmr.msra.gmra.mxu1 %v10283_v2 }
  0x77   :  { %6823 = vmatprep.mubr.msk.bf16.mxu0 %vm112_vm1, %v7829_v27  ;;  %6856 = vmatpush3.bf16.msra.mxu0 %v7435_v50 }
  0x78   :  { %6857 = vmatprep.subr.bf16.mxu0 %v7436_v51  ;;  %6876 = vmatpush3.bf16.msra.mxu1 %v7437_v52 }
  0x79   :  { %6877 = vmatprep.subr.bf16.mxu1 %v7438_v53 }
  0x7b   :  { %6858 = vmatpush3.bf16.msra.mxu0 %v7436_v51 }
  0x7c   :  { %6878 = vmatpush3.bf16.msra.mxu1 %v7438_v53  ;;  %6895 = vmatprep.subr.bf16.mxu0 %v7439_v54 }
  0x7d   :  { %6915 = vmatprep.subr.bf16.mxu1 %v7971_v0 }
  0x7e   :  { %6824 = vmatmul.mubr.msk.bf16.gmra.mxu0 %vm112_vm1, %v7831_v29 }
  0x7f   :  { %6827 = vmatprep.mubr.msk.bf16.mxu0 %vm112_vm1, %v102_v33 }
  0x86   :  { %6828 = vmatmul.mubr.msk.bf16.gmra.mxu0 %vm112_vm1, %v350_v39 }
  0x87   :  { %6831 = vmatprep.mubr.msk.bf16.mxu0 %vm112_vm1, %v594_v44 }
  0x8e   :  { %6832 = vmatmul.mubr.msk.bf16.gmra.mxu0 %vm112_vm1, %v838_v47 }
  0x8f   :  { %6859 = vmatprep.mubr.bf16.mxu0 %v10283_v2 }
  0x96   :  { %6860 = vmatmul.mubr.bf16.vlgmr.msra.gmra.mxu0 %v10283_v2 }
  0x97   :  { %6863 = vmatprep.mubr.bf16.mxu0 %v10283_v2  ;;  %6896 = vmatpush3.bf16.msra.mxu0 %v7439_v54 }
  0x98   :  { %6897 = vmatprep.subr.bf16.mxu0 %v7440_v59 }
  0x9b   :  { %6898 = vmatpush3.bf16.msra.mxu0 %v7440_v59 }
  0x9c   :  { %6935 = vmatprep.subr.bf16.mxu0 %v8009_v31 }
  0xd6   :  { %v7949_v55 = vpop.f32.mrf.mxu0  ;;  %v7951_v56 = vpop.f32.mrf.mxu1 }
  0xd8   :  { %v7953_v57 = vpop.f32.mrf.mxu0  ;;  %v7955_v58 = vpop.f32.mrf.mxu1 }
  0xda   :  { %v7960_v60 = vpop.f32.mrf.mxu0  ;;  %v7962_v61 = vpop.f32.mrf.mxu1 }
  0xdc   :  { %v7964_v62 = vpop.f32.mrf.mxu0  ;;  %v7966_v63 = vpop.f32.mrf.mxu1 }
  0xde   :  { %v7973_v1 = vpop.f32.mrf.mxu0  ;;  %v7975_v3 = vpop.f32.mrf.mxu1 }
  0xe0   :  { %v7978_v4 = vpop.f32.mrf.mxu0  ;;  %v7980_v5 = vpop.f32.mrf.mxu1 }
  0xe2   :  { %v7982_v6 = vpop.f32.mrf.mxu0  ;;  %v7984_v8 = vpop.f32.mrf.mxu1 }
  0xe4   :  { %v7986_v9 = vpop.f32.mrf.mxu0  ;;  %v7988_v10 = vpop.f32.mrf.mxu1 }
  0xe6   :  { %v7990_v11 = vpop.f32.mrf.mxu0  ;;  %v7992_v12 = vpop.f32.mrf.mxu1 }
  0xe8   :  { %v7994_v13 = vpop.f32.mrf.mxu0  ;;  %v7996_v14 = vpop.f32.mrf.mxu1 }
  0xea   :  { %v6722_v15 = vpop.f32.mrf.mxu0  ;;  %v6740_v16 = vpop.f32.mrf.mxu1 }
  0xeb   :  { %v331_v17 = vadd.f32 %v6740_v16, %v6722_v15 }
  0xec   :  { %v7998_v18 = vpop.f32.mrf.mxu0  ;;  %v8000_v19 = vpop.f32.mrf.mxu1 }
  0xee   :  { %v6725_v20 = vpop.f32.mrf.mxu0  ;;  %v6743_v21 = vpop.f32.mrf.mxu1 }
  0xef   :  { %v344_v22 = vadd.f32 %v6743_v21, %v6725_v20 }
  0xf0   :  { %v220_v23 = vpop.f32.mrf.mxu0  ;;  %v335_v24 = vpop.f32.mrf.mxu1 }
  0xf1   :  { %v336_v25 = vadd.f32 %v335_v24, %v220_v23 }
  0xf2   :  { %v6726_v26 = vpop.f32.mrf.mxu0  ;;  %v6744_v27 = vpop.f32.mrf.mxu1 }
  0xf3   :  { %v347_v28 = vadd.f32 %v6744_v27, %v6726_v26 }
  0xf4   :  { %v8002_v29 = vpop.f32.mrf.mxu0  ;;  %v8004_v30 = vpop.f32.mrf.mxu1 }
  0xf5   :  { %10427 = vst [vmem:[#allocation6_spill] sm:$0xff] %v8002_v29  ;;  %10428 = vst [vmem:[#allocation7_spill] sm:$0xff] %v8004_v30 }
  0xf6   :  { %v6749_v32 = vpop.f32.mrf.mxu0  ;;  %v8011_v33 = vpop.f32.mrf.mxu1 }
  0xf8   :  { %v393_v34 = vpop.f32.mrf.mxu0  ;;  %v8014_v35 = vpop.f32.mrf.mxu1 }
  0xfa   :  { %v6750_v36 = vpop.f32.mrf.mxu0  ;;  %v8016_v37 = vpop.f32.mrf.mxu1 }
  0xfc   :  { %v8018_v38 = vpop.f32.mrf.mxu0  ;;  %v8020_v39 = vpop.f32.mrf.mxu1 }
  0xfe   :  { %v8022_v40 = vpop.f32.mrf.mxu0  ;;  %v8024_v41 = vpop.f32.mrf.mxu1 }
 0x100   :  { %v8026_v42 = vpop.f32.mrf.mxu0  ;;  %v8028_v43 = vpop.f32.mrf.mxu1 }
 0x102   :  { %v8030_v44 = vpop.f32.mrf.mxu0  ;;  %v8032_v45 = vpop.f32.mrf.mxu1 }
 0x104   :  { %v8034_v46 = vpop.f32.mrf.mxu0  ;;  %v8036_v47 = vpop.f32.mrf.mxu1 }
 0x106   :  { %v8038_v48 = vpop.f32.mrf.mxu0  ;;  %v8040_v49 = vpop.f32.mrf.mxu1 }
 0x107   :  { %10430 = vst [vmem:[#allocation9_spill] sm:$0xff] %v8040_v49 }
 0x108   :  { %v8042_v50 = vpop.f32.mrf.mxu0  ;;  %v8044_v51 = vpop.f32.mrf.mxu1 }
 0x109   :  { %10431 = vst [vmem:[#allocation10_spill] sm:$0xff] %v8044_v51 }
 0x10a   :  { %v6758_v52 = vpop.f32.mrf.mxu0  ;;  %v8046_v53 = vpop.f32.mrf.mxu1 }
 0x10b   :  { %10432 = vst [vmem:[#allocation11_spill] sm:$0xff] %v8046_v53  ;;  %v8048_v54 = vadd.f32 %v6758_v52, %v331_v17 }
 0x10c   :  { %v8050_v59 = vpop.f32.mrf.mxu0  ;;  %v8052_v15 = vpop.f32.mrf.mxu1 }
 0x10d   :  { %10433 = vst [vmem:[#allocation12_spill] sm:$0xff] %v8048_v54  ;;  %10434 = vst [vmem:[#allocation13_spill] sm:$0xff] %v8050_v59 }
 0x10e   :  { %10435 = vst [vmem:[#allocation14_spill] sm:$0xff] %v8052_v15  ;;  %v6761_v16 = vpop.f32.mrf.mxu0  ;;  %v6779_v20 = vpop.f32.mrf.mxu1 }
 0x10f   :  { %v470_v21 = vadd.f32 %v6761_v16, %v344_v22 }
 0x110   :  { %v441_v23 = vpop.f32.mrf.mxu0  ;;  %v8054_v24 = vpop.f32.mrf.mxu1 }
 0x111   :  { %10436 = vst [vmem:[#allocation15_spill] sm:$0xff] %v8054_v24  ;;  %v8056_v26 = vadd.f32 %v441_v23, %v336_v25  ;;  %v592_v27 = vadd.f32 %v6779_v20, %v470_v21 }
 0x112   :  { %v6762_v2 = vpop.f32.mrf.mxu0  ;;  %v6780_v7 = vpop.f32.mrf.mxu1 }
 0x113   :  { %10437 = vst [vmem:[#allocation16_spill] sm:$0xff] %v8056_v26  ;;  %v471_v31 = vadd.f32 %v6762_v2, %v347_v28 }
 0x114   :  { %v8058_v0 = vpop.f32.mrf.mxu0  ;;  %v8060_v17 = vpop.f32.mrf.mxu1 }
 0x115   :  { %10438 = vst [vmem:[#allocation17_spill] sm:$0xff] %v8058_v0  ;;  %10439 = vst [vmem:[#allocation18_spill] sm:$0xff] %v8060_v17  ;;  %v593_v52 = vadd.f32 %v6780_v7, %v471_v31  ;;  %v296_v31 = vadd.f32 %v7951_v56, %v7949_v55  ;;  %v288_v0 = vadd.f32 %v7955_v58, %v7953_v57 }
 0x116   :  { %v6785_v30 = vpop.f32.mrf.mxu0  ;;  %v6803_v29 = vpop.f32.mrf.mxu1 }
 0x117   :  { %v458_v26 = vadd.f32 %v6749_v32, %v296_v31 }
 0x118   :  { %v637_v15 = vpop.f32.mrf.mxu0  ;;  %v759_v53 = vpop.f32.mrf.mxu1 }
 0x119   :  { %v580_v55 = vadd.f32 %v8011_v33, %v458_v26 }
 0x11a   :  { %v6786_v54 = vpop.f32.mrf.mxu0  ;;  %v6804_v16 = vpop.f32.mrf.mxu1 }
 0x11b   :  { %v702_v31 = vadd.f32 %v6785_v30, %v580_v55 }
 0x11c   :  { %v640_v22 = vpop.f32.mrf.mxu0  ;;  %v762_v24 = vpop.f32.mrf.mxu1 }
 0x11e   :  { %v6789_v59 = vpop.f32.mrf.mxu0  ;;  %v8064_v20 = vpop.f32.mrf.mxu1 }
 0x120   :  { %v653_v25 = vpop.f32.mrf.mxu0  ;;  %v8070_v21 = vpop.f32.mrf.mxu1 }
 0x121   :  { %10443 = vst [vmem:[#allocation22_spill] sm:$0xff] %v8070_v21 }
 0x122   :  { %v8062_v23 = vpop.f32.mrf.mxu0  ;;  %v8080_v51 = vpop.f32.mrf.mxu1 }
 0x123   :  { %10440 = vst [vmem:[#allocation19_spill] sm:$0xff] %v8062_v23 }
 0x124   :  { %v8066_v2 = vpop.f32.mrf.mxu0  ;;  %v8091_v23 = vpop.f32.mrf.mxu1 }
 0x125   :  { %10441 = vst [vmem:[#allocation20_spill] sm:$0xff] %v8066_v2  ;;  %v456_v2 = vadd.f32 %v393_v34, %v288_v0 }
 0x126   :  { %v8068_v28 = vpop.f32.mrf.mxu0 }
 0x127   :  { %10442 = vst [vmem:[#allocation21_spill] sm:$0xff] %v8068_v28  ;;  %v299_v28 = vadd.f32 %v7962_v61, %v7960_v60  ;;  %v578_v58 = vadd.f32 %v8014_v35, %v456_v2  ;;  %v312_v60 = vadd.f32 %v7975_v3, %v7973_v1  ;;  %v304_v61 = vadd.f32 %v7980_v5, %v7978_v4  ;;  %v8106_v35 = vpop.f32.mrf.mxu1 }
 0x128   :  { %v8072_v7 = vpop.f32.mrf.mxu0  ;;  %v824_v1 = vadd.f32 %v6803_v29, %v702_v31  ;;  %v315_v4 = vadd.f32 %v7984_v8, %v7982_v6  ;;  %v307_v5 = vadd.f32 %v7988_v10, %v7986_v9  ;;  %v8124_v6 = vld [vmem:[%s10446_s0] ss:$0 sm:$0xff] }
 0x129   :  { %10444 = vst [vmem:[#allocation23_spill] sm:$0xff] %v8072_v7  ;;  %v291_v7 = vadd.f32 %v7966_v63, %v7964_v62  ;;  %v459_v56 = vadd.f32 %v6750_v36, %v299_v28  ;;  %v700_v0 = vadd.f32 %v637_v15, %v578_v58  ;;  %v462_v34 = vadd.f32 %v8022_v40, %v312_v60  ;;  %v8119_v29 = vpop.f32.mrf.mxu1  ;;  %v10448_v58 = vld [vmem:[#allocation22_spill] sm:$0xff] }
 0x12a   :  { %v8076_v17 = vpop.f32.mrf.mxu0  ;;  %v460_v36 = vadd.f32 %v8026_v42, %v304_v61  ;;  %v10450_v60 = vmov 0.0  }
 0x12b   :  { %10445 = vst [vmem:[#allocation24_spill] sm:$0xff] %v8076_v17  ;;  %v457_v32 = vadd.f32 %v8018_v38, %v291_v7  ;;  %v581_v63 = vadd.f32 %v8016_v37, %v459_v56  ;;  %v822_v15 = vadd.f32 %v759_v53, %v700_v0  ;;  %v584_v42 = vadd.f32 %v8024_v41, %v462_v34  ;;  %v10447_v56 = vld [vmem:[#allocation19_spill] sm:$0xff]  ;;  %v10452_v0 = vld [vmem:[#allocation10_spill] sm:$0xff] }
 0x12c   :  { %v8082_v49 = vpop.f32.mrf.mxu0  ;;  %v328_v41 = vadd.f32 %v7992_v12, %v7990_v11  ;;  %v8136_v12 = vpop.f32.mrf.mxu1 }
 0x12d   :  { %v579_v30 = vadd.f32 %v8020_v39, %v457_v32  ;;  %v703_v3 = vadd.f32 %v6786_v54, %v581_v63  ;;  %v461_v39 = vadd.f32 %v8034_v46, %v307_v5  ;;  %v10449_v32 = vld [vmem:[#allocation20_spill] sm:$0xff] }
 0x12e   :  { %v6797_v21 = vpop.f32.mrf.mxu0 }
 0x12f   :  { %v8089_v17 = vadd.f32 %v6797_v21, %v592_v27  ;;  %v701_v26 = vadd.f32 %v640_v22, %v579_v30  ;;  %v463_v27 = vadd.f32 %v8030_v44, %v315_v4  ;;  %v825_v9 = vadd.f32 %v6804_v16, %v703_v3 }
 0x130   :  { %v8093_v57 = vpop.f32.mrf.mxu0  ;;  %v320_v44 = vadd.f32 %v7996_v14, %v7994_v13  ;;  %v466_v16 = vadd.f32 %v8038_v48, %v328_v41  ;;  %v583_v7 = vadd.f32 %v8036_v47, %v461_v39  ;;  %v323_v14 = vadd.f32 %v8000_v19, %v7998_v18  ;;  %v10451_v19 = vld [vmem:[#allocation9_spill] sm:$0xff]  ;;  %v10456_v41 = vld [vmem:[#allocation12_spill] sm:$0xff] }
 0x131   :  { %v823_v54 = vadd.f32 %v762_v24, %v701_v26  ;;  %v585_v21 = vadd.f32 %v8032_v45, %v463_v27  ;;  %v10454_v26 = vld [vmem:[#allocation21_spill] sm:$0xff] }
 0x132   :  { %v6798_v62 = vpop.f32.mrf.mxu0  ;;  %v464_v11 = vadd.f32 %v8042_v50, %v320_v44  ;;  %v705_v47 = vadd.f32 %v10449_v32, %v583_v7  ;;  %v588_v63 = vadd.f32 %v10451_v19, %v466_v16  ;;  %v10457_v44 = vld [vmem:[#allocation11_spill] sm:$0xff]  ;;  %v10464_v19 = vld [vmem:[#allocation17_spill] sm:$0xff] }
 0x133   :  { %v8102_v33 = vadd.f32 %v6798_v62, %v593_v52  ;;  %v582_v52 = vadd.f32 %v8028_v43, %v460_v36  ;;  %v706_v43 = vadd.f32 %v6789_v59, %v584_v42  ;;  %v707_v45 = vadd.f32 %v10447_v56, %v585_v21  ;;  %v794_v36 = vpop.f32.mrf.mxu1  ;;  %v10459_v21 = vld [vmem:[#allocation6_spill] sm:$0xff]  ;;  %v10460_v16 = vld [vmem:[#allocation7_spill] sm:$0xff] }
 0x134   :  { %v8108_v38 = vpop.f32.mrf.mxu0  ;;  %v586_v34 = vadd.f32 %v10452_v0, %v464_v11  ;;  %v827_v42 = vadd.f32 %v8091_v23, %v705_v47  ;;  %v339_v7 = vadd.f32 %v10460_v16, %v10459_v21 }
 0x135   :  { %v704_v53 = vadd.f32 %v653_v25, %v582_v52  ;;  %v828_v55 = vadd.f32 %v8064_v20, %v706_v43  ;;  %v10455_v52 = vld [vmem:[#allocation23_spill] sm:$0xff]  ;;  %v589_v43 = vadd.f32 %v10457_v44, %v10456_v41 }
 0x136   :  { %v6821_v37 = vpop.f32.mrf.mxu0  ;;  %v708_v39 = vadd.f32 %v10455_v52, %v586_v34 }
 0x137   :  { %v946_v40 = vadd.f32 %v6821_v37, %v824_v1  ;;  %v826_v48 = vadd.f32 %v10448_v58, %v704_v53  ;;  %v10453_v1 = vld [vmem:[#allocation13_spill] sm:$0xff]  ;;  %v6815_v53 = vpop.f32.mrf.mxu1  ;;  %v10462_v58 = vld [vmem:[#allocation16_spill] sm:$0xff] }
 0x138   :  { %v881_v8 = vpop.f32.mrf.mxu0  ;;  %v465_v3 = vadd.f32 %v10453_v1, %v323_v14 }
 0x139   :  { %v944_v10 = vadd.f32 %v881_v8, %v822_v15  ;;  %v969_v22 = vadd.f32 %v8124_v6, %v946_v40  ;;  %v829_v15 = vadd.f32 %v8080_v51, %v707_v45  ;;  %v710_v40 = vadd.f32 %v10454_v26, %v588_v63 }
 0x13a   :  { %v6822_v46 = vpop.f32.mrf.mxu0  ;;  %v469_v63 = vadd.f32 %v10464_v19, %v339_v7  ;;  %v7444_v19 = vld [vmem:[%s10425_s8 + $0x50] sm:$0xff]  }
 0x13b   :  { %v967_v2 = vadd.f32 %v8124_v6, %v944_v10  ;;  %v947_v28 = vadd.f32 %v6822_v46, %v825_v9  ;;  %v985_v50 = vmax.f32 %v969_v22, 0.0  ;;  %v10458_v22 = vld [vmem:[#allocation14_spill] sm:$0xff]  ;;  %v832_v11 = vadd.f32 %v8106_v35, %v710_v40  ;;  %v807_v35 = vpop.f32.mrf.mxu1 }
 0x13c   :  { %v884_v13 = vpop.f32.mrf.mxu0 }
 0x13d   :  { %v983_v59 = vmax.f32 %v967_v2, 0.0  ;;  %v970_v24 = vadd.f32 %v8124_v6, %v947_v28  ;;  %v945_v25 = vadd.f32 %v884_v13, %v823_v54  ;;  %v587_v2 = vadd.f32 %v10458_v22, %v465_v3  ;;  %v10461_v13 = vld [vmem:[#allocation24_spill] sm:$0xff] }
 0x13e   :  { %v6825_v31 = vpop.f32.mrf.mxu0  ;;  %v711_v14 = vadd.f32 %v10461_v13, %v589_v43 }
 0x13f   :  { %v8146_v61 = vpack.c.bf16 %v983_v59, %v10450_v60  ;;  %v986_v62 = vmax.f32 %v970_v24, 0.0  ;;  %v968_v18 = vadd.f32 %v8124_v6, %v945_v25  ;;  %v950_v20 = vadd.f32 %v6825_v31, %v828_v55 }
 0x140   :  { %v897_v30 = vpop.f32.mrf.mxu0  ;;  %v830_v25 = vadd.f32 %v8119_v29, %v708_v39  ;;  %v709_v55 = vadd.f32 %v8082_v49, %v587_v2  ;;  %v833_v49 = vadd.f32 %v8136_v12, %v711_v14  ;;  %v836_v12 = vadd.f32 %v6815_v53, %v8089_v17 }
 0x141   :  { %v8152_v4 = vpack.c.bf16 %v986_v62, %v985_v50  ;;  %v984_v5 = vmax.f32 %v968_v18, 0.0  ;;  %v948_v37 = vadd.f32 %v897_v30, %v826_v48  ;;  %6843 = vmatprep.mubr.msk.bf16.mxu1 %vm1031_vm2, %v8146_v61  ;;  %v973_v46 = vadd.f32 %v8124_v6, %v950_v20  ;;  %v10463_v48 = vld [vmem:[#allocation15_spill] sm:$0xff] }
 0x142   :  { %v6826_v27 = vpop.f32.mrf.mxu0  ;;  %v590_v32 = vadd.f32 %v10463_v48, %v10462_v58  ;;  %v831_v30 = vadd.f32 %v794_v36, %v709_v55  ;;  %v10466_v55 = vmov 0.0|0.0  }
 0x143   :  { %v8160_v8 = vpack.c.bf16 %v984_v5, %v983_v59  ;;  %v8162_v9 = vpack.c.bf16 %v985_v50, %v984_v5  ;;  %v971_v10 = vadd.f32 %v8124_v6, %v948_v37  ;;  %v951_v51 = vadd.f32 %v6826_v27, %v829_v15  ;;  %v6816_v37 = vpop.f32.mrf.mxu1 }
 0x144   :  { %v900_v54 = vpop.f32.mrf.mxu0  ;;  %v989_v47 = vmax.f32 %v973_v46, 0.0  ;;  %v712_v29 = vadd.f32 %v8093_v57, %v590_v32 }
 0x145   :  { %v987_v23 = vmax.f32 %v971_v10, 0.0  ;;  %v949_v28 = vadd.f32 %v900_v54, %v827_v42  ;;  %6844 = vmatmul.mubr.msk.bf16.gmra.mxu1 %vm1031_vm2, %v8162_v9  ;;  %6864 = vmatmul.mubr.msk.bf16.gmra.mxu0 %vm1031_vm2, %v8160_v8  ;;  %v974_v59 = vadd.f32 %v8124_v6, %v951_v51  ;;  %v10465_v42 = vld [vmem:[#allocation18_spill] sm:$0xff]  ;;  %v810_v53 = vpop.f32.mrf.mxu1 }
 0x146   :  { %v6829_v24 = vpop.f32.mrf.mxu0  ;;  %6867 = vmatprep.mubr.msk.bf16.mxu0 %vm1031_vm2, %v8152_v4  ;;  %v591_v27 = vadd.f32 %v10465_v42, %v469_v63  ;;  %v834_v36 = vadd.f32 %v807_v35, %v712_v29  ;;  %v10468_v63 = vld [vmem:[#allocation8_spill] sm:$0xff]  ;;  %v10290_v29 = vmov 0  }
 0x147   :  { %v8182_v56 = vpack.c.bf16 %v987_v23, %v986_v62  ;;  %v972_v45 = vadd.f32 %v8124_v6, %v949_v28  ;;  %v990_v31 = vmax.f32 %v974_v59, 0.0  ;;  %v954_v50 = vadd.f32 %v6829_v24, %v832_v11 }
 0x148   :  { %v913_v18 = vpop.f32.mrf.mxu0  ;;  %v713_v41 = vadd.f32 %v8108_v38, %v591_v27  ;;  %v837_v28 = vadd.f32 %v6816_v37, %v8102_v33 }
 0x149   :  { %v988_v0 = vmax.f32 %v972_v45, 0.0  ;;  %v952_v34 = vadd.f32 %v913_v18, %v830_v25  ;;  %6847 = vmatprep.mubr.msk.bf16.mxu1 %vm1031_vm2, %v8182_v56  ;;  %v8192_v62 = vpack.c.bf16 %v990_v31, %v989_v47  ;;  %v977_v15 = vadd.f32 %v8124_v6, %v954_v50  ;;  %v7442_v18 = vld [vmem:[%s10425_s8 + $0x40] sm:$0xff]  }
 0x14a   :  { %v6830_v20 = vpop.f32.mrf.mxu0  ;;  %v835_v16 = vadd.f32 %v810_v53, %v713_v41 }
 0x14b   :  { %v8194_v1 = vpack.c.bf16 %v988_v0, %v987_v23  ;;  %v8196_v3 = vpack.c.bf16 %v989_v47, %v988_v0  ;;  %v975_v5 = vadd.f32 %v8124_v6, %v952_v34  ;;  %v955_v26 = vadd.f32 %v6830_v20, %v833_v49  ;;  %v7445_v0 = vld [vmem:[%s10425_s8 + $0x68] sm:$0xff]   ;;  %v7446_v34 = vld [vmem:[%s10425_s8 + $0x60] sm:$0xff]   ;;  %v8335_v20 = vpop.f32.mrf.mxu1 }
 0x14c   :  { %v916_v40 = vpop.f32.mrf.mxu0  ;;  %v993_v46 = vmax.f32 %v977_v15, 0.0  ;;  %v7454_v49 = vld [vmem:[%s10469_s28 + $0x8] ss:$12 sps:$4 sm:$0xff]   ;;  %v8350_v15 = vld [vmem:[%s10261_s9 + $0x2] sm:$0x3] }
 0x14d   :  { %v991_v57 = vmax.f32 %v975_v5, 0.0  ;;  %v953_v52 = vadd.f32 %v916_v40, %v831_v30  ;;  %6848 = vmatmul.mubr.msk.bf16.gmra.mxu1 %vm1031_vm2, %v8196_v3  ;;  %6868 = vmatmul.mubr.msk.bf16.gmra.mxu0 %vm1031_vm2, %v8194_v1  ;;  %v978_v39 = vadd.f32 %v8124_v6, %v955_v26 }
 0x14e   :  { %v6833_v10 = vpop.f32.mrf.mxu0  ;;  %6871 = vmatprep.mubr.msk.bf16.mxu0 %vm1031_vm2, %v8192_v62 }
 0x14f   :  { %v8210_v44 = vpack.c.bf16 %v991_v57, %v990_v31  ;;  %v976_v17 = vadd.f32 %v8124_v6, %v953_v52  ;;  %v958_v43 = vadd.f32 %v6833_v10, %v836_v12  ;;  %v994_v51 = vmax.f32 %v978_v39, 0.0 }
 0x150   :  { %v929_v54 = vpop.f32.mrf.mxu0 }
 0x151   :  { %v992_v22 = vmax.f32 %v976_v17, 0.0  ;;  %v981_v2 = vadd.f32 %v8124_v6, %v958_v43  ;;  %v956_v23 = vadd.f32 %v929_v54, %v834_v36  ;;  %6851 = vmatprep.mubr.msk.bf16.mxu1 %vm1031_vm2, %v8210_v44  ;;  %v8217_v21 = vpack.c.bf16 %v994_v51, %v993_v46 }
 0x152   :  { %v6834_v38 = vpop.f32.mrf.mxu0 }
 0x153   :  { %v8219_v7 = vpack.c.bf16 %v992_v22, %v991_v57  ;;  %v1013_v11 = vpack.c.bf16 %v993_v46, %v992_v22  ;;  %v979_v13 = vadd.f32 %v8124_v6, %v956_v23  ;;  %v959_v14 = vadd.f32 %v6834_v38, %v837_v28 }
 0x154   :  { %v932_v59 = vpop.f32.mrf.mxu0  ;;  %v997_v48 = vmax.f32 %v981_v2, 0.0 }
 0x155   :  { %v995_v24 = vmax.f32 %v979_v13, 0.0  ;;  %v957_v25 = vadd.f32 %v932_v59, %v835_v16  ;;  %6852 = vmatmul.mubr.msk.bf16.gmra.mxu1 %vm1031_vm2, %v1013_v11  ;;  %6872 = vmatmul.mubr.msk.bf16.gmra.mxu0 %vm1031_vm2, %v8219_v7  ;;  %v982_v33 = vadd.f32 %v8124_v6, %v959_v14 }
 0x156   :  { %6879 = vmatprep.mubr.bf16.mxu1 %v10466_v55  ;;  %6899 = vmatprep.mubr.bf16.mxu0 %v10466_v55  ;;  %v8337_v30 = vpop.f32.mrf.mxu0 }
 0x157   :  { %v1407_v45 = vpack.c.bf16 %v995_v24, %v994_v51  ;;  %v980_v58 = vadd.f32 %v8124_v6, %v957_v25  ;;  %v998_v32 = vmax.f32 %v982_v33, 0.0  ;;  %v10467_v6 = vld [vmem:[#allocation5_spill] sm:$0xff] }
 0x159   :  { %v996_v35 = vmax.f32 %v980_v58, 0.0  ;;  %v1809_v47 = vpack.c.bf16 %v998_v32, %v997_v48 }
 0x15b   :  { %v1541_v31 = vpack.c.bf16 %v996_v35, %v995_v24  ;;  %v1675_v50 = vpack.c.bf16 %v997_v48, %v996_v35 }
 0x15d   :  { %6880 = vmatmul.mubr.bf16.vlgmr.msra.gmra.mxu1 %v10466_v55  ;;  %6900 = vmatmul.mubr.msk.bf16.vlgmr.msra.gmra.mxu0 %vm1031_vm2, %v8146_v61 }
 0x15e   :  { %6883 = vmatprep.mubr.msk.bf16.mxu1 %vm1031_vm2, %v8160_v8  ;;  %6903 = vmatprep.mubr.msk.bf16.mxu0 %vm1031_vm2, %v8162_v9 }
 0x15f   :  { %6916 = vmatpush3.bf16.msra.mxu1 %v10467_v6  ;;  %6936 = vmatpush3.bf16.msra.mxu0 %v10468_v63 }
 0x160   :  { %6917 = vmatprep.subr.bf16.mxu1 %v7442_v18  ;;  %6937 = vmatprep.subr.bf16.mxu0 %v7444_v19 }
 0x163   :  { %6918 = vmatpush3.bf16.msra.mxu1 %v7442_v18  ;;  %6938 = vmatpush3.bf16.msra.mxu0 %v7444_v19 }
 0x164   :  { %6955 = vmatprep.subr.bf16.mxu1 %v7445_v0 }
 0x165   :  { %6884 = vmatmul.mubr.msk.bf16.gmra.mxu1 %vm1031_vm2, %v8152_v4  ;;  %6904 = vmatmul.mubr.msk.bf16.gmra.mxu0 %vm1031_vm2, %v8182_v56 }
 0x166   :  { %6887 = vmatprep.mubr.msk.bf16.mxu1 %vm1031_vm2, %v8194_v1  ;;  %6907 = vmatprep.mubr.msk.bf16.mxu0 %vm1031_vm2, %v8196_v3 }
 0x16d   :  { %6888 = vmatmul.mubr.msk.bf16.gmra.mxu1 %vm1031_vm2, %v8192_v62  ;;  %6908 = vmatmul.mubr.msk.bf16.gmra.mxu0 %vm1031_vm2, %v8210_v44 }
 0x16e   :  { %6891 = vmatprep.mubr.msk.bf16.mxu1 %vm1031_vm2, %v8219_v7  ;;  %6911 = vmatprep.mubr.msk.bf16.mxu0 %vm1031_vm2, %v1013_v11 }
 0x175   :  { %6892 = vmatmul.mubr.msk.bf16.gmra.mxu1 %vm1031_vm2, %v8217_v21  ;;  %6912 = vmatmul.mubr.msk.bf16.gmra.mxu0 %vm1031_vm2, %v1407_v45 }
 0x176   :  { %6939 = vmatprep.mubr.msk.bf16.mxu0 %vm1031_vm2, %v8146_v61  ;;  %6919 = vmatprep.mubr.bf16.mxu1 %v10466_v55  ;;  %v7447_v61 = vld [vmem:[%s10469_s28 + $0x18] ss:$12 sps:$4 sm:$0xff]  }
 0x17d   :  { %6920 = vmatmul.mubr.msk.bf16.vlgmr.msra.gmra.mxu1 %vm1031_vm2, %v8160_v8  ;;  %6940 = vmatmul.mubr.msk.bf16.vlgmr.msra.gmra.mxu0 %vm1031_vm2, %v8162_v9  ;;  %v7451_v9 = vld [vmem:[%s10469_s28] ss:$12 sps:$4 sm:$0xff]  }
 0x17e   :  { %6923 = vmatprep.mubr.msk.bf16.mxu1 %vm1031_vm2, %v8152_v4  ;;  %6943 = vmatprep.mubr.msk.bf16.mxu0 %vm1031_vm2, %v8182_v56  ;;  %v7453_v56 = vld [vmem:[%s10469_s28 + $0x4] ss:$12 sps:$4 sm:$0xff]  }
 0x17f   :  { %6956 = vmatpush3.bf16.msra.mxu1 %v7445_v0 }
 0x180   :  { %6957 = vmatprep.subr.bf16.mxu1 %v7446_v34 }
 0x183   :  { %6958 = vmatpush3.bf16.msra.mxu1 %v7446_v34 }
 0x185   :  { %6924 = vmatmul.mubr.msk.bf16.gmra.mxu1 %vm1031_vm2, %v8194_v1  ;;  %6944 = vmatmul.mubr.msk.bf16.gmra.mxu0 %vm1031_vm2, %v8196_v3  ;;  %v8341_v3 = vpop.f32.mrf.mxu0 }
 0x186   :  { %6927 = vmatprep.mubr.msk.bf16.mxu1 %vm1031_vm2, %v8192_v62  ;;  %6947 = vmatprep.mubr.msk.bf16.mxu0 %vm1031_vm2, %v8210_v44 }
 0x187   :  { %v8345_v37 = vpop.f32.mrf.mxu0 }
 0x189   :  { %v8356_v40 = vpop.f32.mrf.mxu0 }
 0x18d   :  { %6928 = vmatmul.mubr.msk.bf16.gmra.mxu1 %vm1031_vm2, %v8219_v7  ;;  %6948 = vmatmul.mubr.msk.bf16.gmra.mxu0 %vm1031_vm2, %v1013_v11 }
 0x18e   :  { %6931 = vmatprep.mubr.msk.bf16.mxu1 %vm1031_vm2, %v8217_v21  ;;  %6951 = vmatprep.mubr.msk.bf16.mxu0 %vm1031_vm2, %v1407_v45 }
 0x195   :  { %6932 = vmatmul.mubr.msk.bf16.gmra.mxu1 %vm1031_vm2, %v1541_v31  ;;  %6952 = vmatmul.mubr.msk.bf16.gmra.mxu0 %vm1031_vm2, %v1675_v50 }
 0x196   :  { %6959 = vmatprep.mubr.msk.bf16.mxu1 %vm1031_vm2, %v8160_v8  ;;  %v7450_v8 = vld [vmem:[%s10469_s28 + $0x20] ss:$12 sps:$4 sm:$0xff]   ;;  %2103 = vmatprep.mubr.bf16.mxu0 %v10290_v29 }
 0x197   :  { %6975 = vmatprep.subr.bf16.mxu1 %v7450_v8 }
 0x19d   :  { %6960 = vmatmul.mubr.msk.bf16.vlgmr.msra.gmra.mxu1 %vm1031_vm2, %v8152_v4  ;;  %v7449_v4 = vld [vmem:[%s10469_s28 + $0x1c] ss:$12 sps:$4 sm:$0xff]  }
 0x19e   :  { %6963 = vmatprep.mubr.msk.bf16.mxu1 %vm1031_vm2, %v8194_v1  ;;  %2083 = vmatprep.subr.bf16.mxu0 %v7449_v4  ;;  %v8339_v1 = vpop.f32.mrf.mxu1 }
 0x19f   :  { %2084 = vmatpush1.bf16.msra.mxu0 %v7447_v61  ;;  %6976 = vmatpush3.bf16.msra.mxu1 %v7450_v8 }
 0x1a0   :  { %2085 = vmatprep.subr.bf16.mxu0 %v7453_v56  ;;  %6977 = vmatprep.subr.bf16.mxu1 %v7454_v49  ;;  %v8343_v5 = vpop.f32.mrf.mxu1 }
 0x1a2   :  { %v8354_v26 = vpop.f32.mrf.mxu1 }
 0x1a3   :  { %2086 = vmatpush1.bf16.msra.mxu0 %v7451_v9  ;;  %6978 = vmatpush3.bf16.msra.mxu1 %v7454_v49 }
 0x1a4   :  { %7386 = vmatprep.subr.msk.bf16.mxu1 %vm134_vm0, %v8350_v15 }
 0x1a5   :  { %6964 = vmatmul.mubr.msk.bf16.gmra.mxu1 %vm1031_vm2, %v8192_v62  ;;  %v8331_v62 = vld [vmem:[%s10261_s9 + $0x4] sm:$0x3] }
 0x1a6   :  { %6967 = vmatprep.mubr.msk.bf16.mxu1 %vm1031_vm2, %v8219_v7  ;;  %7388 = vmatprep.subr.msk.bf16.mxu0 %vm134_vm0, %v8331_v62 }
 0x1ad   :  { %6968 = vmatmul.mubr.msk.bf16.gmra.mxu1 %vm1031_vm2, %v8217_v21 }
 0x1ae   :  { %6971 = vmatprep.mubr.msk.bf16.mxu1 %vm1031_vm2, %v1541_v31 }
 0x1b5   :  { %6972 = vmatmul.mubr.msk.bf16.gmra.mxu1 %vm1031_vm2, %v1809_v47 }
 0x205   :  { %v8358_v42 = vpop.f32.mrf.mxu1  ;;  %v8360_v27 = vpop.f32.mrf.mxu0 }
 0x207   :  { %v8362_v12 = vpop.f32.mrf.mxu1  ;;  %v8364_v57 = vpop.f32.mrf.mxu0 }
 0x209   :  { %v8366_v52 = vpop.f32.mrf.mxu1  ;;  %v8368_v36 = vpop.f32.mrf.mxu0 }
 0x20b   :  { %v8370_v39 = vpop.f32.mrf.mxu1  ;;  %v8372_v10 = vpop.f32.mrf.mxu0 }
 0x20d   :  { %v8374_v41 = vpop.f32.mrf.mxu1  ;;  %v8376_v44 = vpop.f32.mrf.mxu0 }
 0x20f   :  { %v8378_v17 = vpop.f32.mrf.mxu1  ;;  %v8380_v43 = vpop.f32.mrf.mxu0 }
 0x211   :  { %v8382_v53 = vpop.f32.mrf.mxu1  ;;  %v8384_v46 = vpop.f32.mrf.mxu0 }
 0x213   :  { %v8386_v51 = vpop.f32.mrf.mxu1  ;;  %v8388_v54 = vpop.f32.mrf.mxu0 }
 0x215   :  { %v8390_v22 = vpop.f32.mrf.mxu1  ;;  %v8392_v2 = vpop.f32.mrf.mxu0 }
 0x217   :  { %v8394_v23 = vpop.f32.mrf.mxu1  ;;  %v8396_v28 = vpop.f32.mrf.mxu0 }
 0x219   :  { %v8398_v21 = vpop.f32.mrf.mxu1  ;;  %v8400_v38 = vpop.f32.mrf.mxu0 }
 0x21a   :  { %10470 = vst [vmem:[#allocation19_spill] sm:$0xff] %v8398_v21  ;;  %10471 = vst [vmem:[#allocation22_spill] sm:$0xff] %v8400_v38  ;;  %v1219_v38 = vadd.f32 %v8337_v30, %v8335_v20  ;;  %v1214_v20 = vadd.f32 %v8356_v40, %v8354_v26 }
 0x21b   :  { %v8402_v16 = vpop.f32.mrf.mxu1  ;;  %v8404_v7 = vpop.f32.mrf.mxu0 }
 0x21c   :  { %10472 = vst [vmem:[#allocation20_spill] sm:$0xff] %v8402_v16  ;;  %10473 = vst [vmem:[#allocation9_spill] sm:$0xff] %v8404_v7 }
 0x21d   :  { %v6881_v11 = vpop.f32.mrf.mxu1  ;;  %v6901_v13 = vpop.f32.mrf.mxu0 }
 0x21f   :  { %v1328_v14 = vpop.f32.mrf.mxu1  ;;  %v1462_v59 = vpop.f32.mrf.mxu0 }
 0x221   :  { %v6882_v24 = vpop.f32.mrf.mxu1  ;;  %v8406_v25 = vpop.f32.mrf.mxu0 }
 0x223   :  { %v1331_v33 = vpop.f32.mrf.mxu1  ;;  %v8408_v45 = vpop.f32.mrf.mxu0 }
 0x225   :  { %v6885_v58 = vpop.f32.mrf.mxu1  ;;  %v8410_v48 = vpop.f32.mrf.mxu0 }
 0x227   :  { %v1344_v32 = vpop.f32.mrf.mxu1  ;;  %v8412_v35 = vpop.f32.mrf.mxu0 }
 0x229   :  { %v8414_v47 = vpop.f32.mrf.mxu1  ;;  %v8416_v31 = vpop.f32.mrf.mxu0 }
 0x22a   :  { %10474 = vst [vmem:[#allocation10_spill] sm:$0xff] %v8416_v31 }
 0x22b   :  { %v8418_v50 = vpop.f32.mrf.mxu1  ;;  %v8420_v18 = vpop.f32.mrf.mxu0 }
 0x22c   :  { %10475 = vst [vmem:[#allocation13_spill] sm:$0xff] %v8420_v18 }
 0x22d   :  { %v8422_v19 = vpop.f32.mrf.mxu1  ;;  %v8424_v6 = vpop.f32.mrf.mxu0 }
 0x22e   :  { %10476 = vst [vmem:[#allocation21_spill] sm:$0xff] %v8424_v6 }
 0x22f   :  { %v8426_v63 = vpop.f32.mrf.mxu1  ;;  %v8428_v0 = vpop.f32.mrf.mxu0 }
 0x230   :  { %10477 = vst [vmem:[#allocation23_spill] sm:$0xff] %v8428_v0 }
 0x231   :  { %v8430_v34 = vpop.f32.mrf.mxu1  ;;  %v8432_v61 = vpop.f32.mrf.mxu0 }
 0x232   :  { %10478 = vst [vmem:[#allocation12_spill] sm:$0xff] %v8430_v34  ;;  %10479 = vst [vmem:[#allocation11_spill] sm:$0xff] %v8432_v61 }
 0x233   :  { %v8434_v4 = vpop.f32.mrf.mxu1  ;;  %v8436_v8 = vpop.f32.mrf.mxu0 }
 0x234   :  { %10480 = vst [vmem:[#allocation14_spill] sm:$0xff] %v8434_v4  ;;  %10481 = vst [vmem:[#allocation6_spill] sm:$0xff] %v8436_v8 }
 0x235   :  { %v8438_v9 = vpop.f32.mrf.mxu1  ;;  %v8440_v56 = vpop.f32.mrf.mxu0 }
 0x236   :  { %10482 = vst [vmem:[#allocation7_spill] sm:$0xff] %v8438_v9  ;;  %10483 = vst [vmem:[#allocation24_spill] sm:$0xff] %v8440_v56 }
 0x237   :  { %v8442_v49 = vpop.f32.mrf.mxu1  ;;  %v8444_v29 = vpop.f32.mrf.mxu0 }
 0x238   :  { %10484 = vst [vmem:[#allocation16_spill] sm:$0xff] %v8442_v49  ;;  %10485 = vst [vmem:[#allocation15_spill] sm:$0xff] %v8444_v29 }
 0x239   :  { %v8446_v60 = vpop.f32.mrf.mxu1  ;;  %v8448_v55 = vpop.f32.mrf.mxu0 }
 0x23a   :  { %10486 = vst [vmem:[#allocation17_spill] sm:$0xff] %v8446_v60  ;;  %10487 = vst [vmem:[#allocation18_spill] sm:$0xff] %v8448_v55 }
 0x23b   :  { %v8450_v7 = vpop.f32.mrf.mxu1  ;;  %v8452_v16 = vpop.f32.mrf.mxu0 }
 0x23c   :  { %10488 = vst [vmem:[#allocation5_spill] sm:$0xff] %v8450_v7  ;;  %10489 = vst [vmem:[#allocation8_spill] sm:$0xff] %v8452_v16 }
 0x23d   :  { %v6921_v61 = vpop.f32.mrf.mxu1  ;;  %v6941_v4 = vpop.f32.mrf.mxu0 }
 0x23f   :  { %v1596_v34 = vpop.f32.mrf.mxu1  ;;  %v1730_v8 = vpop.f32.mrf.mxu0 }
 0x241   :  { %v6922_v0 = vpop.f32.mrf.mxu1  ;;  %v6942_v6 = vpop.f32.mrf.mxu0 }
 0x243   :  { %v1599_v9 = vpop.f32.mrf.mxu1  ;;  %v8456_v49 = vpop.f32.mrf.mxu0 }
 0x244   :  { %10491 = vst [vmem:[#allocation26_spill] sm:$0xff] %v8456_v49  ;;  %v1211_v49 = vadd.f32 %v8341_v3, %v8339_v1  ;;  %v1235_v1 = vadd.f32 %v8360_v27, %v8358_v42  ;;  %v8507_v42 = vsel %vm134_vm0, %v8350_v15, 0  ;;  %v1230_v27 = vadd.f32 %v8372_v10, %v8370_v39 }
 0x245   :  { %v6925_v56 = vpop.f32.mrf.mxu1  ;;  %v8462_v55 = vpop.f32.mrf.mxu0 }
 0x246   :  { %10494 = vst [vmem:[#allocation29_spill] sm:$0xff] %v8462_v55  ;;  %v1391_v55 = vadd.f32 %v1328_v14, %v1211_v49  ;;  %v1397_v26 = vadd.f32 %v6885_v58, %v1235_v1  ;;  %v10506_v1 = vld [vmem:[#allocation23_spill] sm:$0xff] }
 0x247   :  { %v8454_v18 = vpop.f32.mrf.mxu1  ;;  %v8470_v21 = vpop.f32.mrf.mxu0 }
 0x248   :  { %10490 = vst [vmem:[#allocation25_spill] sm:$0xff] %v8454_v18  ;;  %10497 = vst [vmem:[#allocation32_spill] sm:$0xff] %v8470_v21  ;;  %v1393_v18 = vadd.f32 %v6881_v11, %v1219_v38  ;;  %v1525_v3 = vadd.f32 %v1462_v59, %v1391_v55  ;;  %v1392_v38 = vadd.f32 %v1331_v33, %v1214_v20  ;;  %v8503_v55 = vsel %vm134_vm0, %v8331_v62, 0 }
 0x249   :  { %v8458_v29 = vpop.f32.mrf.mxu1  ;;  %v1254_v62 = vadd.f32 %v8384_v46, %v8382_v53  ;;  %v1531_v39 = vadd.f32 %v8410_v48, %v1397_v26  ;;  %v1246_v46 = vadd.f32 %v8388_v54, %v8386_v51 }
 0x24a   :  { %10492 = vst [vmem:[#allocation27_spill] sm:$0xff] %v8458_v29  ;;  %v1527_v30 = vadd.f32 %v6901_v13, %v1393_v18  ;;  %v1659_v40 = vadd.f32 %v1596_v34, %v1525_v3  ;;  %v10499_v18 = vld [vmem:[#allocation10_spill] sm:$0xff] }
 0x24b   :  { %v8460_v60 = vpop.f32.mrf.mxu1  ;;  %v10503_v20 = vld [vmem:[#allocation26_spill] sm:$0xff] }
 0x24c   :  { %10493 = vst [vmem:[#allocation28_spill] sm:$0xff] %v8460_v60  ;;  %v1222_v60 = vadd.f32 %v8345_v37, %v8343_v5  ;;  %v1661_v11 = vadd.f32 %v6921_v61, %v1527_v30  ;;  %v1227_v5 = vadd.f32 %v8364_v57, %v8362_v12  ;;  %v1526_v12 = vadd.f32 %v8408_v45, %v1392_v38 }
 0x24d   :  { %v8464_v7 = vpop.f32.mrf.mxu1  ;;  %v1793_v10 = vadd.f32 %v1730_v8, %v1659_v40  ;;  %v10502_v8 = vld [vmem:[#allocation22_spill] sm:$0xff] }
 0x24e   :  { %10495 = vst [vmem:[#allocation30_spill] sm:$0xff] %v8464_v7  ;;  %v8480_v7 = vpop.f32.mrf.mxu0  ;;  %v1394_v21 = vadd.f32 %v6882_v24, %v1222_v60  ;;  %v1238_v60 = vadd.f32 %v8368_v36, %v8366_v52  ;;  %v1395_v13 = vadd.f32 %v1344_v32, %v1227_v5  ;;  %v1795_v57 = vadd.f32 %v6941_v4, %v1661_v11  ;;  %v10501_v4 = vld [vmem:[#allocation19_spill] sm:$0xff]  ;;  %v10508_v11 = vld [vmem:[#allocation29_spill] sm:$0xff] }
 0x24f   :  { %v8466_v16 = vpop.f32.mrf.mxu1  ;;  %v1251_v52 = vadd.f32 %v8376_v44, %v8374_v41  ;;  %v1243_v36 = vadd.f32 %v8380_v43, %v8378_v17  ;;  %v1660_v33 = vadd.f32 %v1599_v9, %v1526_v12  ;;  %v1396_v41 = vadd.f32 %v8418_v50, %v1230_v27  ;;  %v8529_v43 = vld [vmem:[%s10262_s7] ss:$0 sm:$0xff]  ;;  %v10510_v27 = vld [vmem:[#allocation14_spill] sm:$0xff] }
 0x250   :  { %10496 = vst [vmem:[#allocation31_spill] sm:$0xff] %v8466_v16  ;;  %v8492_v37 = vpop.f32.mrf.mxu0  ;;  %v1528_v49 = vadd.f32 %v8406_v25, %v1394_v21  ;;  %v1398_v59 = vadd.f32 %v8414_v47, %v1238_v60  ;;  %v1529_v58 = vadd.f32 %v8412_v35, %v1395_v13  ;;  %v1665_v32 = vadd.f32 %v6925_v56, %v1531_v39  ;;  %v10504_v56 = vld [vmem:[#allocation13_spill] sm:$0xff]  ;;  %v10509_v60 = vld [vmem:[#allocation12_spill] sm:$0xff] }
 0x251   :  { %v8472_v31 = vpop.f32.mrf.mxu1  ;;  %v1401_v44 = vadd.f32 %v8422_v19, %v1251_v52  ;;  %v1399_v17 = vadd.f32 %v8426_v63, %v1243_v36  ;;  %v1267_v35 = vadd.f32 %v8392_v2, %v8390_v22  ;;  %v1259_v50 = vadd.f32 %v8396_v28, %v8394_v23  ;;  %v10500_v63 = vld [vmem:[#allocation25_spill] sm:$0xff]  ;;  %v10507_v28 = vld [vmem:[#allocation27_spill] sm:$0xff] }
 0x252   :  { %10498 = vst [vmem:[#allocation33_spill] sm:$0xff] %v8472_v31  ;;  %v1662_v21 = vadd.f32 %v6922_v0, %v1528_v49  ;;  %v8519_v15 = vpop.f32.mrf.mxu0  ;;  %v1532_v19 = vadd.f32 %v10499_v18, %v1398_v59  ;;  %v1663_v0 = vadd.f32 %v10500_v63, %v1529_v58  ;;  %v1270_v9 = vadd.f32 %v10502_v8, %v10501_v4  ;;  %v10505_v22 = vld [vmem:[#allocation21_spill] sm:$0xff]  ;;  %v10513_v58 = vld [vmem:[#allocation7_spill] sm:$0xff]  ;;  %v10516_v63 = vld [vmem:[#allocation20_spill] sm:$0xff] }
 0x253   :  { %v8476_v29 = vpop.f32.mrf.mxu1  ;;  %v1794_v51 = vadd.f32 %v10503_v20, %v1660_v33  ;;  %v1530_v30 = vadd.f32 %v10504_v56, %v1396_v41  ;;  %v1535_v2 = vadd.f32 %v10505_v22, %v1401_v44  ;;  %v1533_v23 = vadd.f32 %v10506_v1, %v1399_v17  ;;  %v10512_v52 = vld [vmem:[#allocation28_spill] sm:$0xff]  ;;  %v10518_v4 = vld [vmem:[#allocation11_spill] sm:$0xff]  ;;  %v10519_v20 = vld [vmem:[#allocation6_spill] sm:$0xff] }
 0x254   :  { %v1796_v48 = vadd.f32 %v6942_v6, %v1662_v21  ;;  %v1762_v34 = vpop.f32.mrf.mxu0  ;;  %v1666_v3 = vadd.f32 %v10507_v28, %v1532_v19  ;;  %v1799_v5 = vadd.f32 %v10508_v11, %v1665_v32  ;;  %v1402_v13 = vadd.f32 %v10509_v60, %v1254_v62  ;;  %v10514_v44 = vld [vmem:[#allocation16_spill] sm:$0xff]  ;;  %v10522_v28 = vld [vmem:[#allocation15_spill] sm:$0xff]  ;;  %v10524_v60 = vld [vmem:[#allocation17_spill] sm:$0xff] }
 0x255   :  { %v8482_v16 = vpop.f32.mrf.mxu1  ;;  %v1400_v12 = vadd.f32 %v10510_v27, %v1246_v46  ;;  %v1664_v36 = vadd.f32 %v10512_v52, %v1530_v30  ;;  %v1405_v41 = vadd.f32 %v10513_v58, %v1267_v35  ;;  %v1403_v17 = vadd.f32 %v10514_v44, %v1259_v50  ;;  %v10515_v62 = vld [vmem:[#allocation30_spill] sm:$0xff] }
 0x256   :  { %v6950_v59 = vpop.f32.mrf.mxu0  ;;  %v1536_v8 = vadd.f32 %v10518_v4, %v1402_v13  ;;  %v1406_v13 = vadd.f32 %v10524_v60, %v1270_v9  ;;  %v10526_v9 = vld [vmem:[#allocation5_spill] sm:$0xff] }
 0x257   :  { %v8486_v31 = vpop.f32.mrf.mxu1  ;;  %v10520_v35 = vld [vmem:[#allocation31_spill] sm:$0xff] }
 0x258   :  { %v1765_v50 = vpop.f32.mrf.mxu0 }
 0x259   :  { %v8494_v14 = vpop.f32.mrf.mxu1  ;;  %v10523_v11 = vld [vmem:[#allocation33_spill] sm:$0xff] }
 0x25b   :  { %v8499_v24 = vpop.f32.mrf.mxu1 }
 0x25d   :  { %v6961_v25 = vpop.f32.mrf.mxu1 }
 0x25e   :  { %v1929_v45 = vadd.f32 %v6961_v25, %v1795_v57  ;;  %v10511_v57 = vld [vmem:[#allocation32_spill] sm:$0xff] }
 0x25f   :  { %v1864_v53 = vpop.f32.mrf.mxu1  ;;  %v1797_v21 = vadd.f32 %v10511_v57, %v1663_v0  ;;  %v10517_v0 = vld [vmem:[#allocation9_spill] sm:$0xff]  ;;  %v6953_v57 = vpop.f32.mrf.mxu0 }
 0x260   :  { %v1927_v47 = vadd.f32 %v1864_v53, %v1793_v10  ;;  %v1952_v54 = vadd.f32 %v8529_v43, %v1929_v45  ;;  %v1800_v53 = vadd.f32 %v8480_v7, %v1666_v3  ;;  %v1798_v7 = vadd.f32 %v8492_v37, %v1664_v36  ;;  %v8579_v37 = vld [vmem:[%s10261_s9] sm:$0x3] }
 0x261   :  { %v6962_v61 = vpop.f32.mrf.mxu1  ;;  %v1537_v3 = vadd.f32 %v10522_v28, %v1403_v17  ;;  %v10527_v17 = vld [vmem:[#allocation18_spill] sm:$0xff] }
 0x262   :  { %v1930_v6 = vadd.f32 %v6962_v61, %v1796_v48  ;;  %v1950_v49 = vadd.f32 %v8529_v43, %v1927_v47  ;;  %v1968_v39 = vmax.f32 %v1952_v54, 0.0  ;;  %v1669_v48 = vadd.f32 %v10515_v62, %v1535_v2  ;;  %v10521_v2 = vld [vmem:[#allocation24_spill] sm:$0xff]  ;;  %v1778_v62 = vpop.f32.mrf.mxu0 }
 0x263   :  { %v1867_v38 = vpop.f32.mrf.mxu1  ;;  %v1262_v61 = vadd.f32 %v10517_v0, %v10516_v63  ;;  %v1667_v54 = vadd.f32 %v10520_v35, %v1533_v23  ;;  %v1539_v1 = vadd.f32 %v10521_v2, %v1405_v41 }
 0x264   :  { %v1953_v26 = vadd.f32 %v8529_v43, %v1930_v6  ;;  %v1928_v40 = vadd.f32 %v1867_v38, %v1794_v51  ;;  %v1966_v32 = vmax.f32 %v1950_v49, 0.0  ;;  %v1534_v51 = vadd.f32 %v10519_v20, %v1400_v12 }
 0x265   :  { %v6965_v25 = vpop.f32.mrf.mxu1  ;;  %v1803_v38 = vadd.f32 %v8519_v15, %v1669_v48  ;;  %v8584_v15 = vld [vmem:[%s10261_s9 + $0x8] sm:$0x3]  ;;  %v1801_v27 = vadd.f32 %v1762_v34, %v1667_v54  ;;  %v1404_v34 = vadd.f32 %v10526_v9, %v1262_v61  ;;  %v10530_v9 = vmov 0.0  }
 0x266   :  { %v1969_v10 = vmax.f32 %v1953_v26, 0.0  ;;  %v1951_v33 = vadd.f32 %v8529_v43, %v1928_v40  ;;  %v1933_v45 = vadd.f32 %v6965_v25, %v1799_v5  ;;  %v1670_v5 = vadd.f32 %v10523_v11, %v1536_v8 }
 0x267   :  { %v1880_v46 = vpop.f32.mrf.mxu1  ;;  %v1668_v12 = vadd.f32 %v8476_v29, %v1534_v51  ;;  %v1673_v29 = vadd.f32 %v8482_v16, %v1539_v1  ;;  %v6954_v51 = vpop.f32.mrf.mxu0 }
 0x268   :  { %v8559_v47 = vpack.c.bf16 %v1969_v10, %v1968_v39  ;;  %v1967_v18 = vmax.f32 %v1951_v33, 0.0  ;;  %v1931_v19 = vadd.f32 %v1880_v46, %v1797_v21  ;;  %v1956_v30 = vadd.f32 %v8529_v43, %v1933_v45 }
 0x269   :  { %v6966_v6 = vpop.f32.mrf.mxu1  ;;  %v10525_v10 = vmov 0   ;;  %v1804_v33 = vadd.f32 %v6950_v59, %v1670_v5  ;;  %v1802_v59 = vadd.f32 %v1765_v50, %v1668_v12  ;;  %v1807_v63 = vadd.f32 %v6953_v57, %v1673_v29  ;;  %v1781_v28 = vpop.f32.mrf.mxu0 }
 0x26a   :  { %v1983_v56 = vpack.c.bf16 %v1967_v18, %v1966_v32  ;;  %v1934_v22 = vadd.f32 %v6966_v6, %v1800_v53  ;;  %v1954_v26 = vadd.f32 %v8529_v43, %v1931_v19  ;;  %v1972_v52 = vmax.f32 %v1956_v30, 0.0  ;;  %v10528_v18 = vld [vmem:[#allocation8_spill] sm:$0xff] }
 0x26b   :  { %v1883_v49 = vpop.f32.mrf.mxu1  ;;  %v1540_v53 = vadd.f32 %v10527_v17, %v1406_v13  ;;  %v1538_v19 = vadd.f32 %v10528_v18, %v1404_v34  ;;  %v2429_v29 = vsel %vm134_vm0, %v8579_v37, 0  ;;  %v7458_v18 = vld [vmem:[%s10264_s11] sm:$0xff]  }
 0x26c   :  { %v1957_v23 = vadd.f32 %v8529_v43, %v1934_v22  ;;  %v1932_v40 = vadd.f32 %v1883_v49, %v1798_v7  ;;  %6007 = vmatmul.mubr.msk.bf16.vlgmr.msra.gmra.mxu0 %vm1031_vm2, %v1983_v56  ;;  %6979 = vmatprep.mubr.msk.bf16.mxu1 %vm1031_vm2, %v1983_v56 }
 0x26d   :  { %v6969_v21 = vpop.f32.mrf.mxu1  ;;  %6980 = vmatmul.mubr.msk.bf16.vlgmr.msra.gmra.mxu1 %vm1031_vm2, %v8559_v47  ;;  %7016 = vmatpush3.bf16.msra.mxu0 %v8503_v55  ;;  %v1970_v55 = vmax.f32 %v1954_v26, 0.0  ;;  %v1674_v0 = vadd.f32 %v8494_v14, %v1540_v53  ;;  %v1672_v35 = vadd.f32 %v8499_v24, %v1538_v19  ;;  %v2667_v53 = vsel %vm134_vm0, %v8584_v15, 0  ;;  %v7457_v19 = vld [vmem:[%s10264_s11 + $0x10] sm:$0xff]  }
 0x26e   :  { %v1973_v36 = vmax.f32 %v1957_v23, 0.0  ;;  %v1955_v25 = vadd.f32 %v8529_v43, %v1932_v40  ;;  %v1937_v39 = vadd.f32 %v6969_v21, %v1803_v38  ;;  %2113 = vmatprep.mubr.bf16.mxu0 %v10525_v10  ;;  %6996 = vmatpush3.bf16.msra.mxu1 %v8507_v42  ;;  %v1671_v42 = vadd.f32 %v8486_v31, %v1537_v3 }
 0x26f   :  { %v1896_v45 = vpop.f32.mrf.mxu1  ;;  %7387 = vmatprep.subr.msk.bf16.mxu1 %vm134_vm0, %v8579_v37  ;;  %7390 = vmatprep.subr.msk.bf16.mxu0 %vm134_vm0, %v8584_v15  ;;  %v1808_v56 = vadd.f32 %v6954_v51, %v1674_v0  ;;  %v1806_v38 = vadd.f32 %v1781_v28, %v1672_v35  ;;  %v2336_v15 = vld [vmem:[%s10263_s1 + $0x38] sm:$0xff]  ;;  %v8708_v0 = vld [vmem:[%s10264_s11 + $0x28] sm:$0xff]  }
 0x270   :  { %v1986_v58 = vpack.c.bf16 %v1973_v36, %v1972_v52  ;;  %v1971_v41 = vmax.f32 %v1955_v25, 0.0  ;;  %v1935_v44 = vadd.f32 %v1896_v45, %v1801_v27  ;;  %v1960_v16 = vadd.f32 %v8529_v43, %v1937_v39  ;;  %v2329_v25 = vld [vmem:[%s10263_s1] sm:$0xff]  ;;  %v2331_v39 = vld [vmem:[%s10263_s1 + $0x10] sm:$0xff] }
 0x271   :  { %v6970_v48 = vpop.f32.mrf.mxu1  ;;  %v1805_v31 = vadd.f32 %v1778_v62, %v1671_v42  ;;  %v10529_v36 = vmov 0.0|0.0   ;;  %v2340_v34 = vpack.c.bf16 %v2329_v25, %v10530_v9  ;;  %v6033_v45 = vld [vmem:[%s10261_s9 + $0x6] sm:$0x3]  ;;  %v2334_v42 = vld [vmem:[%s10263_s1 + $0x28] sm:$0xff]  ;;  %v2335_v62 = vld [vmem:[%s10263_s1 + $0x30] sm:$0xff] }
 0x272   :  { %v1985_v46 = vpack.c.bf16 %v1971_v41, %v1970_v55  ;;  %v1938_v32 = vadd.f32 %v6970_v48, %v1804_v33  ;;  %v1958_v4 = vadd.f32 %v8529_v43, %v1935_v44  ;;  %v1976_v14 = vmax.f32 %v1960_v16, 0.0  ;;  %v2332_v55 = vld [vmem:[%s10263_s1 + $0x18] sm:$0xff] }
 0x273   :  { %v1899_v61 = vpop.f32.mrf.mxu1  ;;  %v2585_v44 = vsel %vm134_vm0, %v6033_v45, 0  ;;  %v2338_v17 = vpack.c.bf16 %v2332_v55, %v2331_v39  ;;  %v7455_v16 = vld [vmem:[%s10264_s11 + $0x18] sm:$0xff]  }
 0x274   :  { %v1961_v8 = vadd.f32 %v8529_v43, %v1938_v32  ;;  %v1936_v20 = vadd.f32 %v1899_v61, %v1802_v59  ;;  %6008 = vmatmul.mubr.msk.bf16.gmra.mxu0 %vm1031_vm2, %v8559_v47  ;;  %6983 = vmatprep.mubr.msk.bf16.mxu1 %vm1031_vm2, %v1985_v46  ;;  %v1974_v22 = vmax.f32 %v1958_v4, 0.0  ;;  %v2578_v59 = vpack.c.bf16 %v2335_v62, %v2334_v42  ;;  %v7456_v32 = vld [vmem:[%s10264_s11 + $0x8] sm:$0xff]   ;;  %v7462_v61 = vld [vmem:[%s10264_s11 + $0x30] sm:$0xff]  }
 0x275   :  { %v6973_v54 = vpop.f32.mrf.mxu1  ;;  %6984 = vmatmul.mubr.msk.bf16.gmra.mxu1 %vm1031_vm2, %v1986_v58  ;;  %2123 = vmatprep.mubr.bf16.mxu0 %v10525_v10  ;;  %v2000_v4 = vlaneseq }
 0x276   :  { %v1977_v50 = vmax.f32 %v1961_v8, 0.0  ;;  %v1959_v6 = vadd.f32 %v8529_v43, %v1936_v20  ;;  %v1941_v7 = vadd.f32 %v6973_v54, %v1807_v63  ;;  %v7460_v63 = vld [vmem:[%s10264_s11 + $0x38] sm:$0xff]  }
 0x277   :  { %v1912_v30 = vpop.f32.mrf.mxu1  ;;  %v2001_v8 = vshrl.u32 %v2000_v4, 7 }
 0x278   :  { %v1988_v47 = vpack.c.bf16 %v1977_v50, %v1976_v14  ;;  %v1975_v2 = vmax.f32 %v1959_v6, 0.0  ;;  %v1939_v1 = vadd.f32 %v1912_v30, %v1805_v31  ;;  %v1964_v11 = vadd.f32 %v8529_v43, %v1941_v7  ;;  %v1982_v31 = vld [vmem:[%s10265_s19] sm:$0x7] }
 0x279   :  { %v6974_v3 = vpop.f32.mrf.mxu1  ;;  %v8714_v20 = vsub.s32 0, %v2001_v8  ;;  %v8719_v51 = vsub.s32 2, %v2001_v8  ;;  %v8721_v35 = vsub.s32 1, %v2001_v8 }
 0x27a   :  { %v1987_v24 = vpack.c.bf16 %v1975_v2, %v1974_v22  ;;  %v1942_v5 = vadd.f32 %v6974_v3, %v1808_v56  ;;  %v1962_v26 = vadd.f32 %v8529_v43, %v1939_v1  ;;  %v1980_v60 = vmax.f32 %v1964_v11, 0.0 }
 0x27b   :  { %v1915_v49 = vpop.f32.mrf.mxu1  ;;  %10531 = vst [vmem:[#allocation10_spill] sm:$0xff] %v8714_v20  ;;  %10532 = vst [vmem:[#allocation25_spill] sm:$0xff] %v8719_v51  ;;  %v8724_v54 = vrot.slane %v1982_v31, %v8714_v20  ;;  %v8727_v14 = vrot.slane %v1982_v31, %v8719_v51  ;;  %v8730_v50 = vrot.slane %v1982_v31, %v8721_v35 }
 0x27c   :  { %v1965_v23 = vadd.f32 %v8529_v43, %v1942_v5  ;;  %v1940_v40 = vadd.f32 %v1915_v49, %v1806_v38  ;;  %6009 = vmatmul.mubr.msk.bf16.gmra.mxu0 %vm1031_vm2, %v1985_v46  ;;  %6987 = vmatprep.mubr.msk.bf16.mxu1 %vm1031_vm2, %v1987_v24  ;;  %v1978_v12 = vmax.f32 %v1962_v26, 0.0  ;;  %v2660_v46 = vpack.c.bf16 %v2336_v15, %v2335_v62 }
 0x27d   :  { %6988 = vmatmul.mubr.msk.bf16.gmra.mxu1 %vm1031_vm2, %v1988_v47  ;;  %2133 = vmatprep.mubr.bf16.mxu0 %v10525_v10  ;;  %10533 = vst [vmem:[#allocation19_spill] sm:$0xff] %v8721_v35 }
 0x27e   :  { %v1981_v13 = vmax.f32 %v1965_v23, 0.0  ;;  %v1963_v27 = vadd.f32 %v8529_v43, %v1940_v40  ;;  %v2330_v43 = vld [vmem:[%s10263_s1 + $0x8] sm:$0xff] }
 0x27f   :  { %v2341_v33 = vpack.c.bf16 %v2331_v39, %v2330_v43  ;;  %v2337_v41 = vpack.c.bf16 %v2330_v43, %v2329_v25 }
 0x280   :  { %v1990_v57 = vpack.c.bf16 %v1981_v13, %v1980_v60  ;;  %v1979_v21 = vmax.f32 %v1963_v27, 0.0 }
 0x282   :  { %v1989_v52 = vpack.c.bf16 %v1979_v21, %v1978_v12 }
 0x284   :  { %6010 = vmatmul.mubr.msk.bf16.gmra.mxu0 %vm1031_vm2, %v1986_v58  ;;  %6991 = vmatprep.mubr.msk.bf16.mxu1 %vm1031_vm2, %v1989_v52  ;;  %v2333_v58 = vld [vmem:[%s10263_s1 + $0x20] sm:$0xff] }
 0x285   :  { %6992 = vmatmul.mubr.msk.bf16.gmra.mxu1 %vm1031_vm2, %v1990_v57  ;;  %2143 = vmatprep.mubr.bf16.mxu0 %v10525_v10  ;;  %v2342_v37 = vpack.c.bf16 %v2333_v58, %v2332_v55  ;;  %v2496_v48 = vpack.c.bf16 %v2334_v42, %v2333_v58 }
 0x286   :  { %6997 = vmatprep.mubr.bf16.mxu1 %v10529_v36 }
 0x28c   :  { %6011 = vmatmul.mubr.msk.bf16.gmra.mxu0 %vm1031_vm2, %v1987_v24 }
 0x28d   :  { %6998 = vmatmul.mubr.msk.bf16.vlgmr.msra.gmra.mxu1 %vm112_vm1, %v2340_v34  ;;  %2153 = vmatprep.mubr.bf16.mxu0 %v10525_v10 }
 0x28e   :  { %7001 = vmatprep.mubr.msk.bf16.mxu1 %vm112_vm1, %v2341_v33  ;;  %7006 = vmatpush3.bf16.msra.mxu1 %v2429_v29 }
 0x28f   :  { %7389 = vmatprep.subr.msk.bf16.mxu1 %vm134_vm0, %v6033_v45 }
 0x294   :  { %6012 = vmatmul.mubr.msk.bf16.gmra.mxu0 %vm1031_vm2, %v1988_v47 }
 0x295   :  { %7002 = vmatmul.mubr.msk.bf16.gmra.mxu1 %vm112_vm1, %v2342_v37  ;;  %2163 = vmatprep.mubr.bf16.mxu0 %v10525_v10 }
 0x296   :  { %7007 = vmatprep.mubr.bf16.mxu1 %v10529_v36 }
 0x29c   :  { %6013 = vmatmul.mubr.msk.bf16.gmra.mxu0 %vm1031_vm2, %v1989_v52 }
 0x29d   :  { %7008 = vmatmul.mubr.bf16.vlgmr.msra.gmra.mxu1 %v10529_v36  ;;  %2173 = vmatprep.mubr.bf16.mxu0 %v10525_v10 }
 0x29e   :  { %7011 = vmatprep.mubr.msk.bf16.mxu1 %vm112_vm1, %v2337_v41  ;;  %7026 = vmatpush3.bf16.msra.mxu1 %v2585_v44 }
 0x29f   :  { %7045 = vmatprep.subr.bf16.mxu1 %v7455_v16 }
 0x2a4   :  { %6014 = vmatmul.mubr.msk.bf16.gmra.mxu0 %vm1031_vm2, %v1990_v57 }
 0x2a5   :  { %7012 = vmatmul.mubr.msk.bf16.gmra.mxu1 %vm112_vm1, %v2338_v17  ;;  %7017 = vmatprep.mubr.bf16.mxu0 %v10529_v36 }
 0x2a6   :  { %7027 = vmatprep.mubr.msk.bf16.mxu1 %vm112_vm1, %v2340_v34 }
 0x2ac   :  { %7018 = vmatmul.mubr.msk.bf16.vlgmr.msra.gmra.mxu0 %vm112_vm1, %v2337_v41 }
 0x2ad   :  { %7036 = vmatpush3.bf16.msra.mxu0 %v2667_v53  ;;  %7028 = vmatmul.mubr.msk.bf16.vlgmr.msra.gmra.mxu1 %vm112_vm1, %v2341_v33 }
 0x2ae   :  { %7021 = vmatprep.mubr.msk.bf16.mxu0 %vm112_vm1, %v2338_v17  ;;  %7031 = vmatprep.mubr.msk.bf16.mxu1 %vm112_vm1, %v2342_v37 }
 0x2af   :  { %7046 = vmatpush3.bf16.msra.mxu1 %v7455_v16  ;;  %7057 = vmatprep.subr.bf16.mxu0 %v7456_v32 }
 0x2b0   :  { %7047 = vmatprep.subr.bf16.mxu1 %v7457_v19 }
 0x2b3   :  { %7048 = vmatpush3.bf16.msra.mxu1 %v7457_v19 }
 0x2b4   :  { %7022 = vmatmul.mubr.msk.bf16.gmra.mxu0 %vm112_vm1, %v2496_v48  ;;  %7069 = vmatprep.subr.bf16.mxu1 %v8708_v0 }
 0x2b5   :  { %7032 = vmatmul.mubr.msk.bf16.gmra.mxu1 %vm112_vm1, %v2578_v59  ;;  %7037 = vmatprep.mubr.msk.bf16.mxu0 %vm112_vm1, %v2337_v41 }
 0x2b6   :  { %7049 = vmatprep.mubr.bf16.mxu1 %v10529_v36 }
 0x2bc   :  { %7038 = vmatmul.mubr.msk.bf16.vlgmr.msra.gmra.mxu0 %vm112_vm1, %v2338_v17 }
 0x2bd   :  { %7041 = vmatprep.mubr.msk.bf16.mxu0 %vm112_vm1, %v2496_v48  ;;  %7058 = vmatpush3.bf16.msra.mxu0 %v7456_v32 }
 0x2be   :  { %7059 = vmatprep.subr.bf16.mxu0 %v7458_v18 }
 0x2c1   :  { %7060 = vmatpush3.bf16.msra.mxu0 %v7458_v18 }
 0x2c2   :  { %7081 = vmatprep.subr.bf16.mxu0 %v7460_v63 }
 0x2c4   :  { %7042 = vmatmul.mubr.msk.bf16.gmra.mxu0 %vm112_vm1, %v2660_v46 }
 0x2c5   :  { %7061 = vmatprep.mubr.bf16.mxu0 %v10529_v36 }
 0x2cc   :  { %7062 = vmatmul.mubr.bf16.vlgmr.msra.gmra.mxu0 %v10529_v36 }
 0x2cd   :  { %7082 = vmatpush3.bf16.msra.mxu0 %v7460_v63 }
 0x2ce   :  { %7083 = vmatprep.subr.bf16.mxu0 %v7462_v61 }
 0x2d1   :  { %7084 = vmatpush3.bf16.msra.mxu0 %v7462_v61 }
 0x32c   :  { %v2105_v6 = vpop.f32.mrf.mxu0 }
 0x32d   :  { %v2106_v7 = vadd.f32 %v2105_v6, %v8724_v54  ;;  %v6981_v56 = vpop.f32.mrf.mxu1 }
 0x32e   :  { %v2227_v30 = vadd.f32 %v6981_v56, %v8727_v14  ;;  %v2107_v22 = vpop.f32.mrf.mxu0 }
 0x32f   :  { %2281 = vst [vmem:[#allocation2] sm:$0xff] %v2106_v7  ;;  %v2108_v47 = vadd.f32 %v2107_v22, %v8730_v50  ;;  %v2218_v2 = vpop.f32.mrf.mxu1 }
 0x330   :  { %2289 = vst [vmem:[#allocation2 + $0x40] sm:$0xff] %v2227_v30  ;;  %v2219_v1 = vadd.f32 %v2218_v2, %v8727_v14  ;;  %v2109_v28 = vpop.f32.mrf.mxu0 }
 0x331   :  { %2282 = vst [vmem:[#allocation2 + $0x8] sm:$0xff] %v2108_v47  ;;  %v2110_v3 = vadd.f32 %v2109_v28, %v8724_v54  ;;  %v6982_v38 = vpop.f32.mrf.mxu1 }
 0x332   :  { %2283 = vst [vmem:[#allocation2 + $0x10] sm:$0xff] %v2219_v1  ;;  %v2230_v24 = vadd.f32 %v6982_v38, %v8727_v14  ;;  %v2111_v11 = vpop.f32.mrf.mxu0 }
 0x333   :  { %2284 = vst [vmem:[#allocation2 + $0x18] sm:$0xff] %v2110_v3  ;;  %v2112_v5 = vadd.f32 %v2111_v11, %v8730_v50  ;;  %v2221_v49 = vpop.f32.mrf.mxu1 }
 0x334   :  { %2292 = vst [vmem:[#allocation2 + $0x58] sm:$0xff] %v2230_v24  ;;  %v2222_v26 = vadd.f32 %v2221_v49, %v8727_v14  ;;  %v2115_v23 = vpop.f32.mrf.mxu0 }
 0x335   :  { %2285 = vst [vmem:[#allocation2 + $0x20] sm:$0xff] %v2112_v5  ;;  %v2116_v40 = vadd.f32 %v2115_v23, %v8724_v54  ;;  %v6985_v60 = vpop.f32.mrf.mxu1 }
 0x336   :  { %2286 = vst [vmem:[#allocation2 + $0x28] sm:$0xff] %v2222_v26  ;;  %v2243_v13 = vadd.f32 %v6985_v60, %v8727_v14  ;;  %v2117_v27 = vpop.f32.mrf.mxu0 }
 0x337   :  { %2287 = vst [vmem:[#allocation2 + $0x30] sm:$0xff] %v2116_v40  ;;  %v2118_v12 = vadd.f32 %v2117_v27, %v8730_v50  ;;  %v2234_v57 = vpop.f32.mrf.mxu1 }
 0x338   :  { %2301 = vst [vmem:[#allocation2 + $0xa0] sm:$0xff] %v2243_v13  ;;  %v2235_v21 = vadd.f32 %v2234_v57, %v8727_v14  ;;  %v2119_v52 = vpop.f32.mrf.mxu0 }
 0x339   :  { %2288 = vst [vmem:[#allocation2 + $0x38] sm:$0xff] %v2118_v12  ;;  %v2120_v25 = vadd.f32 %v2119_v52, %v8724_v54  ;;  %v6986_v43 = vpop.f32.mrf.mxu1 }
 0x33a   :  { %2295 = vst [vmem:[#allocation2 + $0x70] sm:$0xff] %v2235_v21  ;;  %v2246_v39 = vadd.f32 %v6986_v43, %v8727_v14  ;;  %v2121_v34 = vpop.f32.mrf.mxu0 }
 0x33b   :  { %2290 = vst [vmem:[#allocation2 + $0x48] sm:$0xff] %v2120_v25  ;;  %v2122_v33 = vadd.f32 %v2121_v34, %v8730_v50  ;;  %v2237_v29 = vpop.f32.mrf.mxu1 }
 0x33c   :  { %2304 = vst [vmem:[#allocation2 + $0xb8] sm:$0xff] %v2246_v39  ;;  %v2238_v45 = vadd.f32 %v2237_v29, %v8727_v14  ;;  %v2125_v55 = vpop.f32.mrf.mxu0 }
 0x33d   :  { %2291 = vst [vmem:[#allocation2 + $0x50] sm:$0xff] %v2122_v33  ;;  %v2126_v58 = vadd.f32 %v2125_v55, %v8724_v54  ;;  %v6989_v37 = vpop.f32.mrf.mxu1 }
 0x33e   :  { %2298 = vst [vmem:[#allocation2 + $0x88] sm:$0xff] %v2238_v45  ;;  %v2259_v41 = vadd.f32 %v6989_v37, %v8727_v14  ;;  %v2127_v44 = vpop.f32.mrf.mxu0 }
 0x33f   :  { %2293 = vst [vmem:[#allocation2 + $0x60] sm:$0xff] %v2126_v58  ;;  %v2128_v17 = vadd.f32 %v2127_v44, %v8730_v50  ;;  %v2250_v53 = vpop.f32.mrf.mxu1 }
 0x340   :  { %2313 = vst [vmem:[#allocation2 + $0x100] sm:$0xff] %v2259_v41  ;;  %v2251_v42 = vadd.f32 %v2250_v53, %v8727_v14  ;;  %v2129_v62 = vpop.f32.mrf.mxu0 }
 0x341   :  { %2294 = vst [vmem:[#allocation2 + $0x68] sm:$0xff] %v2128_v17  ;;  %v2130_v48 = vadd.f32 %v2129_v62, %v8724_v54  ;;  %v6990_v59 = vpop.f32.mrf.mxu1 }
 0x342   :  { %2307 = vst [vmem:[#allocation2 + $0xd0] sm:$0xff] %v2251_v42  ;;  %v2262_v15 = vadd.f32 %v6990_v59, %v8727_v14  ;;  %v2131_v46 = vpop.f32.mrf.mxu0 }
 0x343   :  { %2296 = vst [vmem:[#allocation2 + $0x78] sm:$0xff] %v2130_v48  ;;  %v2132_v16 = vadd.f32 %v2131_v46, %v8730_v50  ;;  %v2253_v32 = vpop.f32.mrf.mxu1 }
 0x344   :  { %2316 = vst [vmem:[#allocation2 + $0x118] sm:$0xff] %v2262_v15  ;;  %v2254_v18 = vadd.f32 %v2253_v32, %v8727_v14  ;;  %v2135_v19 = vpop.f32.mrf.mxu0 }
 0x345   :  { %2297 = vst [vmem:[#allocation2 + $0x80] sm:$0xff] %v2132_v16  ;;  %v2136_v63 = vadd.f32 %v2135_v19, %v8724_v54  ;;  %v6993_v61 = vpop.f32.mrf.mxu1 }
 0x346   :  { %2310 = vst [vmem:[#allocation2 + $0xe8] sm:$0xff] %v2254_v18  ;;  %v2275_v4 = vadd.f32 %v6993_v61, %v8727_v14  ;;  %v2137_v8 = vpop.f32.mrf.mxu0 }
 0x347   :  { %2299 = vst [vmem:[#allocation2 + $0x90] sm:$0xff] %v2136_v63  ;;  %v2138_v31 = vadd.f32 %v2137_v8, %v8730_v50  ;;  %v2266_v6 = vpop.f32.mrf.mxu1 }
 0x348   :  { %2325 = vst [vmem:[#allocation2 + $0x160] sm:$0xff] %v2275_v4  ;;  %v2267_v7 = vadd.f32 %v2266_v6, %v8727_v14  ;;  %v2139_v56 = vpop.f32.mrf.mxu0 }
 0x349   :  { %2300 = vst [vmem:[#allocation2 + $0x98] sm:$0xff] %v2138_v31  ;;  %v2140_v30 = vadd.f32 %v2139_v56, %v8724_v54  ;;  %v6994_v22 = vpop.f32.mrf.mxu1 }
 0x34a   :  { %2319 = vst [vmem:[#allocation2 + $0x130] sm:$0xff] %v2267_v7  ;;  %v2278_v47 = vadd.f32 %v6994_v22, %v8727_v14  ;;  %v2141_v2 = vpop.f32.mrf.mxu0 }
 0x34b   :  { %2302 = vst [vmem:[#allocation2 + $0xa8] sm:$0xff] %v2140_v30  ;;  %v2142_v1 = vadd.f32 %v2141_v2, %v8730_v50  ;;  %v2269_v28 = vpop.f32.mrf.mxu1 }
 0x34c   :  { %2328 = vst [vmem:[#allocation2 + $0x178] sm:$0xff] %v2278_v47  ;;  %v2270_v3 = vadd.f32 %v2269_v28, %v8727_v14  ;;  %v2145_v38 = vpop.f32.mrf.mxu0 }
 0x34d   :  { %2303 = vst [vmem:[#allocation2 + $0xb0] sm:$0xff] %v2142_v1  ;;  %v2146_v24 = vadd.f32 %v2145_v38, %v8724_v54  ;;  %v8765_v11 = vpop.f32.mrf.mxu1 }
 0x34e   :  { %2322 = vst [vmem:[#allocation2 + $0x148] sm:$0xff] %v2270_v3  ;;  %v2147_v5 = vpop.f32.mrf.mxu0 }
 0x34f   :  { %2305 = vst [vmem:[#allocation2 + $0xc0] sm:$0xff] %v2146_v24  ;;  %v2148_v49 = vadd.f32 %v2147_v5, %v8730_v50  ;;  %v8768_v26 = vpop.f32.mrf.mxu1 }
 0x350   :  { %v2149_v23 = vpop.f32.mrf.mxu0 }
 0x351   :  { %2306 = vst [vmem:[#allocation2 + $0xc8] sm:$0xff] %v2148_v49  ;;  %v2150_v40 = vadd.f32 %v2149_v23, %v8724_v54  ;;  %v8771_v60 = vpop.f32.mrf.mxu1 }
 0x352   :  { %v2151_v14 = vpop.f32.mrf.mxu0 }
 0x353   :  { %2308 = vst [vmem:[#allocation2 + $0xd8] sm:$0xff] %v2150_v40  ;;  %v2152_v13 = vadd.f32 %v2151_v14, %v8730_v50  ;;  %v8774_v27 = vpop.f32.mrf.mxu1 }
 0x354   :  { %v2155_v12 = vpop.f32.mrf.mxu0 }
 0x355   :  { %2309 = vst [vmem:[#allocation2 + $0xe0] sm:$0xff] %v2152_v13  ;;  %v2156_v57 = vadd.f32 %v2155_v12, %v8724_v54  ;;  %v8777_v21 = vpop.f32.mrf.mxu1 }
 0x356   :  { %v2157_v52 = vpop.f32.mrf.mxu0 }
 0x357   :  { %2311 = vst [vmem:[#allocation2 + $0xf0] sm:$0xff] %v2156_v57  ;;  %v2158_v25 = vadd.f32 %v2157_v52, %v8730_v50  ;;  %v8780_v43 = vpop.f32.mrf.mxu1 }
 0x358   :  { %v2159_v39 = vpop.f32.mrf.mxu0 }
 0x359   :  { %2312 = vst [vmem:[#allocation2 + $0xf8] sm:$0xff] %v2158_v25  ;;  %v2160_v34 = vadd.f32 %v2159_v39, %v8724_v54  ;;  %v8783_v33 = vpop.f32.mrf.mxu1 }
 0x35a   :  { %v2161_v29 = vpop.f32.mrf.mxu0 }
 0x35b   :  { %2314 = vst [vmem:[#allocation2 + $0x108] sm:$0xff] %v2160_v34  ;;  %v2162_v45 = vadd.f32 %v2161_v29, %v8730_v50  ;;  %v8786_v55 = vpop.f32.mrf.mxu1 }
 0x35c   :  { %v2165_v58 = vpop.f32.mrf.mxu0 }
 0x35d   :  { %2315 = vst [vmem:[#allocation2 + $0x110] sm:$0xff] %v2162_v45  ;;  %v2166_v37 = vadd.f32 %v2165_v58, %v8724_v54  ;;  %v7009_v41 = vpop.f32.mrf.mxu1 }
 0x35e   :  { %v2167_v44 = vpop.f32.mrf.mxu0  ;;  %v2474_v5 = vadd.f32 %v7009_v41, %v8765_v11 }
 0x35f   :  { %2317 = vst [vmem:[#allocation2 + $0x120] sm:$0xff] %v2166_v37  ;;  %v2168_v17 = vadd.f32 %v2167_v44, %v8730_v50  ;;  %v2465_v53 = vpop.f32.mrf.mxu1 }
 0x360   :  { %v2169_v42 = vpop.f32.mrf.mxu0 }
 0x361   :  { %2318 = vst [vmem:[#allocation2 + $0x128] sm:$0xff] %v2168_v17  ;;  %v2170_v62 = vadd.f32 %v2169_v42, %v8724_v54  ;;  %v7010_v48 = vpop.f32.mrf.mxu1 }
 0x362   :  { %v2171_v59 = vpop.f32.mrf.mxu0  ;;  %v2477_v23 = vadd.f32 %v7010_v48, %v8771_v60  ;;  %v8810_v60 = vld [vmem:[%s10266_s10] ss:$0 sm:$0xff] }
 0x363   :  { %2320 = vst [vmem:[#allocation2 + $0x138] sm:$0xff] %v2170_v62  ;;  %v2172_v15 = vadd.f32 %v2171_v59, %v8730_v50  ;;  %v2468_v46 = vpop.f32.mrf.mxu1 }
 0x364   :  { %v2175_v16 = vpop.f32.mrf.mxu0  ;;  %v2469_v12 = vadd.f32 %v2468_v46, %v8774_v27 }
 0x365   :  { %2321 = vst [vmem:[#allocation2 + $0x140] sm:$0xff] %v2172_v15  ;;  %v2176_v32 = vadd.f32 %v2175_v16, %v8724_v54  ;;  %v8793_v18 = vpop.f32.mrf.mxu1 }
 0x366   :  { %v2177_v19 = vpop.f32.mrf.mxu0 }
 0x367   :  { %2323 = vst [vmem:[#allocation2 + $0x150] sm:$0xff] %v2176_v32  ;;  %v2178_v63 = vadd.f32 %v2177_v19, %v8730_v50  ;;  %v2481_v61 = vpop.f32.mrf.mxu1 }
 0x368   :  { %v2179_v4 = vpop.f32.mrf.mxu0  ;;  %v2482_v11 = vadd.f32 %v2481_v61, %v8780_v43  ;;  %v7461_v61 = vld [vmem:[%s10264_s11 + $0x20] sm:$0xff]  }
 0x369   :  { %2324 = vst [vmem:[#allocation2 + $0x158] sm:$0xff] %v2178_v63  ;;  %v2180_v8 = vadd.f32 %v2179_v4, %v8724_v54  ;;  %v8797_v31 = vpop.f32.mrf.mxu1  ;;  %v2466_v54 = vadd.f32 %v2465_v53, %v8768_v26 }
 0x36a   :  { %v2181_v6 = vpop.f32.mrf.mxu0 }
 0x36b   :  { %2326 = vst [vmem:[#allocation2 + $0x168] sm:$0xff] %v2180_v8  ;;  %v2182_v7 = vadd.f32 %v2181_v6, %v8730_v50  ;;  %v2484_v56 = vpop.f32.mrf.mxu1 }
 0x36c   :  { %v7019_v30 = vpop.f32.mrf.mxu0  ;;  %v2485_v4 = vadd.f32 %v2484_v56, %v8786_v55  ;;  %v7463_v55 = vld [vmem:[%s10264_s11 + $0x48] sm:$0xff]  }
 0x36d   :  { %2327 = vst [vmem:[#allocation2 + $0x170] sm:$0xff] %v2182_v7  ;;  %v7029_v22 = vpop.f32.mrf.mxu1  ;;  %v2572_v50 = vadd.f32 %v7019_v30, %v2474_v5 }
 0x36e   :  { %v2539_v47 = vpop.f32.mrf.mxu0 }
 0x36f   :  { %v2621_v1 = vpop.f32.mrf.mxu1  ;;  %v2570_v40 = vadd.f32 %v2539_v47, %v2466_v54  ;;  %v2654_v25 = vadd.f32 %v7029_v22, %v2572_v50  ;;  %v2490_v47 = vadd.f32 %v8793_v18, %v8777_v21 }
 0x370   :  { %v7020_v2 = vpop.f32.mrf.mxu0 }
 0x371   :  { %v7030_v38 = vpop.f32.mrf.mxu1  ;;  %v2573_v57 = vadd.f32 %v7020_v2, %v2477_v23  ;;  %v2652_v39 = vadd.f32 %v2621_v1, %v2570_v40 }
 0x372   :  { %v2542_v28 = vpop.f32.mrf.mxu0 }
 0x373   :  { %v2624_v14 = vpop.f32.mrf.mxu1  ;;  %v2571_v34 = vadd.f32 %v2542_v28, %v2469_v12  ;;  %v2655_v26 = vadd.f32 %v7030_v38, %v2573_v57  ;;  %v7464_v12 = vld [vmem:[%s10264_s11 + $0x40] sm:$0xff]  }
 0x374   :  { %v7023_v3 = vpop.f32.mrf.mxu0 }
 0x375   :  { %v7033_v29 = vpop.f32.mrf.mxu1  ;;  %v2653_v44 = vadd.f32 %v2624_v14, %v2571_v34  ;;  %v2576_v56 = vadd.f32 %v7023_v3, %v2490_v47 }
 0x376   :  { %v2555_v24 = vpop.f32.mrf.mxu0 }
 0x377   :  { %v2574_v27 = vadd.f32 %v2555_v24, %v2482_v11  ;;  %v2637_v17 = vpop.f32.mrf.mxu1  ;;  %v2658_v18 = vadd.f32 %v7033_v29, %v2576_v56 }
 0x378   :  { %v8802_v49 = vpop.f32.mrf.mxu0 }
 0x379   :  { %v2656_v16 = vadd.f32 %v2637_v17, %v2574_v27  ;;  %v7034_v32 = vpop.f32.mrf.mxu1  ;;  %v8876_v27 = vld [vmem:[%s10268_s14 + $0x4] sm:$0x3]  ;;  %v8881_v17 = vld [vmem:[%s10268_s14 + $0x2] sm:$0x3] }
 0x37a   :  { %v2558_v13 = vpop.f32.mrf.mxu0 }
 0x37b   :  { %v2575_v2 = vadd.f32 %v2558_v13, %v2485_v4  ;;  %v2640_v28 = vpop.f32.mrf.mxu1 }
 0x37c   :  { %v7039_v52 = vpop.f32.mrf.mxu0 }
 0x37d   :  { %v2736_v58 = vadd.f32 %v7039_v52, %v2654_v25  ;;  %v2657_v21 = vadd.f32 %v2640_v28, %v2575_v2  ;;  %v2493_v25 = vadd.f32 %v8797_v31, %v8783_v33 }
 0x37e   :  { %v2703_v45 = vpop.f32.mrf.mxu0 }
 0x37f   :  { %v2734_v37 = vadd.f32 %v2703_v45, %v2652_v39  ;;  %v2751_v48 = vadd.f32 %v8810_v60, %v2736_v58  ;;  %v2577_v34 = vadd.f32 %v8802_v49, %v2493_v25  ;;  %v7465_v49 = vld [vmem:[%s10267_s13 + $0x18] ss:$12 sps:$4 sm:$0xff]   ;;  %v7467_v58 = vld [vmem:[%s10267_s13 + $0x1c] ss:$12 sps:$4 sm:$0xff]  }
 0x380   :  { %v7040_v41 = vpop.f32.mrf.mxu0  ;;  %3339 = vmatprep.subr.bf16.mxu0 %v7467_v58 }
 0x381   :  { %v2749_v53 = vadd.f32 %v8810_v60, %v2734_v37  ;;  %v2737_v42 = vadd.f32 %v7040_v41, %v2655_v26  ;;  %v2759_v7 = vmax.f32 %v2751_v48, 0.0  ;;  %v2659_v45 = vadd.f32 %v7034_v32, %v2577_v34  ;;  %v7468_v37 = vld [vmem:[%s10267_s13 + $0x20] ss:$12 sps:$4 sm:$0xff]  }
 0x382   :  { %v2706_v62 = vpop.f32.mrf.mxu0  ;;  %v7469_v41 = vld [vmem:[%s10267_s13] ss:$12 sps:$4 sm:$0xff]  }
 0x383   :  { %v2757_v59 = vmax.f32 %v2749_v53, 0.0  ;;  %v2752_v43 = vadd.f32 %v8810_v60, %v2737_v42  ;;  %v2735_v15 = vadd.f32 %v2706_v62, %v2653_v44  ;;  %v7472_v44 = vld [vmem:[%s10267_s13 + $0x8] ss:$12 sps:$4 sm:$0xff]  }
 0x384   :  { %v7043_v46 = vpop.f32.mrf.mxu0 }
 0x385   :  { %v2771_v19 = vpack.c.bf16 %v2757_v59, %v10530_v9  ;;  %v2750_v63 = vadd.f32 %v8810_v60, %v2735_v15  ;;  %v2760_v8 = vmax.f32 %v2752_v43, 0.0  ;;  %v2740_v3 = vadd.f32 %v7043_v46, %v2658_v18 }
 0x386   :  { %v2719_v6 = vpop.f32.mrf.mxu0 }
 0x387   :  { %v2758_v30 = vmax.f32 %v2750_v63, 0.0  ;;  %v2738_v22 = vadd.f32 %v2719_v6, %v2656_v16  ;;  %7050 = vmatmul.mubr.msk.bf16.vlgmr.msra.gmra.mxu1 %vm1031_vm2, %v2771_v19  ;;  %v2766_v54 = vpack.c.bf16 %v2760_v8, %v2759_v7  ;;  %v2755_v13 = vadd.f32 %v8810_v60, %v2740_v3 }
 0x388   :  { %v7044_v1 = vpop.f32.mrf.mxu0  ;;  %7070 = vmatpush3.bf16.msra.mxu1 %v8708_v0 }
 0x389   :  { %v2765_v38 = vpack.c.bf16 %v2758_v30, %v2757_v59  ;;  %v2772_v24 = vpack.c.bf16 %v2759_v7, %v2758_v30  ;;  %v2753_v5 = vadd.f32 %v8810_v60, %v2738_v22  ;;  %7071 = vmatprep.subr.bf16.mxu1 %v7461_v61  ;;  %v2763_v52 = vmax.f32 %v2755_v13, 0.0 }
 0x38a   :  { %v2722_v50 = vpop.f32.mrf.mxu0  ;;  %v2741_v11 = vadd.f32 %v7044_v1, %v2659_v45 }
 0x38b   :  { %v2761_v23 = vmax.f32 %v2753_v5, 0.0  ;;  %7053 = vmatprep.mubr.msk.bf16.mxu1 %vm1031_vm2, %v2772_v24  ;;  %7065 = vmatprep.mubr.msk.bf16.mxu0 %vm1031_vm2, %v2765_v38  ;;  %v2739_v40 = vadd.f32 %v2722_v50, %v2657_v21 }
 0x38c   :  { %7066 = vmatmul.mubr.msk.bf16.gmra.mxu0 %vm1031_vm2, %v2766_v54  ;;  %7072 = vmatpush3.bf16.msra.mxu1 %v7461_v61  ;;  %v2756_v26 = vadd.f32 %v8810_v60, %v2741_v11  ;;  %v7063_v53 = vpop.f32.mrf.mxu0 }
 0x38d   :  { %v2773_v0 = vpack.c.bf16 %v2761_v23, %v2760_v8  ;;  %7085 = vmatprep.mubr.msk.bf16.mxu0 %vm1031_vm2, %v2771_v19  ;;  %7093 = vmatprep.subr.bf16.mxu1 %v7463_v55  ;;  %v2754_v14 = vadd.f32 %v8810_v60, %v2739_v40  ;;  %v7471_v60 = vld [vmem:[%s10267_s13 + $0x4] ss:$12 sps:$4 sm:$0xff]  }
 0x38e   :  { %v2764_v33 = vmax.f32 %v2756_v26, 0.0  ;;  %v2917_v42 = vpop.f32.mrf.mxu0 }
 0x38f   :  { %7054 = vmatmul.mubr.msk.bf16.gmra.mxu1 %vm1031_vm2, %v2773_v0  ;;  %v2762_v57 = vmax.f32 %v2754_v14, 0.0 }
 0x390   :  { %7073 = vmatprep.mubr.bf16.mxu1 %v10529_v36  ;;  %v3136_v31 = vpack.c.bf16 %v2764_v33, %v2763_v52  ;;  %v7064_v62 = vpop.f32.mrf.mxu0 }
 0x391   :  { %v3042_v39 = vpack.c.bf16 %v2763_v52, %v2762_v57  ;;  %v2948_v29 = vpack.c.bf16 %v2762_v57, %v2761_v23 }
 0x392   :  { %v2920_v59 = vpop.f32.mrf.mxu0 }
 0x394   :  { %7086 = vmatmul.mubr.msk.bf16.vlgmr.msra.gmra.mxu0 %vm1031_vm2, %v2772_v24 }
 0x395   :  { %7089 = vmatprep.mubr.msk.bf16.mxu0 %vm1031_vm2, %v2773_v0  ;;  %3340 = vmatpush1.bf16.msra.mxu0 %v7465_v49  ;;  %v6086_v49 = vld [vmem:[%s10269_s12] ss:$0 sm:$0xff] }
 0x396   :  { %3341 = vmatprep.subr.bf16.mxu0 %v7471_v60 }
 0x397   :  { %7074 = vmatmul.mubr.msk.bf16.vlgmr.msra.gmra.mxu1 %vm1031_vm2, %v2765_v38 }
 0x398   :  { %7077 = vmatprep.mubr.msk.bf16.mxu1 %vm1031_vm2, %v2766_v54  ;;  %7094 = vmatpush3.bf16.msra.mxu1 %v7463_v55 }
 0x399   :  { %7095 = vmatprep.subr.bf16.mxu1 %v7464_v12  ;;  %3342 = vmatpush1.bf16.msra.mxu0 %v7469_v41 }
 0x39a   :  { %7393 = vmatprep.subr.msk.bf16.mxu0 %vm134_vm0, %v8876_v27 }
 0x39c   :  { %7090 = vmatmul.mubr.msk.bf16.gmra.mxu0 %vm1031_vm2, %v3042_v39  ;;  %7096 = vmatpush3.bf16.msra.mxu1 %v7464_v12 }
 0x39d   :  { %3359 = vmatprep.mubr.bf16.mxu0 %v10525_v10  ;;  %7105 = vmatprep.subr.bf16.mxu1 %v7468_v37 }
 0x39f   :  { %7078 = vmatmul.mubr.msk.bf16.gmra.mxu1 %vm1031_vm2, %v2948_v29 }
 0x3a0   :  { %7097 = vmatprep.mubr.msk.bf16.mxu1 %vm1031_vm2, %v2765_v38 }
 0x3a7   :  { %7098 = vmatmul.mubr.msk.bf16.vlgmr.msra.gmra.mxu1 %vm1031_vm2, %v2766_v54 }
 0x3a8   :  { %7101 = vmatprep.mubr.msk.bf16.mxu1 %vm1031_vm2, %v2948_v29  ;;  %7106 = vmatpush3.bf16.msra.mxu1 %v7468_v37 }
 0x3a9   :  { %7107 = vmatprep.subr.bf16.mxu1 %v7472_v44 }
 0x3ac   :  { %7108 = vmatpush3.bf16.msra.mxu1 %v7472_v44 }
 0x3ad   :  { %7391 = vmatprep.subr.msk.bf16.mxu1 %vm134_vm0, %v8881_v17 }
 0x3af   :  { %7102 = vmatmul.mubr.msk.bf16.gmra.mxu1 %vm1031_vm2, %v3136_v31 }
 0x447   :  { %v7051_v48 = vpop.f32.mrf.mxu1 }
 0x448   :  { %v2926_v55 = vadd.f32 %v7063_v53, %v7051_v48 }
 0x449   :  { %v2834_v43 = vpop.f32.mrf.mxu1 }
 0x44a   :  { %v2918_v5 = vadd.f32 %v2917_v42, %v2834_v43 }
 0x44b   :  { %v7052_v15 = vpop.f32.mrf.mxu1 }
 0x44c   :  { %v7067_v46 = vpop.f32.mrf.mxu0  ;;  %v2929_v23 = vadd.f32 %v7064_v62, %v7052_v15 }
 0x44d   :  { %v2837_v16 = vpop.f32.mrf.mxu1 }
 0x44e   :  { %v2933_v32 = vpop.f32.mrf.mxu0  ;;  %v2921_v18 = vadd.f32 %v2920_v59, %v2837_v16 }
 0x44f   :  { %v7055_v19 = vpop.f32.mrf.mxu1 }
 0x450   :  { %v7068_v63 = vpop.f32.mrf.mxu0  ;;  %v2942_v29 = vadd.f32 %v7067_v46, %v7055_v19 }
 0x451   :  { %v2850_v61 = vpop.f32.mrf.mxu1 }
 0x452   :  { %v2936_v4 = vpop.f32.mrf.mxu0  ;;  %v2934_v25 = vadd.f32 %v2933_v32, %v2850_v61 }
 0x453   :  { %v7056_v8 = vpop.f32.mrf.mxu1 }
 0x454   :  { %v7087_v7 = vpop.f32.mrf.mxu0  ;;  %v2945_v33 = vadd.f32 %v7068_v63, %v7056_v8 }
 0x455   :  { %v2853_v6 = vpop.f32.mrf.mxu1 }
 0x456   :  { %v3097_v47 = vpop.f32.mrf.mxu0  ;;  %v2937_v60 = vadd.f32 %v2936_v4, %v2853_v6 }
 0x457   :  { %v7075_v30 = vpop.f32.mrf.mxu1 }
 0x458   :  { %v7088_v28 = vpop.f32.mrf.mxu0  ;;  %v3036_v21 = vadd.f32 %v7075_v30, %v2926_v55 }
 0x459   :  { %v3003_v22 = vpop.f32.mrf.mxu1 }
 0x45a   :  { %v3100_v56 = vpop.f32.mrf.mxu0  ;;  %v3034_v50 = vadd.f32 %v3003_v22, %v2918_v5  ;;  %v3130_v57 = vadd.f32 %v7087_v7, %v3036_v21  ;;  %v3494_v21 = vld [vmem:[%s10268_s14] sm:$0x3] }
 0x45b   :  { %v7076_v2 = vpop.f32.mrf.mxu1 }
 0x45c   :  { %v3037_v40 = vadd.f32 %v7076_v2, %v2929_v23  ;;  %v7091_v3 = vpop.f32.mrf.mxu0  ;;  %v3128_v12 = vadd.f32 %v3097_v47, %v3034_v50 }
 0x45d   :  { %v3006_v1 = vpop.f32.mrf.mxu1 }
 0x45e   :  { %v3035_v13 = vadd.f32 %v3006_v1, %v2921_v18  ;;  %v3131_v34 = vadd.f32 %v7088_v28, %v3037_v40  ;;  %v3113_v45 = vpop.f32.mrf.mxu0  ;;  %v3489_v18 = vld [vmem:[%s10270_s2] sm:$0xff] }
 0x45f   :  { %v7079_v38 = vpop.f32.mrf.mxu1 }
 0x460   :  { %v3129_v37 = vadd.f32 %v3100_v56, %v3035_v13  ;;  %v3040_v41 = vadd.f32 %v7079_v38, %v2942_v29  ;;  %v7092_v59 = vpop.f32.mrf.mxu0  ;;  %v3506_v56 = vsel %vm134_vm0, %v8881_v17, 0 }
 0x461   :  { %v3019_v24 = vpop.f32.mrf.mxu1 }
 0x462   :  { %v3038_v31 = vadd.f32 %v3019_v24, %v2934_v25  ;;  %v3134_v63 = vadd.f32 %v7091_v3, %v3040_v41  ;;  %v3116_v4 = vpop.f32.mrf.mxu0  ;;  %v3619_v24 = vsel %vm134_vm0, %v8876_v27, 0  ;;  %v3491_v25 = vld [vmem:[%s10270_s2 + $0x10] sm:$0xff] }
 0x463   :  { %v7080_v54 = vpop.f32.mrf.mxu1 }
 0x464   :  { %v3041_v53 = vadd.f32 %v7080_v54, %v2945_v33  ;;  %v3132_v32 = vadd.f32 %v3113_v45, %v3038_v31  ;;  %v3492_v45 = vld [vmem:[%s10270_s2 + $0x18] sm:$0xff]  ;;  %v7474_v33 = vld [vmem:[%s10271_s16 + $0x8] sm:$0xff]   ;;  %v7475_v31 = vld [vmem:[%s10271_s16 + $0x10] sm:$0xff]  }
 0x465   :  { %v3022_v0 = vpop.f32.mrf.mxu1 }
 0x466   :  { %v3039_v46 = vadd.f32 %v3022_v0, %v2937_v60  ;;  %v3135_v22 = vadd.f32 %v7092_v59, %v3041_v53 }
 0x467   :  { %v7099_v14 = vpop.f32.mrf.mxu1 }
 0x468   :  { %v3224_v11 = vadd.f32 %v7099_v14, %v3130_v57  ;;  %v3133_v38 = vadd.f32 %v3116_v4, %v3039_v46 }
 0x469   :  { %v3191_v52 = vpop.f32.mrf.mxu1 }
 0x46a   :  { %v3222_v39 = vadd.f32 %v3191_v52, %v3128_v12  ;;  %v3239_v43 = vadd.f32 %v6086_v49, %v3224_v11  ;;  %v3495_v12 = vpack.c.bf16 %v3489_v18, %v10530_v9  ;;  %v3490_v52 = vld [vmem:[%s10270_s2 + $0x8] sm:$0xff]  ;;  %v3612_v11 = vpack.c.bf16 %v3492_v45, %v3491_v25 }
 0x46b   :  { %v7100_v26 = vpop.f32.mrf.mxu1  ;;  %v3493_v29 = vpack.c.bf16 %v3490_v52, %v3489_v18 }
 0x46c   :  { %v3225_v58 = vadd.f32 %v7100_v26, %v3131_v34  ;;  %v3237_v42 = vadd.f32 %v6086_v49, %v3222_v39  ;;  %v3247_v6 = vmax.f32 %v3239_v43, 0.0  ;;  %v3496_v39 = vpack.c.bf16 %v3491_v25, %v3490_v52  ;;  %v7473_v26 = vld [vmem:[%s10271_s16 + $0x18] sm:$0xff]  }
 0x46d   :  { %v3194_v44 = vpop.f32.mrf.mxu1  ;;  %v3561_v34 = vsel %vm134_vm0, %v3494_v21, 0 }
 0x46e   :  { %v3240_v62 = vadd.f32 %v6086_v49, %v3225_v58  ;;  %v3223_v48 = vadd.f32 %v3194_v44, %v3129_v37  ;;  %v3245_v8 = vmax.f32 %v3237_v42, 0.0  ;;  %v6087_v58 = vld [vmem:[%s10265_s19 + $0x3] sm:$0x7] }
 0x46f   :  { %v7103_v15 = vpop.f32.mrf.mxu1  ;;  %v8952_v37 = vrot.slane %v6087_v58, %v8714_v20  ;;  %v3279_v60 = vrot.slane %v6087_v58, %v8719_v51  ;;  %v8956_v41 = vrot.slane %v6087_v58, %v8721_v35 }
 0x470   :  { %v3238_v16 = vadd.f32 %v6086_v49, %v3223_v48  ;;  %v3248_v19 = vmax.f32 %v3240_v62, 0.0  ;;  %v3228_v47 = vadd.f32 %v7103_v15, %v3134_v63 }
 0x471   :  { %v3207_v61 = vpop.f32.mrf.mxu1 }
 0x472   :  { %v3246_v7 = vmax.f32 %v3238_v16, 0.0  ;;  %v3226_v30 = vadd.f32 %v3207_v61, %v3132_v32  ;;  %v3256_v5 = vpack.c.bf16 %v3248_v19, %v3247_v6  ;;  %v3243_v0 = vadd.f32 %v6086_v49, %v3228_v47 }
 0x473   :  { %v7104_v2 = vpop.f32.mrf.mxu1 }
 0x474   :  { %v3255_v1 = vpack.c.bf16 %v3246_v7, %v3245_v8  ;;  %v3229_v28 = vadd.f32 %v7104_v2, %v3135_v22  ;;  %v3241_v54 = vadd.f32 %v6086_v49, %v3226_v30  ;;  %v3251_v14 = vmax.f32 %v3243_v0, 0.0 }
 0x475   :  { %v3210_v55 = vpop.f32.mrf.mxu1 }
 0x476   :  { %v3244_v23 = vadd.f32 %v6086_v49, %v3229_v28  ;;  %v3227_v50 = vadd.f32 %v3210_v55, %v3133_v38  ;;  %6094 = vmatmul.mubr.msk.bf16.vlgmr.msra.gmra.mxu0 %vm1031_vm2, %v3255_v1  ;;  %7109 = vmatprep.mubr.msk.bf16.mxu1 %vm1031_vm2, %v3255_v1  ;;  %v3249_v40 = vmax.f32 %v3241_v54, 0.0 }
 0x477   :  { %7110 = vmatmul.mubr.msk.bf16.vlgmr.msra.gmra.mxu1 %vm1031_vm2, %v3256_v5  ;;  %7130 = vmatpush3.bf16.msra.mxu0 %v3619_v24 }
 0x478   :  { %v3242_v27 = vadd.f32 %v6086_v49, %v3227_v50  ;;  %3369 = vmatprep.mubr.bf16.mxu0 %v10525_v10  ;;  %7118 = vmatpush3.bf16.msra.mxu1 %v3506_v56  ;;  %v3252_v17 = vmax.f32 %v3244_v23, 0.0  ;;  %v8945_v49 = vld [vmem:[%s10271_s16 + $0x28] sm:$0xff]  }
 0x479   :  { %7392 = vmatprep.subr.msk.bf16.mxu1 %vm134_vm0, %v3494_v21  ;;  %7143 = vmatprep.subr.bf16.mxu0 %v7474_v33 }
 0x47a   :  { %v3250_v3 = vmax.f32 %v3242_v27, 0.0  ;;  %v3258_v57 = vpack.c.bf16 %v3252_v17, %v3251_v14 }
 0x47c   :  { %v3257_v13 = vpack.c.bf16 %v3250_v3, %v3249_v40 }
 0x47e   :  { %6095 = vmatmul.mubr.msk.bf16.gmra.mxu0 %vm1031_vm2, %v3256_v5  ;;  %7113 = vmatprep.mubr.msk.bf16.mxu1 %vm1031_vm2, %v3257_v13 }
 0x47f   :  { %7114 = vmatmul.mubr.msk.bf16.gmra.mxu1 %vm1031_vm2, %v3258_v57  ;;  %3379 = vmatprep.mubr.bf16.mxu0 %v10525_v10 }
 0x480   :  { %7119 = vmatprep.mubr.msk.bf16.mxu1 %vm112_vm1, %v3495_v12 }
 0x486   :  { %6096 = vmatmul.mubr.msk.bf16.gmra.mxu0 %vm1031_vm2, %v3257_v13 }
 0x487   :  { %7120 = vmatmul.mubr.msk.bf16.vlgmr.msra.gmra.mxu1 %vm112_vm1, %v3496_v39  ;;  %3389 = vmatprep.mubr.bf16.mxu0 %v10525_v10 }
 0x488   :  { %7124 = vmatpush3.bf16.msra.mxu1 %v3561_v34  ;;  %7125 = vmatprep.mubr.bf16.mxu1 %v10529_v36 }
 0x489   :  { %7135 = vmatprep.subr.bf16.mxu1 %v7473_v26 }
 0x48e   :  { %6097 = vmatmul.mubr.msk.bf16.gmra.mxu0 %vm1031_vm2, %v3258_v57 }
 0x48f   :  { %7126 = vmatmul.mubr.msk.bf16.vlgmr.msra.gmra.mxu1 %vm112_vm1, %v3493_v29  ;;  %7131 = vmatprep.mubr.msk.bf16.mxu0 %vm112_vm1, %v3493_v29 }
 0x490   :  { %7136 = vmatpush3.bf16.msra.mxu1 %v7473_v26 }
 0x491   :  { %7137 = vmatprep.subr.bf16.mxu1 %v7475_v31 }
 0x494   :  { %7138 = vmatpush3.bf16.msra.mxu1 %v7475_v31 }
 0x495   :  { %7151 = vmatprep.subr.bf16.mxu1 %v8945_v49 }
 0x496   :  { %7132 = vmatmul.mubr.msk.bf16.vlgmr.msra.gmra.mxu0 %vm112_vm1, %v3612_v11 }
 0x497   :  { %7147 = vmatprep.mubr.bf16.mxu0 %v10529_v36  ;;  %7144 = vmatpush3.bf16.msra.mxu0 %v7474_v33  ;;  %v7476_v36 = vld [vmem:[%s10271_s16] sm:$0xff]  }
 0x498   :  { %7145 = vmatprep.subr.bf16.mxu0 %v7476_v36 }
 0x49b   :  { %7146 = vmatpush3.bf16.msra.mxu0 %v7476_v36 }
 0x536   :  { %v3361_v44 = vpop.f32.mrf.mxu0 }
 0x537   :  { %v3362_v53 = vadd.f32 %v3361_v44, %v8952_v37  ;;  %v7111_v42 = vpop.f32.mrf.mxu1 }
 0x538   :  { %v3443_v62 = vadd.f32 %v7111_v42, %v3279_v60  ;;  %v3363_v48 = vpop.f32.mrf.mxu0 }
 0x539   :  { %3465 = vst [vmem:[#allocation3] sm:$0xff] %v3362_v53  ;;  %v3364_v59 = vadd.f32 %v3363_v48, %v8956_v41  ;;  %v3434_v43 = vpop.f32.mrf.mxu1 }
 0x53a   :  { %3473 = vst [vmem:[#allocation3 + $0x40] sm:$0xff] %v3443_v62  ;;  %v3435_v15 = vadd.f32 %v3434_v43, %v3279_v60  ;;  %v3365_v46 = vpop.f32.mrf.mxu0  ;;  %v6109_v43 = vld [vmem:[%s10272_s15] ss:$0 sm:$0xff] }
 0x53b   :  { %3466 = vst [vmem:[#allocation3 + $0x8] sm:$0xff] %v3364_v59  ;;  %v3366_v16 = vadd.f32 %v3365_v46, %v8952_v37  ;;  %v7112_v32 = vpop.f32.mrf.mxu1 }
 0x53c   :  { %3467 = vst [vmem:[#allocation3 + $0x10] sm:$0xff] %v3435_v15  ;;  %v3446_v19 = vadd.f32 %v7112_v32, %v3279_v60  ;;  %v3367_v63 = vpop.f32.mrf.mxu0 }
 0x53d   :  { %3468 = vst [vmem:[#allocation3 + $0x18] sm:$0xff] %v3366_v16  ;;  %v3368_v61 = vadd.f32 %v3367_v63, %v8956_v41  ;;  %v3437_v8 = vpop.f32.mrf.mxu1 }
 0x53e   :  { %3476 = vst [vmem:[#allocation3 + $0x58] sm:$0xff] %v3446_v19  ;;  %v3438_v7 = vadd.f32 %v3437_v8, %v3279_v60  ;;  %v3371_v30 = vpop.f32.mrf.mxu0 }
 0x53f   :  { %3469 = vst [vmem:[#allocation3 + $0x20] sm:$0xff] %v3368_v61  ;;  %v3372_v22 = vadd.f32 %v3371_v30, %v8952_v37  ;;  %v7115_v4 = vpop.f32.mrf.mxu1 }
 0x540   :  { %3470 = vst [vmem:[#allocation3 + $0x28] sm:$0xff] %v3438_v7  ;;  %v3459_v6 = vadd.f32 %v7115_v4, %v3279_v60  ;;  %v3373_v47 = vpop.f32.mrf.mxu0 }
 0x541   :  { %3471 = vst [vmem:[#allocation3 + $0x30] sm:$0xff] %v3372_v22  ;;  %v3374_v2 = vadd.f32 %v3373_v47, %v8956_v41  ;;  %v3450_v1 = vpop.f32.mrf.mxu1 }
 0x542   :  { %3485 = vst [vmem:[#allocation3 + $0xa0] sm:$0xff] %v3459_v6  ;;  %v3451_v28 = vadd.f32 %v3450_v1, %v3279_v60  ;;  %v3375_v38 = vpop.f32.mrf.mxu0 }
 0x543   :  { %3472 = vst [vmem:[#allocation3 + $0x38] sm:$0xff] %v3374_v2  ;;  %v3376_v24 = vadd.f32 %v3375_v38, %v8952_v37  ;;  %v7116_v5 = vpop.f32.mrf.mxu1  ;;  %v7478_v2 = vld [vmem:[%s10271_s16 + $0x20] sm:$0xff]  }
 0x544   :  { %3479 = vst [vmem:[#allocation3 + $0x70] sm:$0xff] %v3451_v28  ;;  %v3462_v55 = vadd.f32 %v7116_v5, %v3279_v60  ;;  %v3377_v56 = vpop.f32.mrf.mxu0  ;;  %v7481_v28 = vld [vmem:[%s10273_s18 + $0x1c] ss:$12 sps:$4 sm:$0xff]   ;;  %v7479_v38 = vld [vmem:[%s10273_s18 + $0x18] ss:$12 sps:$4 sm:$0xff]  }
 0x545   :  { %3474 = vst [vmem:[#allocation3 + $0x48] sm:$0xff] %v3376_v24  ;;  %v3378_v54 = vadd.f32 %v3377_v56, %v8956_v41  ;;  %v3453_v23 = vpop.f32.mrf.mxu1  ;;  %3999 = vmatprep.subr.bf16.mxu0 %v7481_v28  ;;  %v7485_v24 = vld [vmem:[%s10273_s18 + $0x4] ss:$12 sps:$4 sm:$0xff]   ;;  %v7483_v5 = vld [vmem:[%s10273_s18] ss:$12 sps:$4 sm:$0xff]  }
 0x546   :  { %3488 = vst [vmem:[#allocation3 + $0xb8] sm:$0xff] %v3462_v55  ;;  %v3454_v50 = vadd.f32 %v3453_v23, %v3279_v60  ;;  %v3381_v21 = vpop.f32.mrf.mxu0  ;;  %v7486_v55 = vld [vmem:[%s10273_s18 + $0x8] ss:$12 sps:$4 sm:$0xff]  }
 0x547   :  { %3475 = vst [vmem:[#allocation3 + $0x50] sm:$0xff] %v3378_v54  ;;  %v3382_v0 = vadd.f32 %v3381_v21, %v8952_v37  ;;  %v7121_v27 = vpop.f32.mrf.mxu1  ;;  %v9137_v28 = vld [vmem:[%s10275_s20 + $0x90] sm:$0xff] }
 0x548   :  { %3482 = vst [vmem:[#allocation3 + $0x88] sm:$0xff] %v3454_v50  ;;  %v3383_v17 = vpop.f32.mrf.mxu0  ;;  %10558 = vst [vmem:[#allocation18_spill] sm:$0xff] %v9137_v28 }
 0x549   :  { %3477 = vst [vmem:[#allocation3 + $0x60] sm:$0xff] %v3382_v0  ;;  %v3384_v18 = vadd.f32 %v3383_v17, %v8956_v41  ;;  %v3542_v40 = vpop.f32.mrf.mxu1 }
 0x54a   :  { %v3385_v3 = vpop.f32.mrf.mxu0 }
 0x54b   :  { %3478 = vst [vmem:[#allocation3 + $0x68] sm:$0xff] %v3384_v18  ;;  %v3386_v14 = vadd.f32 %v3385_v3, %v8952_v37  ;;  %v7122_v13 = vpop.f32.mrf.mxu1 }
 0x54c   :  { %v3387_v12 = vpop.f32.mrf.mxu0 }
 0x54d   :  { %3480 = vst [vmem:[#allocation3 + $0x78] sm:$0xff] %v3386_v14  ;;  %v3388_v57 = vadd.f32 %v3387_v12, %v8956_v41  ;;  %v3545_v52 = vpop.f32.mrf.mxu1 }
 0x54e   :  { %v3391_v25 = vpop.f32.mrf.mxu0 }
 0x54f   :  { %3481 = vst [vmem:[#allocation3 + $0x80] sm:$0xff] %v3388_v57  ;;  %v3392_v39 = vadd.f32 %v3391_v25, %v8952_v37  ;;  %v7127_v34 = vpop.f32.mrf.mxu1 }
 0x550   :  { %v3393_v29 = vpop.f32.mrf.mxu0  ;;  %v3606_v44 = vadd.f32 %v7127_v34, %v7121_v27 }
 0x551   :  { %3483 = vst [vmem:[#allocation3 + $0x90] sm:$0xff] %v3392_v39  ;;  %v3394_v45 = vadd.f32 %v3393_v29, %v8956_v41  ;;  %v3597_v11 = vpop.f32.mrf.mxu1  ;;  %v6129_v39 = vld [vmem:[%s10274_s17] ss:$0 sm:$0xff] }
 0x552   :  { %v3395_v26 = vpop.f32.mrf.mxu0  ;;  %v3598_v53 = vadd.f32 %v3597_v11, %v3542_v40 }
 0x553   :  { %3484 = vst [vmem:[#allocation3 + $0x98] sm:$0xff] %v3394_v45  ;;  %v3396_v33 = vadd.f32 %v3395_v26, %v8952_v37  ;;  %v7128_v31 = vpop.f32.mrf.mxu1 }
 0x554   :  { %v3397_v36 = vpop.f32.mrf.mxu0  ;;  %v3609_v32 = vadd.f32 %v7128_v31, %v7122_v13 }
 0x555   :  { %3486 = vst [vmem:[#allocation3 + $0xa8] sm:$0xff] %v3396_v33  ;;  %v3398_v58 = vadd.f32 %v3397_v36, %v8956_v41  ;;  %v3600_v42 = vpop.f32.mrf.mxu1 }
 0x556   :  { %v7133_v60 = vpop.f32.mrf.mxu0  ;;  %v3601_v46 = vadd.f32 %v3600_v42, %v3545_v52 }
 0x557   :  { %3487 = vst [vmem:[#allocation3 + $0xb0] sm:$0xff] %v3398_v58  ;;  %v3672_v48 = vadd.f32 %v7133_v60, %v3606_v44 }
 0x558   :  { %v3655_v62 = vpop.f32.mrf.mxu0 }
 0x559   :  { %v3670_v59 = vadd.f32 %v3655_v62, %v3598_v53  ;;  %v3683_v19 = vadd.f32 %v6109_v43, %v3672_v48  ;;  %v9017_v62 = vld [vmem:[%s10275_s20] sm:$0xff]  ;;  %v9022_v48 = vld [vmem:[%s10275_s20 + $0x8] sm:$0xf] }
 0x55a   :  { %v7134_v15 = vpop.f32.mrf.mxu0  ;;  %10534 = vst [vmem:[#allocation22_spill] sm:$0xff] %v9017_v62  ;;  %10535 = vst [vmem:[#allocation26_spill] sm:$0xff] %v9022_v48 }
 0x55b   :  { %v3681_v37 = vadd.f32 %v6109_v43, %v3670_v59  ;;  %v3673_v8 = vadd.f32 %v7134_v15, %v3609_v32  ;;  %v3687_v30 = vmax.f32 %v3683_v19, 0.0  ;;  %v9027_v59 = vld [vmem:[%s10275_s20 + $0xc] sm:$0xff]  ;;  %v9042_v15 = vld [vmem:[%s10275_s20 + $0x20] sm:$0xf]  ;;  %v9062_v32 = vld [vmem:[%s10275_s20 + $0x38] sm:$0xf] }
 0x55c   :  { %v3658_v16 = vpop.f32.mrf.mxu0  ;;  %10536 = vst [vmem:[#allocation13_spill] sm:$0xff] %v9027_v59  ;;  %10539 = vst [vmem:[#allocation27_spill] sm:$0xff] %v9042_v15  ;;  %v9067_v19 = vld [vmem:[%s10275_s20 + $0x3c] sm:$0xff] }
 0x55d   :  { %v3685_v63 = vmax.f32 %v3681_v37, 0.0  ;;  %v3671_v41 = vadd.f32 %v3658_v16, %v3601_v46  ;;  %v3684_v4 = vadd.f32 %v6109_v43, %v3673_v8  ;;  %v9047_v46 = vld [vmem:[%s10275_s20 + $0x24] sm:$0xff]  ;;  %v9052_v37 = vld [vmem:[%s10275_s20 + $0x2c] sm:$0xf]  ;;  %v9057_v16 = vld [vmem:[%s10275_s20 + $0x30] sm:$0xff]  ;;  %10543 = vst [vmem:[#allocation32_spill] sm:$0xff] %v9062_v32 }
 0x55e   :  { %10540 = vst [vmem:[#allocation29_spill] sm:$0xff] %v9047_v46  ;;  %10541 = vst [vmem:[#allocation12_spill] sm:$0xff] %v9052_v37  ;;  %v9087_v8 = vld [vmem:[%s10275_s20 + $0x54] sm:$0xff] }
 0x55f   :  { %v3694_v61 = vpack.c.bf16 %v3685_v63, %v10530_v9  ;;  %v3682_v7 = vadd.f32 %v6109_v43, %v3671_v41  ;;  %v3688_v9 = vmax.f32 %v3684_v4, 0.0  ;;  %v9037_v43 = vld [vmem:[%s10275_s20 + $0x18] sm:$0xff]  ;;  %10542 = vst [vmem:[#allocation14_spill] sm:$0xff] %v9057_v16  ;;  %10544 = vst [vmem:[#allocation28_spill] sm:$0xff] %v9067_v19  ;;  %v9077_v41 = vld [vmem:[%s10275_s20 + $0x48] sm:$0xff] }
 0x560   :  { %10538 = vst [vmem:[#allocation23_spill] sm:$0xff] %v9037_v43  ;;  %10546 = vst [vmem:[#allocation16_spill] sm:$0xff] %v9077_v41  ;;  %v9107_v4 = vld [vmem:[%s10275_s20 + $0x6c] sm:$0xff] }
 0x561   :  { %v3686_v22 = vmax.f32 %v3682_v7, 0.0  ;;  %7139 = vmatprep.mubr.msk.bf16.mxu1 %vm1031_vm2, %v3694_v61  ;;  %v3832_v1 = vpack.c.bf16 %v3688_v9, %v3687_v30  ;;  %v9082_v61 = vld [vmem:[%s10275_s20 + $0x50] sm:$0xf]  ;;  %10548 = vst [vmem:[#allocation20_spill] sm:$0xff] %v9087_v8  ;;  %v9092_v7 = vld [vmem:[%s10275_s20 + $0x5c] sm:$0xf] }
 0x562   :  { %10547 = vst [vmem:[#allocation30_spill] sm:$0xff] %v9082_v61  ;;  %10549 = vst [vmem:[#allocation9_spill] sm:$0xff] %v9092_v7  ;;  %v9127_v9 = vld [vmem:[%s10275_s20 + $0x84] sm:$0xff] }
 0x563   :  { %v3689_v6 = vpack.c.bf16 %v3686_v22, %v3685_v63  ;;  %v3695_v47 = vpack.c.bf16 %v3687_v30, %v3686_v22  ;;  %v9072_v63 = vld [vmem:[%s10275_s20 + $0x44] sm:$0xf]  ;;  %v9102_v22 = vld [vmem:[%s10275_s20 + $0x68] sm:$0xf]  ;;  %10552 = vst [vmem:[#allocation31_spill] sm:$0xff] %v9107_v4  ;;  %10556 = vst [vmem:[#allocation17_spill] sm:$0xff] %v9127_v9 }
 0x564   :  { %10545 = vst [vmem:[#allocation7_spill] sm:$0xff] %v9072_v63  ;;  %v9097_v30 = vld [vmem:[%s10275_s20 + $0x60] sm:$0xff]  ;;  %10551 = vst [vmem:[#allocation6_spill] sm:$0xff] %v9102_v22 }
 0x565   :  { %7140 = vmatmul.mubr.msk.bf16.vlgmr.msra.gmra.mxu1 %vm1031_vm2, %v3695_v47  ;;  %7148 = vmatmul.mubr.msk.bf16.vlgmr.msra.gmra.mxu0 %vm1031_vm2, %v3689_v6  ;;  %10550 = vst [vmem:[#allocation11_spill] sm:$0xff] %v9097_v30  ;;  %v9117_v47 = vld [vmem:[%s10275_s20 + $0x78] sm:$0xff] }
 0x566   :  { %7152 = vmatpush3.bf16.msra.mxu1 %v8945_v49  ;;  %7155 = vmatprep.mubr.msk.bf16.mxu1 %vm1031_vm2, %v3689_v6  ;;  %v7482_v49 = vld [vmem:[%s10273_s18 + $0x20] ss:$12 sps:$4 sm:$0xff]   ;;  %v9112_v6 = vld [vmem:[%s10275_s20 + $0x74] sm:$0xf]  ;;  %10554 = vst [vmem:[#allocation15_spill] sm:$0xff] %v9117_v47 }
 0x567   :  { %7153 = vmatprep.subr.bf16.mxu1 %v7478_v2  ;;  %4019 = vmatprep.mubr.bf16.mxu0 %v10525_v10  ;;  %10553 = vst [vmem:[#allocation24_spill] sm:$0xff] %v9112_v6 }
 0x568   :  { %4000 = vmatpush1.bf16.msra.mxu0 %v7479_v38  ;;  %v9142_v38 = vld [vmem:[%s10275_s20 + $0x98] sm:$0xf] }
 0x569   :  { %4001 = vmatprep.subr.bf16.mxu0 %v7485_v24  ;;  %10559 = vst [vmem:[#allocation8_spill] sm:$0xff] %v9142_v38  ;;  %v9152_v24 = vld [vmem:[%s10275_s20 + $0xa4] sm:$0xf] }
 0x56a   :  { %7154 = vmatpush3.bf16.msra.mxu1 %v7478_v2  ;;  %v9122_v2 = vld [vmem:[%s10275_s20 + $0x80] sm:$0xf]  ;;  %10561 = vst [vmem:[#allocation35_spill] sm:$0xff] %v9152_v24 }
 0x56b   :  { %7159 = vmatprep.subr.bf16.mxu1 %v7482_v49  ;;  %10555 = vst [vmem:[#allocation33_spill] sm:$0xff] %v9122_v2 }
 0x56c   :  { %4002 = vmatpush1.bf16.msra.mxu0 %v7483_v5  ;;  %v9157_v5 = vld [vmem:[%s10275_s20 + $0xa8] sm:$0xff] }
 0x56d   :  { %7156 = vmatmul.mubr.msk.bf16.vlgmr.msra.gmra.mxu1 %vm1031_vm2, %v3832_v1  ;;  %v9132_v1 = vld [vmem:[%s10275_s20 + $0x8c] sm:$0xf]  ;;  %10562 = vst [vmem:[#allocation36_spill] sm:$0xff] %v9157_v5 }
 0x56e   :  { %7160 = vmatpush3.bf16.msra.mxu1 %v7482_v49  ;;  %10557 = vst [vmem:[#allocation5_spill] sm:$0xff] %v9132_v1  ;;  %v9147_v49 = vld [vmem:[%s10275_s20 + $0x9c] sm:$0xff] }
 0x56f   :  { %7161 = vmatprep.subr.bf16.mxu1 %v7486_v55  ;;  %10560 = vst [vmem:[#allocation34_spill] sm:$0xff] %v9147_v49 }
 0x572   :  { %7162 = vmatpush3.bf16.msra.mxu1 %v7486_v55  ;;  %v9162_v55 = vld [vmem:[%s10275_s20 + $0xb0] sm:$0xf] }
 0x573   :  { %10563 = vst [vmem:[#allocation37_spill] sm:$0xff] %v9162_v55 }
 0x625   :  { %v7141_v56 = vpop.f32.mrf.mxu1  ;;  %v7149_v54 = vpop.f32.mrf.mxu0 }
 0x626   :  { %v3826_v40 = vadd.f32 %v7149_v54, %v7141_v56  ;;  %v9167_v56 = vld [vmem:[%s10275_s20 + $0xb4] sm:$0xff]  ;;  %v9172_v54 = vld [vmem:[%s10275_s20 + $0xbc] sm:$0xf] }
 0x627   :  { %v3753_v23 = vpop.f32.mrf.mxu1  ;;  %v3817_v50 = vpop.f32.mrf.mxu0  ;;  %10564 = vst [vmem:[#allocation38_spill] sm:$0xff] %v9167_v56  ;;  %10565 = vst [vmem:[#allocation39_spill] sm:$0xff] %v9172_v54 }
 0x628   :  { %v3818_v18 = vadd.f32 %v3817_v50, %v3753_v23  ;;  %v9177_v23 = vld [vmem:[%s10275_s20 + $0xc0] sm:$0xff]  ;;  %v9182_v50 = vld [vmem:[%s10275_s20 + $0xc8] sm:$0xf] }
 0x629   :  { %v7142_v21 = vpop.f32.mrf.mxu1  ;;  %v7150_v0 = vpop.f32.mrf.mxu0  ;;  %10566 = vst [vmem:[#allocation40_spill] sm:$0xff] %v9177_v23  ;;  %10567 = vst [vmem:[#allocation41_spill] sm:$0xff] %v9182_v50  ;;  %v9322_v50 = vld [vmem:[%s10275_s20 + $0x170] sm:$0xf]  ;;  %v9342_v23 = vld [vmem:[%s10275_s20 + $0x188] sm:$0xf] }
 0x62a   :  { %v3829_v13 = vadd.f32 %v7150_v0, %v7142_v21  ;;  %v9187_v21 = vld [vmem:[%s10275_s20 + $0xcc] sm:$0xff]  ;;  %v9192_v0 = vld [vmem:[%s10275_s20 + $0xd4] sm:$0xf]  ;;  %10595 = vst [vmem:[#allocation69_spill] sm:$0xff] %v9322_v50  ;;  %10599 = vst [vmem:[#allocation73_spill] sm:$0xff] %v9342_v23 }
 0x62b   :  { %v3756_v27 = vpop.f32.mrf.mxu1  ;;  %v3820_v3 = vpop.f32.mrf.mxu0  ;;  %10568 = vst [vmem:[#allocation42_spill] sm:$0xff] %v9187_v21  ;;  %10569 = vst [vmem:[#allocation43_spill] sm:$0xff] %v9192_v0  ;;  %v9327_v0 = vld [vmem:[%s10275_s20 + $0x174] sm:$0xff]  ;;  %v9347_v21 = vld [vmem:[%s10275_s20 + $0x18c] sm:$0xff] }
 0x62c   :  { %v3821_v25 = vadd.f32 %v3820_v3, %v3756_v27  ;;  %v9197_v27 = vld [vmem:[%s10275_s20 + $0xd8] sm:$0xff]  ;;  %v9217_v3 = vld [vmem:[%s10275_s20 + $0xf0] sm:$0xff]  ;;  %10596 = vst [vmem:[#allocation70_spill] sm:$0xff] %v9327_v0  ;;  %10600 = vst [vmem:[#allocation74_spill] sm:$0xff] %v9347_v21 }
 0x62d   :  { %v7157_v17 = vpop.f32.mrf.mxu1  ;;  %10570 = vst [vmem:[#allocation44_spill] sm:$0xff] %v9197_v27  ;;  %10574 = vst [vmem:[#allocation48_spill] sm:$0xff] %v9217_v3  ;;  %v9367_v23 = vld [vmem:[%s10275_s20 + $0x1a4] sm:$0xff]  ;;  %v9372_v21 = vld [vmem:[%s10275_s20 + $0x1ac] sm:$0xf] }
 0x62e   :  { %v3904_v57 = vadd.f32 %v7157_v17, %v3826_v40  ;;  %v9202_v17 = vld [vmem:[%s10275_s20 + $0xe0] sm:$0xf]  ;;  %v9212_v40 = vld [vmem:[%s10275_s20 + $0xec] sm:$0xf]  ;;  %10604 = vst [vmem:[#allocation78_spill] sm:$0xff] %v9367_v23  ;;  %10605 = vst [vmem:[#allocation79_spill] sm:$0xff] %v9372_v21 }
 0x62f   :  { %v3887_v14 = vpop.f32.mrf.mxu1  ;;  %10571 = vst [vmem:[#allocation45_spill] sm:$0xff] %v9202_v17  ;;  %10573 = vst [vmem:[#allocation47_spill] sm:$0xff] %v9212_v40  ;;  %v9332_v17 = vld [vmem:[%s10275_s20 + $0x17c] sm:$0xf]  ;;  %v9337_v40 = vld [vmem:[%s10275_s20 + $0x180] sm:$0xff] }
 0x630   :  { %v3902_v12 = vadd.f32 %v3887_v14, %v3818_v18  ;;  %v3915_v33 = vadd.f32 %v6129_v39, %v3904_v57  ;;  %v9207_v18 = vld [vmem:[%s10275_s20 + $0xe4] sm:$0xff]  ;;  %v9222_v14 = vld [vmem:[%s10275_s20 + $0xf8] sm:$0xf]  ;;  %10597 = vst [vmem:[#allocation71_spill] sm:$0xff] %v9332_v17  ;;  %10598 = vst [vmem:[#allocation72_spill] sm:$0xff] %v9337_v40 }
 0x631   :  { %v7158_v52 = vpop.f32.mrf.mxu1  ;;  %10572 = vst [vmem:[#allocation46_spill] sm:$0xff] %v9207_v18  ;;  %10575 = vst [vmem:[#allocation49_spill] sm:$0xff] %v9222_v14  ;;  %v9237_v57 = vld [vmem:[%s10275_s20 + $0x108] sm:$0xff]  ;;  %v9352_v14 = vld [vmem:[%s10275_s20 + $0x194] sm:$0xf] }
 0x632   :  { %v3905_v34 = vadd.f32 %v7158_v52, %v3829_v13  ;;  %v3913_v45 = vadd.f32 %v6129_v39, %v3902_v12  ;;  %v3919_v44 = vmax.f32 %v3915_v33, 0.0  ;;  %v9227_v13 = vld [vmem:[%s10275_s20 + $0xfc] sm:$0xff]  ;;  %v9232_v12 = vld [vmem:[%s10275_s20 + $0x104] sm:$0xf]  ;;  %10578 = vst [vmem:[#allocation52_spill] sm:$0xff] %v9237_v57  ;;  %10601 = vst [vmem:[#allocation75_spill] sm:$0xff] %v9352_v14 }
 0x633   :  { %v3890_v29 = vpop.f32.mrf.mxu1  ;;  %10576 = vst [vmem:[#allocation50_spill] sm:$0xff] %v9227_v13  ;;  %10577 = vst [vmem:[#allocation51_spill] sm:$0xff] %v9232_v12  ;;  %v9242_v52 = vld [vmem:[%s10275_s20 + $0x110] sm:$0xf]  ;;  %v9282_v33 = vld [vmem:[%s10275_s20 + $0x140] sm:$0xf] }
 0x634   :  { %v3916_v11 = vadd.f32 %v6129_v39, %v3905_v34  ;;  %v3903_v26 = vadd.f32 %v3890_v29, %v3821_v25  ;;  %v3917_v58 = vmax.f32 %v3913_v45, 0.0  ;;  %10579 = vst [vmem:[#allocation53_spill] sm:$0xff] %v9242_v52  ;;  %v9247_v25 = vld [vmem:[%s10275_s20 + $0x114] sm:$0xff]  ;;  %v9257_v34 = vld [vmem:[%s10275_s20 + $0x120] sm:$0xff]  ;;  %v9262_v29 = vld [vmem:[%s10275_s20 + $0x128] sm:$0xf] }
 0x635   :  { %10580 = vst [vmem:[#allocation54_spill] sm:$0xff] %v9247_v25  ;;  %10582 = vst [vmem:[#allocation56_spill] sm:$0xff] %v9257_v34  ;;  %v9267_v45 = vld [vmem:[%s10275_s20 + $0x12c] sm:$0xff]  ;;  %v9357_v12 = vld [vmem:[%s10275_s20 + $0x198] sm:$0xff] }
 0x636   :  { %v3914_v31 = vadd.f32 %v6129_v39, %v3903_v26  ;;  %v3920_v36 = vmax.f32 %v3916_v11, 0.0  ;;  %v9252_v39 = vld [vmem:[%s10275_s20 + $0x11c] sm:$0xf]  ;;  %10583 = vst [vmem:[#allocation57_spill] sm:$0xff] %v9262_v29  ;;  %10584 = vst [vmem:[#allocation58_spill] sm:$0xff] %v9267_v45  ;;  %v9377_v14 = vld [vmem:[%s10275_s20 + $0x1b0] sm:$0xff] }
 0x637   :  { %10581 = vst [vmem:[#allocation55_spill] sm:$0xff] %v9252_v39  ;;  %v9272_v11 = vld [vmem:[%s10275_s20 + $0x134] sm:$0xf]  ;;  %v9277_v26 = vld [vmem:[%s10275_s20 + $0x138] sm:$0xff]  ;;  %10587 = vst [vmem:[#allocation61_spill] sm:$0xff] %v9282_v33 }
 0x638   :  { %v3918_v60 = vmax.f32 %v3914_v31, 0.0  ;;  %v3924_v42 = vpack.c.bf16 %v3920_v36, %v3919_v44  ;;  %10585 = vst [vmem:[#allocation59_spill] sm:$0xff] %v9272_v11  ;;  %10586 = vst [vmem:[#allocation60_spill] sm:$0xff] %v9277_v26  ;;  %v9287_v31 = vld [vmem:[%s10275_s20 + $0x144] sm:$0xff]  ;;  %v9292_v36 = vld [vmem:[%s10275_s20 + $0x14c] sm:$0xf] }
 0x639   :  { %10588 = vst [vmem:[#allocation62_spill] sm:$0xff] %v9287_v31  ;;  %10589 = vst [vmem:[#allocation63_spill] sm:$0xff] %v9292_v36  ;;  %v9307_v44 = vld [vmem:[%s10275_s20 + $0x15c] sm:$0xff]  ;;  %v9392_v23 = vld [vmem:[%s10275_s20 + $0x1c4] sm:$0xf] }
 0x63a   :  { %v3923_v53 = vpack.c.bf16 %v3918_v60, %v3917_v58  ;;  %v9297_v58 = vld [vmem:[%s10275_s20 + $0x150] sm:$0xff]  ;;  %v9302_v60 = vld [vmem:[%s10275_s20 + $0x158] sm:$0xf]  ;;  %10592 = vst [vmem:[#allocation66_spill] sm:$0xff] %v9307_v44  ;;  %10602 = vst [vmem:[#allocation76_spill] sm:$0xff] %v9357_v12 }
 0x63b   :  { %10590 = vst [vmem:[#allocation64_spill] sm:$0xff] %v9297_v58  ;;  %10591 = vst [vmem:[#allocation65_spill] sm:$0xff] %v9302_v60  ;;  %v9362_v40 = vld [vmem:[%s10275_s20 + $0x1a0] sm:$0xf]  ;;  %v9382_v12 = vld [vmem:[%s10275_s20 + $0x1b8] sm:$0xf] }
 0x63c   :  { %6137 = vmatmul.mubr.msk.bf16.vlgmr.msra.gmra.mxu0 %vm1031_vm2, %v3923_v53  ;;  %7163 = vmatprep.mubr.msk.bf16.mxu1 %vm1031_vm2, %v3923_v53  ;;  %v9312_v53 = vld [vmem:[%s10275_s20 + $0x164] sm:$0xf]  ;;  %10603 = vst [vmem:[#allocation77_spill] sm:$0xff] %v9362_v40  ;;  %10606 = vst [vmem:[#allocation80_spill] sm:$0xff] %v9377_v14  ;;  %v9387_v40 = vld [vmem:[%s10275_s20 + $0x1bc] sm:$0xff] }
 0x63d   :  { %7164 = vmatmul.mubr.msk.bf16.vlgmr.msra.gmra.mxu1 %vm1031_vm2, %v3924_v42  ;;  %4029 = vmatprep.mubr.bf16.mxu0 %v10525_v10  ;;  %v9032_v10 = vld [vmem:[%s10275_s20 + $0x14] sm:$0xf]  ;;  %10593 = vst [vmem:[#allocation67_spill] sm:$0xff] %v9312_v53  ;;  %10607 = vst [vmem:[#allocation81_spill] sm:$0xff] %v9382_v12  ;;  %v9397_v21 = vld [vmem:[%s10275_s20 + $0x1c8] sm:$0xff] }
 0x63e   :  { %10537 = vst [vmem:[#allocation21_spill] sm:$0xff] %v9032_v10  ;;  %10608 = vst [vmem:[#allocation82_spill] sm:$0xff] %v9387_v40  ;;  %v9402_v14 = vld [vmem:[%s10275_s20 + $0x1d0] sm:$0xf]  ;;  %v9407_v12 = vld [vmem:[%s10275_s20 + $0x1d4] sm:$0xff] }
 0x63f   :  { %10609 = vst [vmem:[#allocation83_spill] sm:$0xff] %v9392_v23  ;;  %10610 = vst [vmem:[#allocation84_spill] sm:$0xff] %v9397_v21  ;;  %v9412_v40 = vld [vmem:[%s10275_s20 + $0x1dc] sm:$0xf]  ;;  %v9417_v23 = vld [vmem:[%s10275_s20 + $0x1e0] sm:$0xff] }
 0x640   :  { %10611 = vst [vmem:[#allocation85_spill] sm:$0xff] %v9402_v14  ;;  %10612 = vst [vmem:[#allocation86_spill] sm:$0xff] %v9407_v12  ;;  %v9422_v21 = vld [vmem:[%s10275_s20 + $0x1e8] sm:$0xf]  ;;  %v9427_v14 = vld [vmem:[%s10275_s20 + $0x1ec] sm:$0xff] }
 0x641   :  { %10613 = vst [vmem:[#allocation87_spill] sm:$0xff] %v9412_v40  ;;  %10614 = vst [vmem:[#allocation88_spill] sm:$0xff] %v9417_v23  ;;  %v9432_v12 = vld [vmem:[%s10275_s20 + $0x1f4] sm:$0xf]  ;;  %v9437_v40 = vld [vmem:[%s10275_s20 + $0x1f8] sm:$0xff] }
 0x642   :  { %10615 = vst [vmem:[#allocation89_spill] sm:$0xff] %v9422_v21  ;;  %10616 = vst [vmem:[#allocation90_spill] sm:$0xff] %v9427_v14  ;;  %v9442_v23 = vld [vmem:[%s10275_s20 + $0x200] sm:$0xf]  ;;  %v9447_v21 = vld [vmem:[%s10275_s20 + $0x204] sm:$0xff] }
 0x643   :  { %10617 = vst [vmem:[#allocation91_spill] sm:$0xff] %v9432_v12  ;;  %10618 = vst [vmem:[#allocation92_spill] sm:$0xff] %v9437_v40  ;;  %v9452_v14 = vld [vmem:[%s10275_s20 + $0x20c] sm:$0xf]  ;;  %v9457_v12 = vld [vmem:[%s10275_s20 + $0x210] sm:$0xff] }
 0x644   :  { %6138 = vmatmul.mubr.msk.bf16.gmra.mxu0 %vm1031_vm2, %v3924_v42  ;;  %v9317_v42 = vld [vmem:[%s10275_s20 + $0x168] sm:$0xff]  ;;  %10619 = vst [vmem:[#allocation93_spill] sm:$0xff] %v9442_v23  ;;  %10620 = vst [vmem:[#allocation94_spill] sm:$0xff] %v9447_v21  ;;  %v9462_v40 = vld [vmem:[%s10275_s20 + $0x218] sm:$0xf] }
 0x645   :  { %10594 = vst [vmem:[#allocation68_spill] sm:$0xff] %v9317_v42  ;;  %10621 = vst [vmem:[#allocation95_spill] sm:$0xff] %v9452_v14  ;;  %v9467_v23 = vld [vmem:[%s10275_s20 + $0x21c] sm:$0xff]  ;;  %v9472_v21 = vld [vmem:[%s10275_s20 + $0x224] sm:$0xf] }
 0x646   :  { %10622 = vst [vmem:[#allocation96_spill] sm:$0xff] %v9457_v12  ;;  %10623 = vst [vmem:[#allocation97_spill] sm:$0xff] %v9462_v40  ;;  %v9477_v14 = vld [vmem:[%s10275_s20 + $0x228] sm:$0xff]  ;;  %v9482_v12 = vld [vmem:[%s10275_s20 + $0x230] sm:$0xf] }
 0x647   :  { %10624 = vst [vmem:[#allocation98_spill] sm:$0xff] %v9467_v23  ;;  %10625 = vst [vmem:[#allocation99_spill] sm:$0xff] %v9472_v21  ;;  %v9487_v40 = vld [vmem:[%s10275_s20 + $0x234] sm:$0xff]  ;;  %v9492_v23 = vld [vmem:[%s10275_s20 + $0x23c] sm:$0xf] }
 0x648   :  { %10626 = vst [vmem:[#allocation100_spill] sm:$0xff] %v9477_v14  ;;  %10627 = vst [vmem:[#allocation101_spill] sm:$0xff] %v9482_v12  ;;  %v9497_v21 = vld [vmem:[%s10276_s21] sm:$0x7]  ;;  %v9502_v14 = vld [vmem:[%s10276_s21 + $0x3] sm:$0x7] }
 0x649   :  { %10628 = vst [vmem:[#allocation102_spill] sm:$0xff] %v9487_v40  ;;  %10629 = vst [vmem:[#allocation103_spill] sm:$0xff] %v9492_v23  ;;  %v9507_v12 = vld [vmem:[%s10276_s21 + $0x6] sm:$0x7] }
 0x64a   :  { %10630 = vst [vmem:[#allocation104_spill] sm:$0xff] %v9497_v21  ;;  %10631 = vst [vmem:[#allocation105_spill] sm:$0xff] %v9502_v14  ;;  %v6130_v40 = vld [vmem:[%s10265_s19 + $0x6] sm:$0x7]  ;;  %s9521_s19 = smov 0  }
 0x64b   :  { %10632 = vst [vmem:[#allocation106_spill] sm:$0xff] %v9507_v12  ;;  %v3937_v23 = vrot.slane %v6130_v40, %v8714_v20  ;;  %v3945_v27 = vrot.slane %v6130_v40, %v8719_v51  ;;  %v3941_v21 = vrot.slane %v6130_v40, %v8721_v35 }
 0x6fc   :  { %v4021_v18 = vpop.f32.mrf.mxu0 }
 0x6fd   :  { %v4022_v52 = vadd.f32 %v4021_v18, %v3937_v23  ;;  %v7165_v39 = vpop.f32.mrf.mxu1 }
 0x6fe   :  { %v4083_v3 = vadd.f32 %v7165_v39, %v3945_v27  ;;  %v4023_v14 = vpop.f32.mrf.mxu0 }
 0x6ff   :  { %4089 = vst [vmem:[#allocation4] sm:$0xff] %v4022_v52  ;;  %v4024_v13 = vadd.f32 %v4023_v14, %v3941_v21  ;;  %v4074_v29 = vpop.f32.mrf.mxu1 }
 0x700   :  { %4097 = vst [vmem:[#allocation4 + $0x40] sm:$0xff] %v4083_v3  ;;  %v4075_v12 = vadd.f32 %v4074_v29, %v3945_v27  ;;  %v4025_v11 = vpop.f32.mrf.mxu0 }
 0x701   :  { %4090 = vst [vmem:[#allocation4 + $0x8] sm:$0xff] %v4024_v13  ;;  %v4026_v57 = vadd.f32 %v4025_v11, %v3937_v23  ;;  %v7166_v25 = vpop.f32.mrf.mxu1 }
 0x702   :  { %4091 = vst [vmem:[#allocation4 + $0x10] sm:$0xff] %v4075_v12  ;;  %v4086_v20 = vadd.f32 %v7166_v25, %v3945_v27  ;;  %v4027_v33 = vpop.f32.mrf.mxu0  ;;  %v9515_v25 = vmov 0.0  }
 0x703   :  { %4092 = vst [vmem:[#allocation4 + $0x18] sm:$0xff] %v4026_v57  ;;  %v4028_v51 = vadd.f32 %v4027_v33, %v3941_v21  ;;  %v4077_v40 = vpop.f32.mrf.mxu1  ;;  %v9517_v57 = vmov 0.0  }
 0x704   :  { %4100 = vst [vmem:[#allocation4 + $0x58] sm:$0xff] %v4086_v20  ;;  %v4078_v18 = vadd.f32 %v4077_v40, %v3945_v27  ;;  %v4031_v35 = vpop.f32.mrf.mxu0  ;;  %v9519_v20 = vmov 0.0  }
 0x705   :  { %4093 = vst [vmem:[#allocation4 + $0x20] sm:$0xff] %v4028_v51  ;;  %v4032_v39 = vadd.f32 %v4031_v35, %v3937_v23 }
 0x706   :  { %4094 = vst [vmem:[#allocation4 + $0x28] sm:$0xff] %v4078_v18  ;;  %v4033_v14 = vpop.f32.mrf.mxu0 }
 0x707   :  { %4095 = vst [vmem:[#allocation4 + $0x30] sm:$0xff] %v4032_v39  ;;  %v4034_v3 = vadd.f32 %v4033_v14, %v3941_v21 }
 0x708   :  { %v4035_v52 = vpop.f32.mrf.mxu0 }
 0x709   :  { %4096 = vst [vmem:[#allocation4 + $0x38] sm:$0xff] %v4034_v3  ;;  %v4036_v13 = vadd.f32 %v4035_v52, %v3937_v23 }
 0x70a   :  { %v4037_v29 = vpop.f32.mrf.mxu0 }
 0x70b   :  { %4098 = vst [vmem:[#allocation4 + $0x48] sm:$0xff] %v4036_v13  ;;  %v4038_v12 = vadd.f32 %v4037_v29, %v3941_v21 }
 0x70d   :  { %4099 = vst [vmem:[#allocation4 + $0x50] sm:$0xff] %v4038_v12 }
 0x70e LB: > { %v10633_v62 = vld [vmem:[#allocation22_spill] sm:$0xff]  ;;  %v10634_v59 = vld [vmem:[#allocation13_spill] sm:$0xff]  ;;  %v10635_v58 = vld [vmem:[#allocation64_spill] sm:$0xff]  ;;  %10657 = vst [vmem:[#allocation107_spill] sm:$0xff] %v7603_v25  ;;  %v10334_v11 = vmov 0.0   ;;  %v10326_v40 = vmov 0   ;;  %s7615_s19 = sphi %s9521_s19, %s4209_s19   ;;  %v7611_v20 = vphi %v9519_v20, %v10782_v20   ;;  %v7607_v57 = vphi %v9517_v57, %v10781_v57   ;;  %v7603_v25 = vphi %v9515_v25, %v10780_v25  }
 0x70f   : > { %v10636_v56 = vld [vmem:[#allocation38_spill] sm:$0xff]  ;;  %v10638_v47 = vld [vmem:[#allocation15_spill] sm:$0xff]  ;;  %v10639_v46 = vld [vmem:[#allocation29_spill] sm:$0xff]  ;;  %7167 = vmatprep.subr.bf16.mxu1 %v10334_v11  ;;  %4398 = vmatprep.mubr.bf16.mxu0 %v10326_v40  ;;  %vm7622_vm3 = vmmov 0   ;;  %s6382_s20 = smul.u32 96, %s7615_s19 }
 0x710   : > { %v10637_v49 = vld [vmem:[#allocation34_spill] sm:$0xff]  ;;  %v10641_v34 = vld [vmem:[#allocation56_spill] sm:$0xff]  ;;  %v10643_v43 = vld [vmem:[#allocation23_spill] sm:$0xff]  ;;  %7183 = vmatprep.mubr.msk.bf16.mxu1 %vm7622_vm3, %v10334_v11  ;;  %s6383_s27 = smul.u32 48, %s7615_s19 }
 0x711   : > { %v10640_v45 = vld [vmem:[#allocation58_spill] sm:$0xff]  ;;  %v10644_v42 = vld [vmem:[#allocation68_spill] sm:$0xff]  ;;  %v10648_v30 = vld [vmem:[#allocation11_spill] sm:$0xff]  ;;  %s9904_s21 = scalar_lea.vmem [#allocation2], %s6382_s20  ;;  %s6384_s0 = smul.u32 24, %s7615_s19 }
 0x712   : > { %v10642_v44 = vld [vmem:[#allocation66_spill] sm:$0xff]  ;;  %v10645_v41 = vld [vmem:[#allocation16_spill] sm:$0xff]  ;;  %v10653_v9 = vld [vmem:[#allocation17_spill] sm:$0xff]  ;;  %s9927_s3 = scalar_lea.vmem [#allocation3], %s6383_s27  ;;  %s4209_s19 = sadd.s32 1, %s7615_s19  }
 0x713   : > { %v10646_v31 = vld [vmem:[#allocation62_spill] sm:$0xff]  ;;  %v10647_v26 = vld [vmem:[#allocation60_spill] sm:$0xff]  ;;  %v10656_v4 = vld [vmem:[#allocation31_spill] sm:$0xff]  ;;  %v9556_v27 = vcombine.high %v10638_v47, %v10653_v9  ;;  %v9572_v39 = vcombine.low %v10638_v47, %v10653_v9  ;;  %v9654_v9 = vcombine.low %v10633_v62, %v10634_v59  ;;  %s9970_s29 = scalar_lea.vmem [#allocation4], %s6384_s0  ;;  %p4206_p0 = scmp.ge.s32.totalorder %s4209_s19, 4  }
 0x714   : > { %v10649_v28 = vld [vmem:[#allocation18_spill] sm:$0xff]  ;;  %v10651_v19 = vld [vmem:[#allocation28_spill] sm:$0xff]  ;;  %v10658_v54 = vld [vmem:[#allocation39_spill] sm:$0xff]  ;;  %v9578_v14 = vcombine.high %v10648_v30, %v10656_v4  ;;  %v9590_v52 = vcombine.low %v10648_v30, %v10656_v4  ;;  %v9628_v4 = vcombine.high %v10643_v43, %v10639_v46  ;;  %v9694_v30 = vcombine.high %v10647_v26, %v10646_v31  ;;  %s10784_s13 = sld [smem:[#allocation129_spill]] (%p4206_p0) }
 0x715   : > { %v10650_v0 = vld [vmem:[#allocation70_spill] sm:$0xff]  ;;  %v10654_v8 = vld [vmem:[#allocation20_spill] sm:$0xff]  ;;  %v9545_v23 = vcombine.high %v10649_v28, %v10637_v49  ;;  %v9551_v21 = vcombine.low %v10649_v28, %v10637_v49  ;;  %v10659_v55 = vld [vmem:[#allocation37_spill] sm:$0xff]  ;;  %10681 = vst [vmem:[#allocation117_spill] sm:$0xff] %v9654_v9  ;;  %v10688_v28 = vmov 0   ;;  %vm7623_vm4 = vmmov (%p4206_p0), 0  }
 0x716   : > { %v10652_v16 = vld [vmem:[#allocation14_spill] sm:$0xff]  ;;  %v10655_v5 = vld [vmem:[#allocation36_spill] sm:$0xff]  ;;  %v9561_v33 = vcombine.low %v10659_v55, %v10658_v54  ;;  %v10660_v24 = vld [vmem:[#allocation35_spill] sm:$0xff]  ;;  %v9596_v13 = vcombine.high %v10645_v41, %v10654_v8  ;;  %v9606_v12 = vcombine.low %v10645_v41, %v10654_v8  ;;  %10672 = vst [vmem:[#allocation112_spill] sm:$0xff] %v9628_v4  ;;  %s10785_s26 = sld [smem:[#allocation130_spill]] (%p4206_p0)  ;;  %vm5766_vm5 = vcmask (%p4206_p0), 523264  }
 0x717   : > { %v9537_v51 = vcombine.high %v10655_v5, %v10636_v56  ;;  %v9541_v35 = vcombine.low %v10655_v5, %v10636_v56  ;;  %v10661_v38 = vld [vmem:[#allocation8_spill] sm:$0xff]  ;;  %v10662_v1 = vld [vmem:[#allocation5_spill] sm:$0xff]  ;;  %v10665_v22 = vld [vmem:[#allocation6_spill] sm:$0xff]  ;;  %v9612_v40 = vcombine.high %v10652_v16, %v10651_v19  ;;  %s10786_s2 = sld [smem:[#allocation127_spill]] (%p4206_p0)  ;;  %vm5819_vm6 = vcmask (%p4206_p0), 64512  }
 0x718   : > { %7168 = vmatpush3.bf16.msra.mxu1 %v9561_v33  ;;  %v9567_v18 = vcombine.low %v10661_v38, %v10660_v24  ;;  %v10663_v2 = vld [vmem:[#allocation33_spill] sm:$0xff]  ;;  %v10664_v6 = vld [vmem:[#allocation24_spill] sm:$0xff]  ;;  %10666 = vst [vmem:[#allocation108_spill] sm:$0xff] %v9606_v12  ;;  %v10669_v61 = vld [vmem:[#allocation30_spill] sm:$0xff]  ;;  %v9678_v24 = vcombine.high %v10635_v58, %v10642_v44  ;;  %s10787_s30 = sld [smem:[#allocation131_spill]] (%p4206_p0) }
 0x719   : > { %4366 = vmatprep.subr.bf16.mxu0 %v9537_v51  ;;  %7169 = vmatprep.subr.bf16.mxu1 %v10334_v11  ;;  %v9585_v3 = vcombine.low %v10663_v2, %v10662_v1  ;;  %v9601_v29 = vcombine.low %v10665_v22, %v10664_v6  ;;  %10667 = vst [vmem:[#allocation109_spill] sm:$0xff] %v9612_v40  ;;  %v10668_v7 = vld [vmem:[#allocation9_spill] sm:$0xff]  ;;  %v10673_v63 = vld [vmem:[#allocation7_spill] sm:$0xff]  ;;  %v10674_v32 = vld [vmem:[#allocation32_spill] sm:$0xff]  ;;  %v10685_v22 = vmov 0.0   ;;  %s10788_s12 = sld [smem:[#allocation132_spill]] (%p4206_p0) }
 0x71a   : > { %4367 = vmatpush1.bf16.msra.mxu0 %v9541_v35  ;;  %v9617_v1 = vcombine.low %v10669_v61, %v10668_v7  ;;  %v9622_v2 = vcombine.low %v10652_v16, %v10651_v19  ;;  %v9633_v5 = vcombine.low %v10674_v32, %v10673_v63  ;;  %v9638_v6 = vcombine.low %v10643_v43, %v10639_v46  ;;  %v10678_v37 = vld [vmem:[#allocation12_spill] sm:$0xff]  ;;  %v10679_v15 = vld [vmem:[#allocation27_spill] sm:$0xff]  ;;  %v10682_v10 = vld [vmem:[#allocation21_spill] sm:$0xff] }
 0x71b   : > { %4368 = vmatprep.subr.bf16.mxu0 %v9545_v23  ;;  %v9644_v7 = vcombine.high %v10633_v62, %v10634_v59  ;;  %v9649_v8 = vcombine.low %v10679_v15, %v10678_v37  ;;  %v9660_v16 = vcombine.high %v10644_v42, %v10650_v0  ;;  %v4221_v19 = vpack.c.bf16 %v7611_v20, %v7611_v20  ;;  %v10683_v48 = vld [vmem:[#allocation26_spill] sm:$0xff]  ;;  %v10686_v17 = vld [vmem:[#allocation71_spill] sm:$0xff]  ;;  %v10687_v50 = vld [vmem:[#allocation69_spill] sm:$0xff] }
 0x71c   : > { %7170 = vmatpush3.bf16.msra.mxu1 %v9567_v18  ;;  %10670 = vst [vmem:[#allocation110_spill] sm:$0xff] %v9617_v1  ;;  %10671 = vst [vmem:[#allocation111_spill] sm:$0xff] %v9622_v2  ;;  %v9667_v15 = vcombine.low %v10683_v48, %v10682_v10  ;;  %v9683_v10 = vcombine.low %v10687_v50, %v10686_v17  ;;  %v10689_v53 = vld [vmem:[#allocation67_spill] sm:$0xff]  ;;  %v10690_v60 = vld [vmem:[#allocation65_spill] sm:$0xff]  ;;  %v9707_v32 = vcombine.low %v10647_v26, %v10646_v31 }
 0x71d   : > { %7171 = vmatprep.subr.bf16.mxu1 %v10334_v11  ;;  %10675 = vst [vmem:[#allocation113_spill] sm:$0xff] %v9633_v5  ;;  %10676 = vst [vmem:[#allocation114_spill] sm:$0xff] %v9638_v6  ;;  %v9700_v17 = vcombine.low %v10690_v60, %v10689_v53  ;;  %v10691_v36 = vld [vmem:[#allocation63_spill] sm:$0xff]  ;;  %v10692_v37 = vld [vmem:[#allocation61_spill] sm:$0xff]  ;;  %v9723_v26 = vcombine.low %v10641_v34, %v10640_v45  ;;  %v4474_v59 = vpack.c.bf16 %v7607_v57, %v7607_v57 }
 0x71e   : > { %4369 = vmatpush1.bf16.msra.mxu0 %v9551_v21  ;;  %10677 = vst [vmem:[#allocation115_spill] sm:$0xff] %v9644_v7  ;;  %10680 = vst [vmem:[#allocation116_spill] sm:$0xff] %v9649_v8  ;;  %v9718_v38 = vcombine.low %v10692_v37, %v10691_v36  ;;  %v10693_v31 = vld [vmem:[#allocation54_spill] sm:$0xff]  ;;  %v10694_v41 = vld [vmem:[#allocation52_spill] sm:$0xff] }
 0x71f   : > { %4370 = vmatprep.subr.bf16.mxu0 %v9556_v27  ;;  %10684 = vst [vmem:[#allocation118_spill] sm:$0xff] %v9667_v15  ;;  %v10695_v43 = vld [vmem:[#allocation59_spill] sm:$0xff]  ;;  %v10697_v36 = vld [vmem:[#allocation50_spill] sm:$0xff]  ;;  %v10700_v48 = vld [vmem:[#allocation53_spill] sm:$0xff] }
 0x720   : > { %7172 = vmatpush3.bf16.msra.mxu1 %v9585_v3  ;;  %v10699_v47 = vld [vmem:[#allocation55_spill] sm:$0xff]  ;;  %v10704_v53 = vld [vmem:[#allocation49_spill] sm:$0xff]  ;;  %v10717_v61 = vld [vmem:[#allocation96_spill] sm:$0xff] }
 0x721   : > { %7173 = vmatprep.subr.bf16.mxu1 %v10334_v11  ;;  %v10703_v50 = vld [vmem:[#allocation51_spill] sm:$0xff]  ;;  %v10709_v56 = vld [vmem:[#allocation45_spill] sm:$0xff] }
 0x722   : > { %4371 = vmatpush1.bf16.msra.mxu0 %v9572_v39  ;;  %v10708_v55 = vld [vmem:[#allocation47_spill] sm:$0xff] }
 0x723   : > { %4372 = vmatprep.subr.bf16.mxu0 %v9578_v14  ;;  %v10718_v63 = vld [vmem:[#allocation103_spill] sm:$0xff] }
 0x724   : > { %7174 = vmatpush3.bf16.msra.mxu1 %v9601_v29 }
 0x725   : > { %7175 = vmatprep.subr.bf16.mxu1 %v10334_v11 }
 0x726   : > { %4373 = vmatpush1.bf16.msra.mxu0 %v9590_v52 }
 0x727   : > { %4374 = vmatprep.subr.bf16.mxu0 %v9596_v13 }
 0x728   : > { %7176 = vmatpush3.bf16.msra.mxu1 %v9617_v1 }
 0x729   : > { %7177 = vmatprep.subr.bf16.mxu1 %v10334_v11 }
 0x72a   : > { %4375 = vmatpush1.bf16.msra.mxu0 %v9606_v12 }
 0x72b   : > { %4376 = vmatprep.subr.bf16.mxu0 %v9612_v40 }
 0x72c   : > { %7178 = vmatpush3.bf16.msra.mxu1 %v9633_v5 }
 0x72d   : > { %7179 = vmatprep.subr.bf16.mxu1 %v10334_v11  ;;  %v9672_v11 = vcombine.low %v10644_v42, %v10650_v0  ;;  %v9688_v0 = vcombine.low %v10635_v58, %v10642_v44  ;;  %v9729_v42 = vcombine.high %v10694_v41, %v10693_v31  ;;  %v10696_v44 = vld [vmem:[#allocation57_spill] sm:$0xff] }
 0x72e   : > { %4377 = vmatpush1.bf16.msra.mxu0 %v9622_v2  ;;  %v9734_v37 = vcombine.low %v10696_v44, %v10695_v43  ;;  %v9750_v43 = vcombine.low %v10700_v48, %v10699_v47  ;;  %v9766_v48 = vcombine.low %v10704_v53, %v10703_v50  ;;  %v9782_v50 = vcombine.low %v10709_v56, %v10708_v55  ;;  %v10714_v55 = vld [vmem:[#allocation43_spill] sm:$0xff]  ;;  %v10715_v56 = vld [vmem:[#allocation41_spill] sm:$0xff] }
 0x72f   : > { %4378 = vmatprep.subr.bf16.mxu0 %v9628_v4  ;;  %v9798_v60 = vcombine.low %v10715_v56, %v10714_v55  ;;  %v10720_v56 = vld [vmem:[#allocation94_spill] sm:$0xff] }
 0x730   : > { %7180 = vmatpush3.bf16.msra.mxu1 %v9649_v8  ;;  %10710 = vst [vmem:[#allocation120_spill] sm:$0xff] %v9782_v50 }
 0x731   : > { %7181 = vmatprep.subr.bf16.mxu1 %v10685_v22 }
 0x732   : > { %4379 = vmatpush1.bf16.msra.mxu0 %v9638_v6 }
 0x733   : > { %4380 = vmatprep.subr.bf16.mxu0 %v9644_v7 }
 0x734   : > { %7182 = vmatpush3.bf16.msra.mxu1 %v9667_v15 }
 0x735   : > { %7187 = vmatprep.subr.bf16.mxu1 %v10685_v22 }
 0x736   : > { %4381 = vmatpush1.bf16.msra.mxu0 %v9654_v9 }
 0x737   : > { %4619 = vmatprep.subr.bf16.mxu0 %v9660_v16  ;;  %7184 = vmatmul.mubr.bf16.vlgmr.msra.gmra.mxu1 %v4221_v19 }
 0x738   : > { %7188 = vmatpush3.bf16.msra.mxu1 %v9683_v10  ;;  %7203 = vmatprep.mubr.msk.bf16.mxu1 %vm7622_vm3, %v10685_v22 }
 0x739   : > { %4399 = vmatmul.mubr.bf16.vlgmr.msra.gmra.mxu0 %v4221_v19  ;;  %7189 = vmatprep.subr.bf16.mxu1 %v10685_v22  ;;  %v9713_v19 = vcombine.high %v10641_v34, %v10640_v45  ;;  %v9739_v34 = vcombine.low %v10694_v41, %v10693_v31  ;;  %v10698_v45 = vld [vmem:[#allocation48_spill] sm:$0xff]  ;;  %v10701_v31 = vld [vmem:[#allocation46_spill] sm:$0xff] }
 0x73a   : > { %4620 = vmatpush1.bf16.msra.mxu0 %v9672_v11  ;;  %4651 = vmatprep.mubr.bf16.mxu0 %v10688_v28  ;;  %v9745_v46 = vcombine.high %v10698_v45, %v10697_v36  ;;  %v9755_v44 = vcombine.low %v10698_v45, %v10697_v36  ;;  %v10702_v41 = vld [vmem:[#allocation44_spill] sm:$0xff]  ;;  %v10705_v36 = vld [vmem:[#allocation42_spill] sm:$0xff] }
 0x73b   : > { %4621 = vmatprep.subr.bf16.mxu0 %v9678_v24  ;;  %v9761_v49 = vcombine.high %v10702_v41, %v10701_v31  ;;  %v9771_v47 = vcombine.low %v10702_v41, %v10701_v31  ;;  %v10706_v45 = vld [vmem:[#allocation40_spill] sm:$0xff]  ;;  %v10712_v31 = vld [vmem:[#allocation102_spill] sm:$0xff] }
 0x73c   : > { %7190 = vmatpush3.bf16.msra.mxu1 %v9700_v17  ;;  %v9777_v54 = vcombine.high %v10706_v45, %v10705_v36  ;;  %v9787_v53 = vcombine.low %v10706_v45, %v10705_v36  ;;  %v10713_v41 = vld [vmem:[#allocation100_spill] sm:$0xff]  ;;  %v10716_v45 = vld [vmem:[#allocation98_spill] sm:$0xff] }
 0x73d   : > { %7191 = vmatprep.subr.bf16.mxu1 %v10685_v22  ;;  %v6288_v58 = vcombine.high %v10713_v41, %v10712_v31  ;;  %v6287_v36 = vcombine.low %v10713_v41, %v10712_v31  ;;  %v6285_v62 = vcombine.high %v10717_v61, %v10716_v45  ;;  %v6284_v55 = vcombine.low %v10717_v61, %v10716_v45  ;;  %v10726_v45 = vld [vmem:[#allocation82_spill] sm:$0xff]  ;;  %v10729_v61 = vld [vmem:[#allocation97_spill] sm:$0xff] }
 0x73e   : > { %4622 = vmatpush1.bf16.msra.mxu0 %v9688_v0  ;;  %10707 = vst [vmem:[#allocation119_spill] sm:$0xff] %v9777_v54  ;;  %10711 = vst [vmem:[#allocation121_spill] sm:$0xff] %v9787_v53 }
 0x73f   : > { %4623 = vmatprep.subr.bf16.mxu0 %v9694_v30 }
 0x740   : > { %7192 = vmatpush3.bf16.msra.mxu1 %v9718_v38 }
 0x741   : > { %7193 = vmatprep.subr.bf16.mxu1 %v10685_v22 }
 0x742   : > { %4624 = vmatpush1.bf16.msra.mxu0 %v9707_v32 }
 0x743   : > { %4625 = vmatprep.subr.bf16.mxu0 %v9713_v19 }
 0x744   : > { %7194 = vmatpush3.bf16.msra.mxu1 %v9734_v37 }
 0x745   : > { %7195 = vmatprep.subr.bf16.mxu1 %v10685_v22 }
 0x746   : > { %4626 = vmatpush1.bf16.msra.mxu0 %v9723_v26 }
 0x747   : > { %4627 = vmatprep.subr.bf16.mxu0 %v9729_v42 }
 0x748   : > { %7196 = vmatpush3.bf16.msra.mxu1 %v9750_v43 }
 0x749   : > { %7197 = vmatprep.subr.bf16.mxu1 %v10685_v22 }
 0x74a   : > { %4628 = vmatpush1.bf16.msra.mxu0 %v9739_v34 }
 0x74b   : > { %4629 = vmatprep.subr.bf16.mxu0 %v9745_v46 }
 0x74c   : > { %7198 = vmatpush3.bf16.msra.mxu1 %v9766_v48 }
 0x74d   : > { %7199 = vmatprep.subr.bf16.mxu1 %v10685_v22 }
 0x74e   : > { %4630 = vmatpush1.bf16.msra.mxu0 %v9755_v44 }
 0x74f   : > { %4631 = vmatprep.subr.bf16.mxu0 %v9761_v49 }
 0x750   : > { %7200 = vmatpush3.bf16.msra.mxu1 %v9782_v50  ;;  %v10719_v50 = vld [vmem:[#allocation101_spill] sm:$0xff] }
 0x751   : > { %7201 = vmatprep.subr.bf16.mxu1 %v10685_v22 }
 0x752   : > { %4632 = vmatpush1.bf16.msra.mxu0 %v9771_v47 }
 0x753   : > { %4633 = vmatprep.subr.bf16.mxu0 %v9777_v54  ;;  %v6289_v54 = vcombine.low %v10719_v50, %v10718_v63 }
 0x754   : > { %7202 = vmatpush3.bf16.msra.mxu1 %v9798_v60 }
 0x755   : > { %7207 = vmatprep.subr.bf16.mxu1 %v10685_v22 }
 0x756   : > { %4634 = vmatpush1.bf16.msra.mxu0 %v9787_v53  ;;  %v10721_v53 = vld [vmem:[#allocation92_spill] sm:$0xff] }
 0x757   : > { %4872 = vmatprep.subr.bf16.mxu0 %v6288_v58  ;;  %v6282_v31 = vcombine.high %v10721_v53, %v10720_v56  ;;  %7204 = vmatmul.mubr.bf16.vlgmr.msra.gmra.mxu1 %v4474_v59  ;;  %v6281_v63 = vcombine.low %v10721_v53, %v10720_v56  ;;  %v10723_v58 = vld [vmem:[#allocation88_spill] sm:$0xff] }
 0x758   : > { %7208 = vmatpush3.bf16.msra.mxu1 %v6289_v54  ;;  %7223 = vmatprep.mubr.msk.bf16.mxu1 %vm7622_vm3, %v10685_v22  ;;  %v10725_v54 = vld [vmem:[#allocation84_spill] sm:$0xff] }
 0x759   : > { %4652 = vmatmul.mubr.bf16.vlgmr.msra.gmra.mxu0 %v4474_v59  ;;  %7209 = vmatprep.subr.bf16.mxu1 %v10685_v22  ;;  %v10724_v59 = vld [vmem:[#allocation86_spill] sm:$0xff]  ;;  %v10727_v53 = vld [vmem:[#allocation80_spill] sm:$0xff] }
 0x75a   : > { %4873 = vmatpush1.bf16.msra.mxu0 %v6287_v36  ;;  %4904 = vmatprep.mubr.bf16.mxu0 %v10688_v28  ;;  %v10722_v36 = vld [vmem:[#allocation90_spill] sm:$0xff]  ;;  %v6276_v41 = vcombine.high %v10725_v54, %v10724_v59  ;;  %v6272_v56 = vcombine.low %v10727_v53, %v10726_v45 }
 0x75b   : > { %4874 = vmatprep.subr.bf16.mxu0 %v6285_v62  ;;  %v6279_v62 = vcombine.high %v10723_v58, %v10722_v36  ;;  %v6278_v50 = vcombine.low %v10723_v58, %v10722_v36  ;;  %v10731_v58 = vld [vmem:[#allocation76_spill] sm:$0xff] }
 0x75e   : > { %4875 = vmatpush1.bf16.msra.mxu0 %v6284_v55  ;;  %v6275_v55 = vcombine.low %v10725_v54, %v10724_v59 }
 0x75f   : > { %4876 = vmatprep.subr.bf16.mxu0 %v6282_v31  ;;  %v6273_v31 = vcombine.high %v10727_v53, %v10726_v45  ;;  %v10735_v45 = vld [vmem:[#allocation72_spill] sm:$0xff] }
 0x762   : > { %4877 = vmatpush1.bf16.msra.mxu0 %v6281_v63  ;;  %v10728_v63 = vld [vmem:[#allocation99_spill] sm:$0xff] }
 0x763   : > { %4878 = vmatprep.subr.bf16.mxu0 %v6279_v62  ;;  %v6286_v36 = vcombine.low %v10729_v61, %v10728_v63  ;;  %v10730_v62 = vld [vmem:[#allocation78_spill] sm:$0xff] }
 0x764   : > { %v6269_v54 = vcombine.low %v10731_v58, %v10730_v62 }
 0x765   : > { %7210 = vmatpush3.bf16.msra.mxu1 %v6286_v36  ;;  %v10737_v36 = vld [vmem:[#allocation89_spill] sm:$0xff] }
 0x766   : > { %4879 = vmatpush1.bf16.msra.mxu0 %v6278_v50  ;;  %v6270_v50 = vcombine.high %v10731_v58, %v10730_v62  ;;  %7211 = vmatprep.subr.bf16.mxu1 %v10685_v22 }
 0x767   : > { %4880 = vmatprep.subr.bf16.mxu0 %v6276_v41  ;;  %v10732_v41 = vld [vmem:[#allocation95_spill] sm:$0xff] }
 0x76a   : > { %4881 = vmatpush1.bf16.msra.mxu0 %v6275_v55  ;;  %v10733_v55 = vld [vmem:[#allocation93_spill] sm:$0xff] }
 0x76b   : > { %4882 = vmatprep.subr.bf16.mxu0 %v6273_v31  ;;  %v6283_v59 = vcombine.low %v10733_v55, %v10732_v41  ;;  %v10734_v31 = vld [vmem:[#allocation74_spill] sm:$0xff]  ;;  %v10741_v55 = vld [vmem:[#allocation81_spill] sm:$0xff] }
 0x76c   : > { %v6267_v53 = vcombine.high %v10735_v45, %v10734_v31  ;;  %v6266_v61 = vcombine.low %v10735_v45, %v10734_v31 }
 0x76d   : > { %7212 = vmatpush3.bf16.msra.mxu1 %v6283_v59  ;;  %v10738_v59 = vld [vmem:[#allocation87_spill] sm:$0xff] }
 0x76e   : > { %4883 = vmatpush1.bf16.msra.mxu0 %v6272_v56  ;;  %7213 = vmatprep.subr.bf16.mxu1 %v10685_v22  ;;  %v10736_v56 = vld [vmem:[#allocation91_spill] sm:$0xff] }
 0x76f   : > { %4884 = vmatprep.subr.bf16.mxu0 %v6270_v50  ;;  %v6280_v63 = vcombine.low %v10737_v36, %v10736_v56  ;;  %v4727_v50 = vpack.c.bf16 %v7603_v25, %v7603_v25  ;;  %v10742_v56 = vld [vmem:[#allocation79_spill] sm:$0xff]  ;;  %v10743_v36 = vld [vmem:[#allocation77_spill] sm:$0xff]  ;;  %v4219_v25 = vld [vmem:[%s9904_s21 + $0x8] sm:$0xff] }
 0x771   : > { %7214 = vmatpush3.bf16.msra.mxu1 %v6280_v63  ;;  %v6271_v63 = vcombine.low %v10743_v36, %v10742_v56  ;;  %v10749_v36 = vld [vmem:[#allocation19_spill] sm:$0xff] }
 0x772   : > { %4885 = vmatpush1.bf16.msra.mxu0 %v6269_v54  ;;  %7215 = vmatprep.subr.bf16.mxu1 %v10685_v22  ;;  %v10739_v54 = vld [vmem:[#allocation85_spill] sm:$0xff] }
 0x773   : > { %4886 = vmatprep.subr.bf16.mxu0 %v6267_v53  ;;  %v6277_v41 = vcombine.low %v10739_v54, %v10738_v59  ;;  %v10740_v53 = vld [vmem:[#allocation83_spill] sm:$0xff]  ;;  %v10745_v54 = vld [vmem:[#allocation73_spill] sm:$0xff] }
 0x774   : > { %v10744_v59 = vld [vmem:[#allocation75_spill] sm:$0xff] }
 0x775   : > { %7216 = vmatpush3.bf16.msra.mxu1 %v6277_v41  ;;  %v6268_v41 = vcombine.low %v10745_v54, %v10744_v59 }
 0x776   : > { %4887 = vmatpush1.bf16.msra.mxu0 %v6266_v61  ;;  %7217 = vmatprep.subr.bf16.mxu1 %v10685_v22  ;;  %v6274_v61 = vcombine.low %v10741_v55, %v10740_v53  ;;  %v4218_v55 = vld [vmem:[%s9904_s21] sm:$0xff] }
 0x777   : > { %4982 = vmatprep.subr.bf16.mxu0 %v9537_v51 }
 0x779   : > { %4905 = vmatmul.mubr.bf16.vlgmr.msra.gmra.mxu0 %v4727_v50  ;;  %7218 = vmatpush3.bf16.msra.mxu1 %v6274_v61 }
 0x77a   : > { %4983 = vmatpush1.bf16.msra.mxu0 %v9541_v35  ;;  %5014 = vmatprep.mubr.bf16.mxu0 %v10688_v28 }
 0x77b   : > { %4984 = vmatprep.subr.bf16.mxu0 %v9545_v23  ;;  %7219 = vmatprep.subr.bf16.mxu1 %v10685_v22 }
 0x77d   : > { %7220 = vmatpush3.bf16.msra.mxu1 %v6271_v63 }
 0x77e   : > { %4985 = vmatpush1.bf16.msra.mxu0 %v9551_v21  ;;  %7221 = vmatprep.subr.bf16.mxu1 %v10685_v22 }
 0x77f   : > { %4986 = vmatprep.subr.bf16.mxu0 %v9556_v27 }
 0x781   : > { %7222 = vmatpush3.bf16.msra.mxu1 %v6268_v41 }
 0x782   : > { %4987 = vmatpush1.bf16.msra.mxu0 %v9572_v39  ;;  %7227 = vmatprep.subr.bf16.mxu1 %v10685_v22 }
 0x783   : > { %4988 = vmatprep.subr.bf16.mxu0 %v9578_v14 }
 0x784   : > { %7224 = vmatmul.mubr.bf16.vlgmr.msra.gmra.mxu1 %v4727_v50  ;;  %v10747_v50 = vld [vmem:[#allocation104_spill] sm:$0xff] }
 0x785   : > { %7228 = vmatpush3.bf16.msra.mxu1 %v9561_v33  ;;  %7243 = vmatprep.mubr.msk.bf16.mxu1 %vm7622_vm3, %v10685_v22  ;;  %v9910_v63 = vrot.slane %v10747_v50, %v10749_v36 }
 0x786   : > { %4989 = vmatpush1.bf16.msra.mxu0 %v9590_v52  ;;  %7229 = vmatprep.subr.bf16.mxu1 %v10685_v22 }
 0x787   : > { %4990 = vmatprep.subr.bf16.mxu0 %v9596_v13  ;;  %10750 = vst [vmem:[#allocation123_spill] sm:$0xff] %v9910_v63 }
 0x789   : > { %7230 = vmatpush3.bf16.msra.mxu1 %v9567_v18 }
 0x78a   : > { %4991 = vmatpush1.bf16.msra.mxu0 %v9606_v12  ;;  %7231 = vmatprep.subr.bf16.mxu1 %v10685_v22 }
 0x78b   : > { %4992 = vmatprep.subr.bf16.mxu0 %v9612_v40 }
 0x78d   : > { %7232 = vmatpush3.bf16.msra.mxu1 %v9585_v3 }
 0x78e   : > { %4993 = vmatpush1.bf16.msra.mxu0 %v9622_v2  ;;  %7233 = vmatprep.subr.bf16.mxu1 %v10685_v22 }
 0x78f   : > { %4994 = vmatprep.subr.bf16.mxu0 %v9628_v4 }
 0x791   : > { %7234 = vmatpush3.bf16.msra.mxu1 %v9601_v29 }
 0x792   : > { %4995 = vmatpush1.bf16.msra.mxu0 %v9638_v6  ;;  %7235 = vmatprep.subr.bf16.mxu1 %v10685_v22 }
 0x793   : > { %4996 = vmatprep.subr.bf16.mxu0 %v9644_v7 }
 0x795   : > { %7236 = vmatpush3.bf16.msra.mxu1 %v9617_v1 }
 0x796   : > { %4997 = vmatpush1.bf16.msra.mxu0 %v9654_v9  ;;  %7237 = vmatprep.subr.bf16.mxu1 %v10685_v22 }
 0x797   : > { %5092 = vmatprep.subr.bf16.mxu0 %v9660_v16  ;;  %v10746_v16 = vld [vmem:[#allocation10_spill] sm:$0xff] }
 0x798   : > { %v9902_v53 = vrot.slane %v10747_v50, %v10746_v16 }
 0x799   : > { %7238 = vmatpush3.bf16.msra.mxu1 %v9633_v5 }
 0x79a   : > { %7239 = vmatprep.subr.bf16.mxu1 %v10685_v22  ;;  %10748 = vst [vmem:[#allocation122_spill] sm:$0xff] %v9902_v53 }
 0x79d   : > { %7240 = vmatpush3.bf16.msra.mxu1 %v9649_v8 }
 0x79e   : > { %7241 = vmatprep.subr.bf16.mxu1 %v10685_v22 }
 0x7a1   : > { %7242 = vmatpush3.bf16.msra.mxu1 %v9667_v15 }
 0x7a2   : > { %7247 = vmatprep.subr.bf16.mxu1 %v10685_v22 }
 0x7f7   : > { %v4441_v41 = vpop.f32.mrf.mxu1 }
 0x7f9   : > { %v4400_v61 = vpop.f32.mrf.mxu0  ;;  %v7185_v62 = vpop.f32.mrf.mxu1 }
 0x7fa   : > { %v4401_v56 = vadd.f32 %v4400_v61, %v9902_v53 }
 0x7fb   : > { %v4402_v59 = vpop.f32.mrf.mxu0  ;;  %v4444_v9 = vpop.f32.mrf.mxu1 }
 0x7fc   : > { %v4447_v54 = vadd.f32 %v4401_v56, %v4218_v55  ;;  %v4403_v58 = vadd.f32 %v4402_v59, %v9910_v63  ;;  %v10751_v55 = vld [vmem:[#allocation25_spill] sm:$0xff]  ;;  %v4472_v63 = vld [vmem:[%s9927_s3 + $0x8] sm:$0xff] }
 0x7fd   : > { %v4404_v31 = vpop.f32.mrf.mxu0  ;;  %v7186_v8 = vpop.f32.mrf.mxu1  ;;  %v10753_v56 = vld [vmem:[#allocation105_spill] sm:$0xff] }
 0x7fe   : > { %v6235_v45 = vmul.f32 -1.442695, %v4447_v54  ;;  %v4454_v7 = vadd.f32 %v4403_v58, %v4219_v25  ;;  %v9917_v31 = vrot.slane %v10747_v50, %v10751_v55  ;;  %v9921_v62 = vrot.slane %v10753_v56, %v10746_v16  ;;  %v4471_v8 = vld [vmem:[%s9927_s3] sm:$0xff]  ;;  %v4220_v50 = vld [vmem:[%s9904_s21 + $0x10] sm:$0xff] }
 0x7ff   : > { %v4405_v15 = vpop.f32.mrf.mxu0  ;;  %v9925_v9 = vrot.slane %v10753_v56, %v10749_v36 }
 0x800   : > { %7487 = vpow2.f32 %v6235_v45  ;;  %v6236_v61 = vmul.f32 -1.442695, %v4454_v7  ;;  %10752 = vst [vmem:[#allocation124_spill] sm:$0xff] %v9917_v31  ;;  %10754 = vst [vmem:[#allocation125_spill] sm:$0xff] %v9921_v62  ;;  %v4442_v45 = vadd.f32 %v4441_v41, %v9917_v31 }
 0x801   : > { %10755 = vst [vmem:[#allocation126_spill] sm:$0xff] %v9925_v9 }
 0x802   : > { %7489 = vpow2.f32 %v6236_v61 }
 0x80d   : > { %v7488_v53 = vpop.eup %7487 }
 0x80e   : > { %v4451_v6 = vadd.f32 1.0, %v7488_v53 }
 0x80f   : > { %v7490_v15 = vpop.eup %7489 }
 0x810   : > { %7491 = vrcp.f32 %v4451_v6  ;;  %v4458_v6 = vadd.f32 1.0, %v7490_v15 }
 0x812   : > { %7493 = vrcp.f32 %v4458_v6 }
 0x817   : > { %v4694_v54 = vpop.f32.mrf.mxu1 }
 0x819   : > { %v4653_v7 = vpop.f32.mrf.mxu0  ;;  %v7205_v40 = vpop.f32.mrf.mxu1 }
 0x81a   : > { %v4654_v25 = vadd.f32 %v4653_v7, %v9921_v62 }
 0x81b   : > { %v4655_v58 = vpop.f32.mrf.mxu0  ;;  %v4697_v41 = vpop.f32.mrf.mxu1 }
 0x81c   : > { %v4700_v53 = vadd.f32 %v4654_v25, %v4471_v8  ;;  %v4656_v59 = vadd.f32 %v4655_v58, %v9925_v9 }
 0x81d   : > { %v7492_v61 = vpop.eup %7491  ;;  %v4657_v4 = vpop.f32.mrf.mxu0 }
 0x81e   : > { %v4461_v5 = vmul.f32 %v7492_v61, %v4442_v45  ;;  %v6263_v2 = vmul.f32 -1.442695, %v4700_v53  ;;  %v4707_v15 = vadd.f32 %v4656_v59, %v4472_v63  ;;  %v7206_v7 = vpop.f32.mrf.mxu1  ;;  %v4725_v63 = vld [vmem:[%s9970_s29 + $0x8] sm:$0xff]  ;;  %v10757_v59 = vld [vmem:[#allocation119_spill] sm:$0xff]  ;;  %v10758_v61 = vld [vmem:[#allocation120_spill] sm:$0xff] }
 0x81f   : > { %v4658_v1 = vpop.f32.mrf.mxu0  ;;  %v7494_v8 = vpop.eup %7493 }
 0x820   : > { %v4462_v12 = vadd.f32 %v4461_v5, %v4220_v50  ;;  %7495 = vpow2.f32 %v6263_v2  ;;  %v6264_v31 = vmul.f32 -1.442695, %v4707_v15  ;;  %v4464_v9 = vsub.f32 1.0, %v7494_v8 }
 0x821   : > { %v4466_v6 = vmul.f32 %v7611_v20, %v7494_v8  ;;  %v9942_v5 = vrot.slane %v10753_v56, %v10751_v55  ;;  %v7562_v56 = vld [vmem:[%s10784_s13 + $0x28] sm:$0xff] (%p4206_p0)  }
 0x822   : > { %7497 = vtanh.f32 %v4462_v12  ;;  %v4473_v12 = vld [vmem:[%s9927_s3 + $0x10] sm:$0xff] }
 0x823   : > { %7499 = vpow2.f32 %v6264_v31  ;;  %v4695_v20 = vadd.f32 %v4694_v54, %v9942_v5 }
 0x82d   : > { %v7496_v25 = vpop.eup %7495 }
 0x82e   : > { %v4704_v58 = vadd.f32 1.0, %v7496_v25 }
 0x82f   : > { %v7498_v62 = vpop.eup %7497 }
 0x830   : > { %7501 = vrcp.f32 %v4704_v58  ;;  %v4465_v4 = vmul.f32 %v7498_v62, %v4464_v9  ;;  %v7500_v1 = vpop.eup %7499 }
 0x831   : > { %v4711_v40 = vadd.f32 1.0, %v7500_v1  ;;  %v10761_v1 = vld [vmem:[#allocation110_spill] sm:$0xff] }
 0x832   : > { %v9936_v45 = vadd.f32 %v4466_v6, %v4465_v4 }
 0x833   : > { %7503 = vrcp.f32 %v4711_v40  ;;  %v10762_v40 = vld [vmem:[#allocation109_spill] sm:$0xff] }
 0x834   : > { %v4981_v2 = vpack.c.bf16 %v9936_v45, %v9936_v45 }
 0x836   : > { %5015 = vmatmul.mubr.bf16.vlgmr.msra.gmra.mxu0 %v4981_v2  ;;  %7244 = vmatmul.mubr.bf16.vlgmr.msra.gmra.mxu1 %v4981_v2  ;;  %v10760_v2 = vld [vmem:[#allocation108_spill] sm:$0xff] }
 0x837   : > { %5093 = vmatpush1.bf16.msra.mxu0 %v9672_v11  ;;  %5124 = vmatprep.mubr.bf16.mxu0 %v10688_v28 }
 0x838   : > { %5094 = vmatprep.subr.bf16.mxu0 %v9678_v24  ;;  %7248 = vmatpush3.bf16.msra.mxu1 %v9683_v10 }
 0x839   : > { %7249 = vmatprep.subr.bf16.mxu1 %v10685_v22  ;;  %7263 = vmatprep.mubr.msk.bf16.mxu1 %vm7622_vm3, %v10685_v22 }
 0x83b   : > { %5095 = vmatpush1.bf16.msra.mxu0 %v9688_v0 }
 0x83c   : > { %5096 = vmatprep.subr.bf16.mxu0 %v9694_v30  ;;  %7250 = vmatpush3.bf16.msra.mxu1 %v9700_v17  ;;  %v10756_v30 = vld [vmem:[#allocation106_spill] sm:$0xff]  ;;  %v4906_v17 = vpop.f32.mrf.mxu0 }
 0x83d   : > { %v7502_v11 = vpop.eup %7501  ;;  %7251 = vmatprep.subr.bf16.mxu1 %v10685_v22  ;;  %v4732_v0 = vrot.slane %v10756_v30, %v10746_v16  ;;  %v4740_v58 = vrot.slane %v10756_v30, %v10751_v55  ;;  %v7559_v16 = vld [vmem:[%s10784_s13 + $0x70] sm:$0xff] (%p4206_p0)   ;;  %v7561_v55 = vld [vmem:[%s10784_s13 + $0x68] sm:$0xff] (%p4206_p0)  }
 0x83e   : > { %v4714_v24 = vmul.f32 %v7502_v11, %v4695_v20  ;;  %v4908_v50 = vpop.f32.mrf.mxu0  ;;  %v4726_v11 = vld [vmem:[%s9970_s29 + $0x10] sm:$0xff] }
 0x83f   : > { %5097 = vmatpush1.bf16.msra.mxu0 %v9707_v32  ;;  %v4736_v32 = vrot.slane %v10756_v30, %v10749_v36  ;;  %v7560_v36 = vld [vmem:[%s10784_s13 + $0x30] sm:$0xff] (%p4206_p0)   ;;  %v7563_v30 = vld [vmem:[%s10784_s13 + $0x60] sm:$0xff] (%p4206_p0)  }
 0x840   : > { %v4715_v10 = vadd.f32 %v4714_v24, %v4473_v12  ;;  %5098 = vmatprep.subr.bf16.mxu0 %v9713_v19  ;;  %7252 = vmatpush3.bf16.msra.mxu1 %v9718_v38  ;;  %v4724_v38 = vld [vmem:[%s9970_s29] sm:$0xff]  ;;  %v4907_v19 = vadd.f32 %v4906_v17, %v4732_v0  ;;  %v4910_v31 = vpop.f32.mrf.mxu0  ;;  %v10763_v24 = vld [vmem:[#allocation111_spill] sm:$0xff]  ;;  %v10767_v17 = vld [vmem:[#allocation116_spill] sm:$0xff] }
 0x841   : > { %7253 = vmatprep.subr.bf16.mxu1 %v10685_v22  ;;  %v10764_v0 = vld [vmem:[#allocation113_spill] sm:$0xff] }
 0x842   : > { %7505 = vtanh.f32 %v4715_v10  ;;  %v4911_v9 = vpop.f32.mrf.mxu0 }
 0x843   : > { %5099 = vmatpush1.bf16.msra.mxu0 %v9723_v26  ;;  %v4953_v26 = vadd.f32 %v4907_v19, %v4724_v38  ;;  %v10766_v38 = vld [vmem:[#allocation114_spill] sm:$0xff]  ;;  %v10768_v19 = vld [vmem:[#allocation115_spill] sm:$0xff] }
 0x844   : > { %5100 = vmatprep.subr.bf16.mxu0 %v9729_v42  ;;  %7254 = vmatpush3.bf16.msra.mxu1 %v9734_v37  ;;  %v4909_v42 = vadd.f32 %v4908_v50, %v4736_v32  ;;  %v7504_v37 = vpop.eup %7503  ;;  %v10765_v32 = vld [vmem:[#allocation112_spill] sm:$0xff]  ;;  %v10769_v50 = vld [vmem:[#allocation117_spill] sm:$0xff] }
 0x845   : > { %7255 = vmatprep.subr.bf16.mxu1 %v10685_v22  ;;  %v6290_v62 = vmul.f32 -1.442695, %v4953_v26  ;;  %v4717_v53 = vsub.f32 1.0, %v7504_v37  ;;  %v10770_v26 = vld [vmem:[#allocation118_spill] sm:$0xff] }
 0x847   : > { %5101 = vmatpush1.bf16.msra.mxu0 %v9739_v34  ;;  %7507 = vpow2.f32 %v6290_v62  ;;  %v4719_v34 = vmul.f32 %v7607_v57, %v7504_v37  ;;  %v4947_v57 = vpop.f32.mrf.mxu1 }
 0x848   : > { %5102 = vmatprep.subr.bf16.mxu0 %v9745_v46  ;;  %7256 = vmatpush3.bf16.msra.mxu1 %v9750_v43  ;;  %v4960_v46 = vadd.f32 %v4909_v42, %v4725_v63  ;;  %v4948_v6 = vadd.f32 %v4947_v57, %v4740_v58  ;;  %v10771_v63 = vld [vmem:[#allocation107_spill] sm:$0xff] }
 0x849   : > { %7257 = vmatprep.subr.bf16.mxu1 %v10685_v22 }
 0x84b   : > { %5103 = vmatpush1.bf16.msra.mxu0 %v9755_v44  ;;  %v6291_v44 = vmul.f32 -1.442695, %v4960_v46  ;;  %v6294_v46 = vld [vmem:[%s9904_s21 + $0x18] sm:$0xff] }
 0x84c   : > { %5104 = vmatprep.subr.bf16.mxu0 %v9761_v49  ;;  %7258 = vmatpush3.bf16.msra.mxu1 %v9766_v48  ;;  %v10759_v48 = vld [vmem:[#allocation121_spill] sm:$0xff] }
 0x84d   : > { %7259 = vmatprep.subr.bf16.mxu1 %v10685_v22  ;;  %7509 = vpow2.f32 %v6291_v44 }
 0x84f   : > { %v7506_v43 = vpop.eup %7505  ;;  %5105 = vmatpush1.bf16.msra.mxu0 %v9771_v47  ;;  %v7225_v47 = vpop.f32.mrf.mxu1 }
 0x850   : > { %5106 = vmatprep.subr.bf16.mxu0 %v10757_v59  ;;  %v4718_v54 = vmul.f32 %v7506_v43, %v4717_v53  ;;  %7260 = vmatpush3.bf16.msra.mxu1 %v10758_v61  ;;  %v10773_v59 = vld [vmem:[#allocation122_spill] sm:$0xff]  ;;  %v10774_v47 = vld [vmem:[#allocation123_spill] sm:$0xff] }
 0x851   : > { %7261 = vmatprep.subr.bf16.mxu1 %v10685_v22  ;;  %v4950_v7 = vpop.f32.mrf.mxu1 }
 0x852   : > { %v9987_v49 = vadd.f32 %v4719_v34, %v4718_v54 }
 0x853   : > { %5107 = vmatpush1.bf16.msra.mxu0 %v10759_v48  ;;  %v7226_v8 = vpop.f32.mrf.mxu1 }
 0x854   : > { %v5091_v15 = vpack.c.bf16 %v9987_v49, %v9987_v49  ;;  %7262 = vmatpush3.bf16.msra.mxu1 %v9798_v60  ;;  %5202 = vmatprep.subr.bf16.mxu0 %v9537_v51  ;;  %v7508_v41 = vpop.eup %7507 }
 0x855   : > { %7267 = vmatprep.subr.bf16.mxu1 %v10685_v22  ;;  %v4957_v60 = vadd.f32 1.0, %v7508_v41 }
 0x856   : > { %5125 = vmatmul.mubr.bf16.vlgmr.msra.gmra.mxu0 %v5091_v15 }
 0x857   : > { %7264 = vmatmul.mubr.bf16.vlgmr.msra.gmra.mxu1 %v5091_v15  ;;  %5203 = vmatpush1.bf16.msra.mxu0 %v9541_v35  ;;  %7511 = vrcp.f32 %v4957_v60  ;;  %v6295_v60 = vld [vmem:[%s9904_s21 + $0x20] sm:$0xff] }
 0x858   : > { %7268 = vmatpush3.bf16.msra.mxu1 %v9561_v33  ;;  %5204 = vmatprep.subr.bf16.mxu0 %v9545_v23 }
 0x859   : > { %7269 = vmatprep.subr.bf16.mxu1 %v10685_v22  ;;  %5234 = vmatprep.mubr.bf16.mxu0 %v10688_v28 }
 0x85a   : > { %7283 = vmatprep.mubr.msk.bf16.mxu1 %vm7622_vm3, %v10685_v22  ;;  %v7510_v25 = vpop.eup %7509 }
 0x85b   : > { %5205 = vmatpush1.bf16.msra.mxu0 %v9551_v21  ;;  %v4964_v4 = vadd.f32 1.0, %v7510_v25 }
 0x85c   : > { %7270 = vmatpush3.bf16.msra.mxu1 %v9567_v18  ;;  %5206 = vmatprep.subr.bf16.mxu0 %v9556_v27 }
 0x85d   : > { %7271 = vmatprep.subr.bf16.mxu1 %v10685_v22  ;;  %7513 = vrcp.f32 %v4964_v4 }
 0x85f   : > { %5207 = vmatpush1.bf16.msra.mxu0 %v9572_v39 }
 0x860   : > { %7272 = vmatpush3.bf16.msra.mxu1 %v9585_v3  ;;  %5208 = vmatprep.subr.bf16.mxu0 %v9578_v14 }
 0x861   : > { %7273 = vmatprep.subr.bf16.mxu1 %v10685_v22 }
 0x863   : > { %5209 = vmatpush1.bf16.msra.mxu0 %v9590_v52 }
 0x864   : > { %7274 = vmatpush3.bf16.msra.mxu1 %v9601_v29  ;;  %5210 = vmatprep.subr.bf16.mxu0 %v9596_v13  ;;  %v7512_v20 = vpop.eup %7511 }
 0x865   : > { %7275 = vmatprep.subr.bf16.mxu1 %v10685_v22  ;;  %v4967_v12 = vmul.f32 %v7512_v20, %v4948_v6 }
 0x867   : > { %5211 = vmatpush1.bf16.msra.mxu0 %v10760_v2  ;;  %v4968_v10 = vadd.f32 %v4967_v12, %v4726_v11  ;;  %v6301_v11 = vld [vmem:[%s9927_s3 + $0x18] sm:$0xff] }
 0x868   : > { %7276 = vmatpush3.bf16.msra.mxu1 %v10761_v1  ;;  %5212 = vmatprep.subr.bf16.mxu0 %v10762_v40 }
 0x869   : > { %7277 = vmatprep.subr.bf16.mxu1 %v10685_v22  ;;  %7515 = vtanh.f32 %v4968_v10 }
 0x86a   : > { %v7514_v42 = vpop.eup %7513 }
 0x86b   : > { %5213 = vmatpush1.bf16.msra.mxu0 %v10763_v24  ;;  %v4970_v37 = vsub.f32 1.0, %v7514_v42  ;;  %v4972_v31 = vmul.f32 %v10771_v63, %v7514_v42  ;;  %v10775_v42 = vld [vmem:[#allocation125_spill] sm:$0xff] }
 0x86c   : > { %7278 = vmatpush3.bf16.msra.mxu1 %v10764_v0  ;;  %5214 = vmatprep.subr.bf16.mxu0 %v10765_v32 }
 0x86d   : > { %7279 = vmatprep.subr.bf16.mxu1 %v10685_v22 }
 0x86f   : > { %5215 = vmatpush1.bf16.msra.mxu0 %v10766_v38 }
 0x870   : > { %7280 = vmatpush3.bf16.msra.mxu1 %v10767_v17  ;;  %5216 = vmatprep.subr.bf16.mxu0 %v10768_v19 }
 0x871   : > { %7281 = vmatprep.subr.bf16.mxu1 %v10685_v22 }
 0x873   : > { %5217 = vmatpush1.bf16.msra.mxu0 %v10769_v50 }
 0x874   : > { %7282 = vmatpush3.bf16.msra.mxu1 %v10770_v26  ;;  %5312 = vmatprep.subr.bf16.mxu0 %v9537_v51 }
 0x875   : > { %7287 = vmatprep.subr.bf16.mxu1 %v10685_v22 }
 0x876   : > { %v7516_v62 = vpop.eup %7515 }
 0x877   : > { %v4971_v9 = vmul.f32 %v7516_v62, %v4970_v37  ;;  %v10776_v62 = vld [vmem:[#allocation124_spill] sm:$0xff] }
 0x879   : > { %v10034_v25 = vadd.f32 %v4972_v31, %v4971_v9  }
 0x87b   : > { %v10772_v53 = vmov %v10034_v25 }
 0x8f6   : > { %v5016_v34 = vpop.f32.mrf.mxu0  ;;  %v5057_v43 = vpop.f32.mrf.mxu1 }
 0x8f7   : > { %v5017_v54 = vadd.f32 %v5016_v34, %v10773_v59  ;;  %v5058_v9 = vadd.f32 %v5057_v43, %v10776_v62 }
 0x8f8   : > { %v5018_v61 = vpop.f32.mrf.mxu0  ;;  %v7245_v44 = vpop.f32.mrf.mxu1 }
 0x8f9   : > { %v5063_v48 = vadd.f32 %v6294_v46, %v5017_v54  ;;  %v5019_v41 = vadd.f32 %v5018_v61, %v10774_v47  ;;  %v6296_v61 = vld [vmem:[%s9904_s21 + $0x28] sm:$0xff] }
 0x8fa   : > { %v5020_v51 = vpop.f32.mrf.mxu0  ;;  %v5060_v15 = vpop.f32.mrf.mxu1 }
 0x8fb   : > { %v6297_v57 = vmul.f32 -1.442695, %v5063_v48  ;;  %v5070_v58 = vadd.f32 %v6295_v60, %v5019_v41  ;;  %v10777_v15 = vld [vmem:[#allocation126_spill] sm:$0xff]  ;;  %v6302_v60 = vld [vmem:[%s9927_s3 + $0x20] sm:$0xff] }
 0x8fc   : > { %v5021_v7 = vpop.f32.mrf.mxu0  ;;  %v7246_v8 = vpop.f32.mrf.mxu1 }
 0x8fd   : > { %7517 = vpow2.f32 %v6297_v57  ;;  %v6298_v25 = vmul.f32 -1.442695, %v5070_v58 }
 0x8ff   : > { %7519 = vpow2.f32 %v6298_v25 }
 0x90a   : > { %v7518_v4 = vpop.eup %7517 }
 0x90b   : > { %v5067_v6 = vadd.f32 1.0, %v7518_v4 }
 0x90c   : > { %v7520_v20 = vpop.eup %7519 }
 0x90d   : > { %7521 = vrcp.f32 %v5067_v6  ;;  %v5074_v10 = vadd.f32 1.0, %v7520_v20 }
 0x90f   : > { %7523 = vrcp.f32 %v5074_v10 }
 0x916   : > { %v5126_v12 = vpop.f32.mrf.mxu0 }
 0x917   : > { %v5127_v37 = vadd.f32 %v5126_v12, %v10775_v42  ;;  %v5167_v63 = vpop.f32.mrf.mxu1 }
 0x918   : > { %v5128_v31 = vpop.f32.mrf.mxu0 }
 0x919   : > { %v5173_v46 = vadd.f32 %v6301_v11, %v5127_v37  ;;  %v7265_v34 = vpop.f32.mrf.mxu1  ;;  %v5129_v57 = vadd.f32 %v5128_v31, %v10777_v15 }
 0x91a   : > { %v7522_v54 = vpop.eup %7521  ;;  %v5130_v44 = vpop.f32.mrf.mxu0 }
 0x91b   : > { %v5077_v48 = vmul.f32 %v7522_v54, %v5058_v9  ;;  %v6304_v51 = vmul.f32 -1.442695, %v5173_v46  ;;  %v5170_v41 = vpop.f32.mrf.mxu1  ;;  %v5180_v25 = vadd.f32 %v6302_v60, %v5129_v57  ;;  %v5168_v46 = vadd.f32 %v5167_v63, %v9942_v5 }
 0x91c   : > { %v5131_v7 = vpop.f32.mrf.mxu0  ;;  %v7524_v43 = vpop.eup %7523 }
 0x91d   : > { %v5078_v8 = vadd.f32 %v6296_v61, %v5077_v48  ;;  %7525 = vpow2.f32 %v6304_v51  ;;  %v7266_v58 = vpop.f32.mrf.mxu1  ;;  %v6305_v4 = vmul.f32 -1.442695, %v5180_v25  ;;  %v5080_v11 = vsub.f32 1.0, %v7524_v43  ;;  %v6310_v48 = vld [vmem:[%s9904_s21 + $0x40] sm:$0xff] }
 0x91e   : > { %v5082_v42 = vmul.f32 %v7524_v43, %v9936_v45 }
 0x91f   : > { %7527 = vtanh.f32 %v5078_v8 }
 0x920   : > { %7529 = vpow2.f32 %v6305_v4  ;;  %v6315_v4 = vld [vmem:[%s9904_s21 + $0x48] sm:$0xff] }
 0x92a   : > { %v7526_v6 = vpop.eup %7525 }
 0x92b   : > { %v5177_v20 = vadd.f32 1.0, %v7526_v6 }
 0x92c   : > { %v7528_v12 = vpop.eup %7527 }
 0x92d   : > { %7531 = vrcp.f32 %v5177_v20  ;;  %v5081_v10 = vmul.f32 %v7528_v12, %v5080_v11  ;;  %v7530_v9 = vpop.eup %7529 }
 0x92e   : > { %v5184_v45 = vadd.f32 1.0, %v7530_v9 }
 0x92f   : > { %v10047_v37 = vadd.f32 %v5082_v42, %v5081_v10 }
 0x930   : > { %7533 = vrcp.f32 %v5184_v45 }
 0x931   : > { %v5201_v31 = vpack.c.bf16 %v10047_v37, %v10047_v37 }
 0x933   : > { %5235 = vmatmul.mubr.bf16.vlgmr.msra.gmra.mxu0 %v5201_v31  ;;  %7284 = vmatmul.mubr.bf16.vlgmr.msra.gmra.mxu1 %v5201_v31 }
 0x934   : > { %5313 = vmatpush1.bf16.msra.mxu0 %v9541_v35  ;;  %7288 = vmatpush3.bf16.msra.mxu1 %v9561_v33 }
 0x935   : > { %5314 = vmatprep.subr.bf16.mxu0 %v9545_v23  ;;  %7289 = vmatprep.subr.bf16.mxu1 %v10685_v22  ;;  %v6303_v23 = vld [vmem:[%s9927_s3 + $0x28] sm:$0xff] }
 0x936   : > { %5344 = vmatprep.mubr.bf16.mxu0 %v10688_v28  ;;  %7303 = vmatprep.mubr.msk.bf16.mxu1 %vm7622_vm3, %v10685_v22 }
 0x938   : > { %5315 = vmatpush1.bf16.msra.mxu0 %v9551_v21  ;;  %7290 = vmatpush3.bf16.msra.mxu1 %v9567_v18 }
 0x939   : > { %5316 = vmatprep.subr.bf16.mxu0 %v9556_v27  ;;  %7291 = vmatprep.subr.bf16.mxu1 %v10685_v22 }
 0x93a   : > { %v7532_v35 = vpop.eup %7531 }
 0x93b   : > { %v5187_v33 = vmul.f32 %v7532_v35, %v5168_v46 }
 0x93c   : > { %5317 = vmatpush1.bf16.msra.mxu0 %v9572_v39  ;;  %7292 = vmatpush3.bf16.msra.mxu1 %v9585_v3 }
 0x93d   : > { %v5188_v28 = vadd.f32 %v6303_v23, %v5187_v33  ;;  %5318 = vmatprep.subr.bf16.mxu0 %v9578_v14  ;;  %7293 = vmatprep.subr.bf16.mxu1 %v10685_v22  ;;  %v7534_v21 = vpop.eup %7533 }
 0x93e   : > { %v5190_v27 = vsub.f32 1.0, %v7534_v21  ;;  %v5192_v39 = vmul.f32 %v7534_v21, %v9987_v49 }
 0x93f   : > { %7535 = vtanh.f32 %v5188_v28 }
 0x940   : > { %5319 = vmatpush1.bf16.msra.mxu0 %v9590_v52  ;;  %7294 = vmatpush3.bf16.msra.mxu1 %v9601_v29  ;;  %v6308_v52 = vld [vmem:[%s9904_s21 + $0x30] sm:$0xff] }
 0x941   : > { %5320 = vmatprep.subr.bf16.mxu0 %v9596_v13  ;;  %7295 = vmatprep.subr.bf16.mxu1 %v10685_v22 }
 0x944   : > { %5321 = vmatpush1.bf16.msra.mxu0 %v10760_v2  ;;  %7296 = vmatpush3.bf16.msra.mxu1 %v10761_v1 }
 0x945   : > { %5322 = vmatprep.subr.bf16.mxu0 %v10762_v40  ;;  %7297 = vmatprep.subr.bf16.mxu1 %v10685_v22 }
 0x948   : > { %5323 = vmatpush1.bf16.msra.mxu0 %v10763_v24  ;;  %7298 = vmatpush3.bf16.msra.mxu1 %v10764_v0 }
 0x949   : > { %5324 = vmatprep.subr.bf16.mxu0 %v10765_v32  ;;  %7299 = vmatprep.subr.bf16.mxu1 %v10685_v22  ;;  %v6309_v32 = vld [vmem:[%s9904_s21 + $0x38] sm:$0xff] }
 0x94c   : > { %v7536_v18 = vpop.eup %7535  ;;  %5325 = vmatpush1.bf16.msra.mxu0 %v10766_v38  ;;  %7300 = vmatpush3.bf16.msra.mxu1 %v10767_v17 }
 0x94d   : > { %v5191_v14 = vmul.f32 %v7536_v18, %v5190_v27  ;;  %5326 = vmatprep.subr.bf16.mxu0 %v10768_v19  ;;  %7301 = vmatprep.subr.bf16.mxu1 %v10685_v22 }
 0x94f   : > { %v10085_v57 = vadd.f32 %v5192_v39, %v5191_v14   ;;  %v6317_v14 = vld [vmem:[%s9904_s21 + $0x58] sm:$0xff] }
 0x950   : > { %5327 = vmatpush1.bf16.msra.mxu0 %v10769_v50  ;;  %7302 = vmatpush3.bf16.msra.mxu1 %v10770_v26 }
 0x951   : > { %v10778_v3 = vmov %v10085_v57 }
 0x9f3   : > { %v5236_v13 = vpop.f32.mrf.mxu0  ;;  %v5277_v29 = vpop.f32.mrf.mxu1 }
 0x9f4   : > { %v5237_v5 = vadd.f32 %v5236_v13, %v10773_v59  ;;  %v5278_v61 = vadd.f32 %v5277_v29, %v10776_v62 }
 0x9f5   : > { %v5238_v2 = vpop.f32.mrf.mxu0  ;;  %v7285_v1 = vpop.f32.mrf.mxu1 }
 0x9f6   : > { %v5283_v49 = vadd.f32 %v6308_v52, %v5237_v5  ;;  %v5239_v22 = vadd.f32 %v5238_v2, %v10774_v47 }
 0x9f7   : > { %v5240_v40 = vpop.f32.mrf.mxu0  ;;  %v5280_v24 = vpop.f32.mrf.mxu1 }
 0x9f8   : > { %v6311_v0 = vmul.f32 -1.442695, %v5283_v49  ;;  %v5290_v19 = vadd.f32 %v6309_v32, %v5239_v22  ;;  %v7557_v40 = vld [vmem:[%s10784_s13 + $0x78] sm:$0xff] (%p4206_p0)  }
 0x9f9   : > { %v5241_v38 = vpop.f32.mrf.mxu0  ;;  %v7286_v17 = vpop.f32.mrf.mxu1  ;;  %v7558_v24 = vld [vmem:[%s10784_s13 + $0x38] sm:$0xff] (%p4206_p0)  }
 0x9fa   : > { %7537 = vpow2.f32 %v6311_v0  ;;  %v6312_v50 = vmul.f32 -1.442695, %v5290_v19  ;;  %v7564_v0 = vld [vmem:[%s10784_s13 + $0x20] sm:$0xff] (%p4206_p0)   ;;  %v7565_v22 = vld [vmem:[%s10784_s13 + $0x58] sm:$0xff] (%p4206_p0)   ;;  %v7567_v38 = vld [vmem:[%s10784_s13 + $0x50] sm:$0xff] (%p4206_p0)  }
 0x9fb   :  { %v7566_v32 = vld [vmem:[%s10784_s13 + $0x18] sm:$0xff] (%p4206_p0)   ;;  %v7568_v17 = vld [vmem:[%s10784_s13 + $0x10] sm:$0xff] (%p4206_p0)   ;;  %v7569_v19 = vld [vmem:[%s10784_s13 + $0x48] sm:$0xff] (%p4206_p0)  }
 0x9fc   : > { %7539 = vpow2.f32 %v6312_v50  ;;  %v7570_v50 = vld [vmem:[%s10784_s13 + $0x8] sm:$0xff] (%p4206_p0)  }
 0xa07   : > { %v7538_v26 = vpop.eup %7537 }
 0xa08   : > { %v5287_v63 = vadd.f32 1.0, %v7538_v26  ;;  %v7571_v26 = vld [vmem:[%s10784_s13 + $0x40] sm:$0xff] (%p4206_p0)  }
 0xa09   : > { %v7540_v34 = vpop.eup %7539 }
 0xa0a   : > { %7541 = vrcp.f32 %v5287_v63  ;;  %v5294_v54 = vadd.f32 1.0, %v7540_v34  ;;  %v7572_v63 = vld [vmem:[%s10784_s13] sm:$0xff] (%p4206_p0)   ;;  %v5431_v34 = vpack.c.bf16 (%p4206_p0), %v10778_v3, %v10778_v3 }
 0xa0c   : > { %7543 = vrcp.f32 %v5294_v54 }
 0xa17   : > { %v7542_v44 = vpop.eup %7541 }
 0xa18   : > { %v5297_v51 = vmul.f32 %v7542_v44, %v5278_v61  ;;  %v7573_v61 = vld [vmem:[%s10784_s13 + $0xb8] sm:$0xff] (%p4206_p0)  }
 0xa19   : > { %v7544_v57 = vpop.eup %7543  ;;  %v7576_v44 = vld [vmem:[%s10785_s26 + $0x18] sm:$0xff] (%p4206_p0)  }
 0xa1a   : > { %v5298_v15 = vadd.f32 %v6310_v48, %v5297_v51  ;;  %v5300_v41 = vsub.f32 1.0, %v7544_v57  ;;  %v5302_v8 = vmul.f32 %v7544_v57, %v10047_v37  ;;  %v6316_v37 = vld [vmem:[%s9904_s21 + $0x50] sm:$0xff]  ;;  %v10781_v57 = vmov %v10778_v3  ;;  %v7575_v51 = vld [vmem:[%s10784_s13 + $0xa8] sm:$0xff] (%p4206_p0)  }
 0xa1b   :  { %v7574_v3 = vld [vmem:[%s10784_s13 + $0xb0] sm:$0xff] (%p4206_p0)   ;;  %v7577_v57 = vld [vmem:[%s10784_s13 + $0xa0] sm:$0xff] (%p4206_p0)  }
 0xa1c   : > { %7545 = vtanh.f32 %v5298_v15  ;;  %v7578_v48 = vld [vmem:[%s10785_s26 + $0x10] sm:$0xff] (%p4206_p0)   ;;  %v7580_v15 = vld [vmem:[%s10785_s26 + $0x8] sm:$0xff] (%p4206_p0)  }
 0xa29   : > { %v7546_v60 = vpop.eup %7545 }
 0xa2a   : > { %v5301_v7 = vmul.f32 %v7546_v60, %v5300_v41  ;;  %v7582_v41 = vld [vmem:[%s10785_s26] sm:$0xff] (%p4206_p0)  }
 0xa2b   :  { %v5732_v60 = vld [vmem:[%s10786_s2] sm:$0xff] (%p4206_p0) }
 0xa2c   : > { %v5303_v58 = vadd.f32 %v5302_v8, %v5301_v7  ;;  %v7579_v7 = vld [vmem:[%s10784_s13 + $0x98] sm:$0xff] (%p4206_p0)   ;;  %v5733_v8 = vpack.c.bf16 (%p4206_p0), %v5732_v60, %v5732_v60 }
 0xa2e   : > { %v5311_v25 = vpack.c.bf16 %v5303_v58, %v5303_v58 }
 0xa30   : > { %5345 = vmatmul.mubr.bf16.vlgmr.msra.gmra.mxu0 %v5311_v25  ;;  %7304 = vmatmul.mubr.bf16.vlgmr.msra.gmra.mxu1 %v5311_v25  ;;  %v10780_v25 = vmov %v10772_v53 }
 0xa31   :  { %v7583_v25 = vld [vmem:[%s10784_s13 + $0x88] sm:$0xff] (%p4206_p0)  }
 0xaf0   : > { %v5346_v43 = vpop.f32.mrf.mxu0  ;;  %v5387_v6 = vpop.f32.mrf.mxu1 }
 0xaf1   : > { %v5347_v20 = vadd.f32 %v5346_v43, %v10773_v59  ;;  %v5388_v18 = vadd.f32 %v5387_v6, %v10776_v62  ;;  %v10783_v62 = vmov (%p4206_p0), 0.0   ;;  %v5625_v43 = vpack.c.bf16 (%p4206_p0), %v10772_v53, %v10772_v53  ;;  %v6381_v53 = vld [vmem:[%s10787_s30] ss:$0 sm:$0xff] (%p4206_p0) }
 0xaf2   : > { %v5348_v11 = vpop.f32.mrf.mxu0  ;;  %v7305_v12 = vpop.f32.mrf.mxu1  ;;  %7307 = vmatprep.subr.bf16.mxu0 (%p4206_p0), %v10783_v62  ;;  %7327 = vmatprep.subr.bf16.mxu1 (%p4206_p0), %v10783_v62 }
 0xaf3   : > { %v5393_v10 = vadd.f32 %v6315_v4, %v5347_v20  ;;  %v5349_v45 = vadd.f32 %v5348_v11, %v10774_v47  ;;  %7323 = vmatprep.mubr.msk.bf16.mxu0 (%p4206_p0), %vm7623_vm4, %v10783_v62  ;;  %7343 = vmatprep.mubr.msk.bf16.mxu1 (%p4206_p0), %vm7623_vm4, %v10783_v62  ;;  %v7584_v4 = vld [vmem:[%s10784_s13 + $0x80] sm:$0xff] (%p4206_p0)  }
 0xaf4   : > { %v5350_v42 = vpop.f32.mrf.mxu0  ;;  %v5390_v31 = vpop.f32.mrf.mxu1  ;;  %7308 = vmatpush3.bf16.msra.mxu0 (%p4206_p0), %v7557_v40  ;;  %7328 = vmatpush3.bf16.msra.mxu1 (%p4206_p0), %v7558_v24 }
 0xaf5   : > { %v6318_v9 = vmul.f32 -1.442695, %v5393_v10  ;;  %v5400_v23 = vadd.f32 %v6316_v37, %v5349_v45  ;;  %7309 = vmatprep.subr.bf16.mxu0 (%p4206_p0), %v10783_v62  ;;  %7329 = vmatprep.subr.bf16.mxu1 (%p4206_p0), %v10783_v62 }
 0xaf6   : > { %v5351_v46 = vpop.f32.mrf.mxu0  ;;  %v7306_v35 = vpop.f32.mrf.mxu1 }
 0xaf7   : > { %7547 = vpow2.f32 %v6318_v9  ;;  %v6319_v33 = vmul.f32 -1.442695, %v5400_v23 }
 0xaf8   :  { %7310 = vmatpush3.bf16.msra.mxu0 (%p4206_p0), %v7559_v16  ;;  %7330 = vmatpush3.bf16.msra.mxu1 (%p4206_p0), %v7560_v36 }
 0xaf9   : > { %7549 = vpow2.f32 %v6319_v33  ;;  %7311 = vmatprep.subr.bf16.mxu0 (%p4206_p0), %v10783_v62  ;;  %7331 = vmatprep.subr.bf16.mxu1 (%p4206_p0), %v10783_v62 }
 0xafc   :  { %7312 = vmatpush3.bf16.msra.mxu0 (%p4206_p0), %v7561_v55  ;;  %7332 = vmatpush3.bf16.msra.mxu1 (%p4206_p0), %v7562_v56 }
 0xafd   :  { %7313 = vmatprep.subr.bf16.mxu0 (%p4206_p0), %v10783_v62  ;;  %7333 = vmatprep.subr.bf16.mxu1 (%p4206_p0), %v10783_v62 }
 0xb00   :  { %7314 = vmatpush3.bf16.msra.mxu0 (%p4206_p0), %v7563_v30  ;;  %7334 = vmatpush3.bf16.msra.mxu1 (%p4206_p0), %v7564_v0 }
 0xb01   :  { %7315 = vmatprep.subr.bf16.mxu0 (%p4206_p0), %v10783_v62  ;;  %7335 = vmatprep.subr.bf16.mxu1 (%p4206_p0), %v10783_v62 }
 0xb04   : > { %v7548_v28 = vpop.eup %7547  ;;  %7316 = vmatpush3.bf16.msra.mxu0 (%p4206_p0), %v7565_v22  ;;  %7336 = vmatpush3.bf16.msra.mxu1 (%p4206_p0), %v7566_v32 }
 0xb05   : > { %v5397_v21 = vadd.f32 1.0, %v7548_v28  ;;  %7317 = vmatprep.subr.bf16.mxu0 (%p4206_p0), %v10783_v62  ;;  %7337 = vmatprep.subr.bf16.mxu1 (%p4206_p0), %v10783_v62 }
 0xb06   : > { %v7550_v59 = vpop.eup %7549 }
 0xb07   : > { %7551 = vrcp.f32 %v5397_v21  ;;  %v5404_v27 = vadd.f32 1.0, %v7550_v59 }
 0xb08   :  { %7318 = vmatpush3.bf16.msra.mxu0 (%p4206_p0), %v7567_v38  ;;  %7338 = vmatpush3.bf16.msra.mxu1 (%p4206_p0), %v7568_v17 }
 0xb09   : > { %7553 = vrcp.f32 %v5404_v27  ;;  %7319 = vmatprep.subr.bf16.mxu0 (%p4206_p0), %v10783_v62  ;;  %7339 = vmatprep.subr.bf16.mxu1 (%p4206_p0), %v10783_v62 }
 0xb0c   :  { %7320 = vmatpush3.bf16.msra.mxu0 (%p4206_p0), %v7569_v19  ;;  %7340 = vmatpush3.bf16.msra.mxu1 (%p4206_p0), %v7570_v50 }
 0xb0d   :  { %7321 = vmatprep.subr.bf16.mxu0 (%p4206_p0), %v10783_v62  ;;  %7341 = vmatprep.subr.bf16.mxu1 (%p4206_p0), %v10783_v62 }
 0xb10   :  { %7322 = vmatpush3.bf16.msra.mxu0 (%p4206_p0), %v7571_v26  ;;  %7342 = vmatpush3.bf16.msra.mxu1 (%p4206_p0), %v7572_v63 }
 0xb11   :  { %7347 = vmatprep.subr.bf16.mxu0 (%p4206_p0), %v10783_v62  ;;  %7367 = vmatprep.subr.bf16.mxu1 (%p4206_p0), %v10783_v62 }
 0xb13   :  { %7324 = vmatmul.mubr.bf16.vlgmr.msra.gmra.mxu0 (%p4206_p0), %v5431_v34 }
 0xb14   : > { %v7552_v39 = vpop.eup %7551  ;;  %7348 = vmatpush3.bf16.msra.mxu0 (%p4206_p0), %v7573_v61  ;;  %7363 = vmatprep.mubr.msk.bf16.mxu0 (%p4206_p0), %vm7623_vm4, %v10783_v62 }
 0xb15   : > { %v5407_v52 = vmul.f32 %v7552_v39, %v5388_v18  ;;  %7349 = vmatprep.subr.bf16.mxu0 (%p4206_p0), %v10783_v62 }
 0xb16   : > { %v7554_v47 = vpop.eup %7553 }
 0xb17   : > { %v5408_v13 = vadd.f32 %v6317_v14, %v5407_v52  ;;  %v5410_v29 = vsub.f32 1.0, %v7554_v47  ;;  %v5412_v1 = vmul.f32 %v7554_v47, %v5303_v58  ;;  %v7581_v58 = vld [vmem:[%s10784_s13 + $0x90] sm:$0xff] (%p4206_p0)  }
 0xb18   :  { %7350 = vmatpush3.bf16.msra.mxu0 (%p4206_p0), %v7574_v3 }
 0xb19   : > { %7555 = vtanh.f32 %v5408_v13  ;;  %7351 = vmatprep.subr.bf16.mxu0 (%p4206_p0), %v10783_v62 }
 0xb1c   :  { %7352 = vmatpush3.bf16.msra.mxu0 (%p4206_p0), %v7575_v51 }
 0xb1d   :  { %7353 = vmatprep.subr.bf16.mxu0 (%p4206_p0), %v10783_v62 }
 0xb20   :  { %7354 = vmatpush3.bf16.msra.mxu0 (%p4206_p0), %v7577_v57 }
 0xb21   :  { %7355 = vmatprep.subr.bf16.mxu0 (%p4206_p0), %v10783_v62 }
 0xb24   :  { %7356 = vmatpush3.bf16.msra.mxu0 (%p4206_p0), %v7579_v7 }
 0xb25   :  { %7357 = vmatprep.subr.bf16.mxu0 (%p4206_p0), %v10783_v62 }
 0xb26   : > { %v7556_v5 = vpop.eup %7555 }
 0xb27   : > { %v5411_v2 = vmul.f32 %v7556_v5, %v5410_v29 }
 0xb28   :  { %4208 = sbr.rel (!%p4206_p0) target bundleno = 1806 (0x70e), region = 166  ;;  %7358 = vmatpush3.bf16.msra.mxu0 (%p4206_p0), %v7581_v58 }
 0xb29   : > { %v10102_v20 = vadd.f32 %v5412_v1, %v5411_v2   ;;  %7359 = vmatprep.subr.bf16.mxu0 (%p4206_p0), %v10783_v62 }
 0xb2b   : > { %v10779_v49 = vmov %v10102_v20 }
 0xb2c   : > { %v10782_v20 = vmov %v10779_v49  ;;  %v5414_v54 = vpack.c.bf16 (%p4206_p0), %v10779_v49, %v10779_v49  ;;  %7360 = vmatpush3.bf16.msra.mxu0 (%p4206_p0), %v7583_v25 }
 0xb2d   :  { %7361 = vmatprep.subr.bf16.mxu0 %v10783_v62 }
 0xb2e   :  { %7344 = vmatmul.mubr.bf16.vlgmr.msra.gmra.mxu1 %v5414_v54 }
 0xb2f   :  { %7368 = vmatpush3.bf16.msra.mxu1 %v7576_v44  ;;  %7375 = vmatprep.mubr.msk.bf16.mxu1 %vm7623_vm4, %v10783_v62 }
 0xb30   :  { %7369 = vmatprep.subr.bf16.mxu1 %v10783_v62  ;;  %7362 = vmatpush3.bf16.msra.mxu0 %v7584_v4 }
 0xb33   :  { %7370 = vmatpush3.bf16.msra.mxu1 %v7578_v48  ;;  %7364 = vmatmul.mubr.bf16.vlgmr.msra.gmra.mxu0 %v5625_v43 }
 0xb34   :  { %7371 = vmatprep.subr.bf16.mxu1 %v10783_v62 }
 0xb37   :  { %7372 = vmatpush3.bf16.msra.mxu1 %v7580_v15 }
 0xb38   :  { %7373 = vmatprep.subr.bf16.mxu1 %v10783_v62 }
 0xb3b   :  { %7374 = vmatpush3.bf16.msra.mxu1 %v7582_v41 }
 0xb3e   :  { %7376 = vmatmul.mubr.msk.bf16.vlgmr.msra.gmra.mxu1 %vm5766_vm5, %v5733_v8 }
 0xbd3   :  { %v5531_v6 = vpop.f32.mrf.mxu0 }
 0xbd5   :  { %v7325_v11 = vpop.f32.mrf.mxu0 }
 0xbd7   :  { %v5534_v10 = vpop.f32.mrf.mxu0 }
 0xbd9   :  { %v7326_v31 = vpop.f32.mrf.mxu0 }
 0xbee   :  { %v5619_v20 = vpop.f32.mrf.mxu1 }
 0xbef   :  { %v5620_v23 = vadd.f32 %v5619_v20, %v5531_v6 }
 0xbf0   :  { %v7345_v12 = vpop.f32.mrf.mxu1 }
 0xbf2   :  { %v5622_v42 = vpop.f32.mrf.mxu1 }
 0xbf3   :  { %v5725_v33 = vpop.f32.mrf.mxu0 }
 0xbf4   :  { %v7346_v9 = vpop.f32.mrf.mxu1  ;;  %v5731_v28 = vadd.f32 %v5725_v33, %v5620_v23 }
 0xbf5   :  { %v7365_v21 = vpop.f32.mrf.mxu0 }
 0xbf7   :  { %v5728_v27 = vpop.f32.mrf.mxu0 }
 0xbf9   :  { %v7366_v39 = vpop.f32.mrf.mxu0 }
 0xbfe   :  { %v5804_v45 = vpop.f32.mrf.mxu1 }
 0xbff   :  { %v5810_v59 = vadd.f32 %v5804_v45, %v5731_v28 }
 0xc00   :  { %v7377_v37 = vpop.f32.mrf.mxu1 }
 0xc01   :  { %v5818_v18 = vadd.f32 %v6381_v53, %v5810_v59 }
 0xc02   :  { %v5807_v46 = vpop.f32.mrf.mxu1 }
 0xc03   :  { %5820 = vst.msk [vmem:[%s10788_s12] sm:$0xff] %vm5819_vm6, %v5818_v18 }
 0xc04   :  { %v7378_v35 = vpop.f32.mrf.mxu1 }

</bundles_post_ra>
